<compile_context>
chip_gen: v7x
topology: tpu7x:2x2x1
jax: 0.10.0
libtpu: 0.0.40
codegen_flags: <defaults>
</compile_context>

<pallas_src>
import math
from functools import partial

import jax
import jax.numpy as jnp
from jax.experimental import pallas as pl
from jax.experimental.pallas import tpu as pltpu


# ----------------------------------------------------------------------------
# Fused kernel.  grid = (batch_tiles, num_layers); layer 0 also runs
# fc_in + positional encoding.  The f32 residual lives in o_ref across layers.
# ----------------------------------------------------------------------------
def fused_encoder_kernel(nhead,
                         x_ref, w_in_ref, pe_ref,
                         wqkv_ref, wo_ref, w1_ref, w2_ref, small_ref,
                         o_ref):
    layer = pl.program_id(1)

    rows, D = o_ref.shape
    N = pe_ref.shape[0]
    bt = rows // N                      # sequences per batch tile (static)
    dh = D // nhead
    dff = w1_ref.shape[2]

    # ---- layer-0 prologue: fc_in + (positional encoding + fc_in bias) -------
    @pl.when(layer == 0)
    def _():
        xb = x_ref[...].astype(jnp.bfloat16)                # (rows, Din)
        y = jnp.dot(xb, w_in_ref[...], preferred_element_type=jnp.float32)
        y = y.reshape(bt, N, D) + pe_ref[...][None, :, :]   # pe already + b_in
        o_ref[...] = y.reshape(rows, D)                     # f32 residual

    h = o_ref[...]                                          # (rows, D) f32
    hb = h.astype(jnp.bfloat16)

    # ---- packed per-layer small vectors (one DMA per layer) -----------------
    small = small_ref[0]                                    # (8, W) f32
    bq  = small[0:1, 0:D]
    bk  = small[0:1, D:2 * D]
    bv  = small[0:1, 2 * D:3 * D]
    b1  = small[1:2, 0:dff]
    bo  = small[2:3, 0:D]
    b2  = small[3:4, 0:D]
    g1  = small[4:5, 0:D]
    be1 = small[5:6, 0:D]
    g2  = small[6:7, 0:D]
    be2 = small[7:8, 0:D]

    # ---- multi-head self-attention -------------------------------------------
    # Three separate dots against 128-lane-aligned wqkv column slices; never
    # materialize a (rows, 3D) f32 tensor.  1/sqrt(dh) is pre-folded into the
    # Q weight/bias on the host.
    q = (jnp.dot(hb, wqkv_ref[0, :, 0:D],
                 preferred_element_type=jnp.float32) + bq).astype(jnp.bfloat16)
    k = (jnp.dot(hb, wqkv_ref[0, :, D:2 * D],
                 preferred_element_type=jnp.float32) + bk).astype(jnp.bfloat16)
    v = (jnp.dot(hb, wqkv_ref[0, :, 2 * D:3 * D],
                 preferred_element_type=jnp.float32) + bv).astype(jnp.bfloat16)

    # One head relayout up front -> single (bt*nhead)-batched einsum pair.
    def to_heads(t):                                        # -> (bt*H, N, dh)
        return jnp.stack([t[b * N:(b + 1) * N, hh * dh:(hh + 1) * dh]
                          for b in range(bt) for hh in range(nhead)], axis=0)

    qh, kh, vh = to_heads(q), to_heads(k), to_heads(v)

    s = jnp.einsum("bqd,bkd->bqk", qh, kh,
                   preferred_element_type=jnp.float32)      # (bt*H, N, N)
    s = s - jnp.max(s, axis=-1, keepdims=True)
    p = jnp.exp(s)
    p = p * pl.reciprocal(jnp.sum(p, axis=-1, keepdims=True), approx=True)
    oh = jnp.einsum("bqk,bkd->bqd", p.astype(jnp.bfloat16), vh,
                    preferred_element_type=jnp.float32)     # (bt*H, N, dh)

    # Heads back to a bf16 (rows, D) buffer, then ONE deep out-projection.
    attn_rows = jnp.concatenate(
        [jnp.concatenate([oh[b * nhead + hh] for hh in range(nhead)], axis=-1)
         for b in range(bt)], axis=0).astype(jnp.bfloat16)  # (rows, D)
    attn = jnp.dot(attn_rows, wo_ref[0],
                   preferred_element_type=jnp.float32) + bo

    # ---- residual + LayerNorm1 (f32 stats) -----------------------------------
    h1 = h + attn
    mu1 = jnp.mean(h1, axis=-1, keepdims=True)
    var1 = jnp.mean((h1 - mu1) ** 2, axis=-1, keepdims=True)
    h1 = (h1 - mu1) * jax.lax.rsqrt(var1 + 1e-5) * g1 + be1

    # ---- feed-forward (Linear -> ReLU -> Linear) ------------------------------
    f = jnp.dot(h1.astype(jnp.bfloat16), w1_ref[0],
                preferred_element_type=jnp.float32) + b1
    f = jnp.maximum(f, 0.0)
    f = jnp.dot(f.astype(jnp.bfloat16), w2_ref[0],
                preferred_element_type=jnp.float32) + b2

    # ---- residual + LayerNorm2 (f32 stats) -----------------------------------
    h2 = h1 + f
    mu2 = jnp.mean(h2, axis=-1, keepdims=True)
    var2 = jnp.mean((h2 - mu2) ** 2, axis=-1, keepdims=True)
    o_ref[...] = (h2 - mu2) * jax.lax.rsqrt(var2 + 1e-5) * g2 + be2


# ----------------------------------------------------------------------------
# Host-side helpers / wrapper
# ----------------------------------------------------------------------------
def positional_encoding(max_len, d_model):
    position = jnp.arange(max_len, dtype=jnp.float32)[:, None]
    div_term = jnp.exp(jnp.arange(0, d_model, 2, dtype=jnp.float32)
                       * (-math.log(10000.0) / d_model))
    pe = jnp.zeros((max_len, d_model), dtype=jnp.float32)
    pe = pe.at[:, 0::2].set(jnp.sin(position * div_term))
    pe = pe.at[:, 1::2].set(jnp.cos(position * div_term))
    return pe


def _vmem_limit_bytes():
    # Generation-aware scoped-VMEM cap (v7x: 64 MiB physical; v5e/v6e: 128 MiB).
    try:
        cap = int(pltpu.get_tpu_info().vmem_capacity_bytes)
    except Exception:
        cap = 64 * 1024 * 1024
    return int(min(96 * 1024 * 1024, (cap * 3) // 4))


def audio_encoder(x, params, nhead, num_batch_tiles=None):
    B, N, Din = x.shape
    D = params["w_in"].shape[1]
    L = params["wqkv"].shape[0]
    dff = params["w1"].shape[2]
    dh = D // nhead

    # Batch-tile axis (parallel; shards over TensorCores on v7x).
    if num_batch_tiles is None:
        num_batch_tiles = 2 if (B % 2 == 0) else 1
    if B % num_batch_tiles != 0 or ((B // num_batch_tiles) * N) % 8 != 0:
        num_batch_tiles = 1
    bt = B // num_batch_tiles
    rows = bt * N

    x_flat = x.reshape(B * N, Din)                      # unpadded: DMA 40 cols

    # Fold the fc_in bias into the positional encoding (both layer-constant).
    pe_b = positional_encoding(N, D) + params["b_in"]   # (N, D) f32

    # Fold 1/sqrt(dh) into the Q columns of wqkv/bqkv (free at runtime).
    scale = 1.0 / math.sqrt(dh)
    wqkv = params["wqkv"]
    wqkv = jnp.concatenate(
        [(wqkv[..., :D].astype(jnp.float32) * scale).astype(wqkv.dtype),
         wqkv[..., D:]], axis=-1)
    bqkv = jnp.concatenate(
        [params["bqkv"][..., :D] * scale, params["bqkv"][..., D:]], axis=-1)

    # Pack the 8 tiny per-layer vectors into one (L, 8, W) array (1 DMA/layer).
    W = ((max(3 * D, dff) + 127) // 128) * 128
    def _row(a):
        return jnp.pad(a, ((0, 0), (0, 0), (0, W - a.shape[-1])))
    small = jnp.concatenate(
        [_row(bqkv), _row(params["b1"]), _row(params["bo"]), _row(params["b2"]),
         _row(params["g1"]), _row(params["be1"]),
         _row(params["g2"]), _row(params["be2"])], axis=1)      # (L, 8, W) f32

    def wspec(shape):
        return pl.BlockSpec((1,) + shape, lambda b, l: (l, 0, 0))

    in_specs = [
        pl.BlockSpec((rows, Din), lambda b, l: (b, 0)),   # x (per batch tile)
        pl.BlockSpec((Din, D), lambda b, l: (0, 0)),      # w_in (grid-constant)
        pl.BlockSpec((N, D), lambda b, l: (0, 0)),        # pe + b_in (constant)
        wspec((D, 3 * D)),                                # wqkv (per layer)
        wspec((D, D)),                                    # wo
        wspec((D, dff)),                                  # w1
        wspec((dff, D)),                                  # w2
        wspec((8, W)),                                    # packed small params
    ]

    out = pl.pallas_call(
        partial(fused_encoder_kernel, nhead),
        out_shape=jax.ShapeDtypeStruct((B * N, D), jnp.float32),
        grid_spec=pltpu.PrefetchScalarGridSpec(
            num_scalar_prefetch=0,
            grid=(num_batch_tiles, L),
            in_specs=in_specs,
            out_specs=pl.BlockSpec((rows, D), lambda b, l: (b, 0)),
        ),
        compiler_params=pltpu.CompilerParams(
            dimension_semantics=("parallel", "arbitrary"),
            vmem_limit_bytes=_vmem_limit_bytes(),
        ),
    )(x_flat, params["w_in"], pe_b,
      wqkv, params["wo"], params["w1"], params["w2"], small)
    return out.reshape(B, N, D)


# ----------------------------------------------------------------------------
# Parameters (weights bf16, biases / LN params f32), stacked over layers.
# ----------------------------------------------------------------------------
def init_params(key, input_dim, d_model, dff, num_layers):
    def nrm(k, shape, scale=0.02, dtype=jnp.float32):
        return (scale * jax.random.normal(k, shape, dtype=jnp.float32)).astype(dtype)

    L = num_layers
    ks = jax.random.split(key, 10)
    return {
        "w_in": nrm(ks[0], (input_dim, d_model), dtype=jnp.bfloat16),
        "b_in": nrm(ks[1], (1, d_model)),
        "wqkv": nrm(ks[2], (L, d_model, 3 * d_model), dtype=jnp.bfloat16),
        "bqkv": nrm(ks[3], (L, 1, 3 * d_model)),
        "wo":   nrm(ks[4], (L, d_model, d_model), dtype=jnp.bfloat16),
        "bo":   nrm(ks[5], (L, 1, d_model)),
        "w1":   nrm(ks[6], (L, d_model, dff), dtype=jnp.bfloat16),
        "b1":   nrm(ks[7], (L, 1, dff)),
        "w2":   nrm(ks[8], (L, dff, d_model), dtype=jnp.bfloat16),
        "b2":   nrm(ks[9], (L, 1, d_model)),
        "g1":   jnp.ones((L, 1, d_model), jnp.float32),
        "be1":  jnp.zeros((L, 1, d_model), jnp.float32),
        "g2":   jnp.ones((L, 1, d_model), jnp.float32),
        "be2":  jnp.zeros((L, 1, d_model), jnp.float32),
    }


# ----------------------------------------------------------------------------
# Pure-JAX f32 reference (PyTorch forward semantics; bf16-rounded weights).
# ----------------------------------------------------------------------------
def reference(x, params, nhead):
    B, N, _ = x.shape
    D = params["w_in"].shape[1]
    L = params["wqkv"].shape[0]
    dh = D // nhead
    f32 = lambda a: a.astype(jnp.float32)

    pe = positional_encoding(N, D)
    h = x @ f32(params["w_in"]) + params["b_in"] + pe[None]
    for l in range(L):
        wqkv, bqkv = f32(params["wqkv"][l]), params["bqkv"][l]
        wo, bo = f32(params["wo"][l]), params["bo"][l]
        w1, b1 = f32(params["w1"][l]), params["b1"][l]
        w2, b2 = f32(params["w2"][l]), params["b2"][l]
        g1, be1 = params["g1"][l], params["be1"][l]
        g2, be2 = params["g2"][l], params["be2"][l]

        qkv = h @ wqkv + bqkv
        q, k, v = qkv[..., :D], qkv[..., D:2 * D], qkv[..., 2 * D:]
        q = q.reshape(B, N, nhead, dh).transpose(0, 2, 1, 3)
        k = k.reshape(B, N, nhead, dh).transpose(0, 2, 1, 3)
        v = v.reshape(B, N, nhead, dh).transpose(0, 2, 1, 3)
        s = jnp.einsum("bhqd,bhkd->bhqk", q, k) / math.sqrt(dh)
        p = jax.nn.softmax(s, axis=-1)
        a = jnp.einsum("bhqk,bhkd->bhqd", p, v).transpose(0, 2, 1, 3).reshape(B, N, D)
        a = a @ wo + bo

        h1 = h + a
        mu = h1.mean(-1, keepdims=True)
        var = ((h1 - mu) ** 2).mean(-1, keepdims=True)
        h1 = (h1 - mu) * jax.lax.rsqrt(var + 1e-5) * g1 + be1

        f = jnp.maximum(h1 @ w1 + b1, 0.0) @ w2 + b2
        h2 = h1 + f
        mu2 = h2.mean(-1, keepdims=True)
        var2 = ((h2 - mu2) ** 2).mean(-1, keepdims=True)
        h = (h2 - mu2) * jax.lax.rsqrt(var2 + 1e-5) * g2 + be2
    return h


if __name__ == "__main__":
    # Small shapes consistent with AudioEncoder(input_dim=40, hidden_dim, ...):
    # B*N = 128 tokens, d_model = 128 (lane-dense), nhead = 4 (dh = 32).
    B, N = 2, 64
    input_dim, d_model, nhead, num_layers, dff = 40, 128, 4, 2, 256

    key = jax.random.PRNGKey(0)
    kx, kp = jax.random.split(key)
    x = jax.random.normal(kx, (B, N, input_dim), dtype=jnp.float32)
    params = init_params(kp, input_dim, d_model, dff, num_layers)

    out = jax.block_until_ready(audio_encoder(x, params, nhead))
    ref = jax.block_until_ready(reference(x, params, nhead))

    assert out.shape == (B, N, d_model)
    assert bool(jnp.all(jnp.isfinite(out)))
    # bf16 matmul inputs + approx reciprocal vs. f32 reference -> looser tol.
    max_err = float(jnp.max(jnp.abs(out - ref)))
    assert bool(jnp.allclose(out, ref, rtol=2e-2, atol=2e-2)), f"max abs err {max_err}"
    print("KERNEL_OK")
</pallas_src>

<mosaic_0001>
module attributes {stable_mosaic.version = 11 : i64} {
  func.func @fused_encoder_kernel(%arg0: i32, %arg1: i32, %arg2: memref<64x40xf32, #tpu.memory_space<vmem>>, %arg3: memref<40x128xbf16, #tpu.memory_space<vmem>>, %arg4: memref<64x128xf32, #tpu.memory_space<vmem>>, %arg5: memref<1x128x384xbf16, #tpu.memory_space<vmem>>, %arg6: memref<1x128x128xbf16, #tpu.memory_space<vmem>>, %arg7: memref<1x128x256xbf16, #tpu.memory_space<vmem>>, %arg8: memref<1x256x128xbf16, #tpu.memory_space<vmem>>, %arg9: memref<1x8x384xf32, #tpu.memory_space<vmem>>, %arg10: memref<64x128xf32, #tpu.memory_space<vmem>>) attributes {dimension_semantics = [#tpu.dimension_semantics<parallel>, #tpu.dimension_semantics<arbitrary>], iteration_bounds = array<i64: 2, 2>, scalar_prefetch = 0 : i64, scratch_operands = 0 : i64, tpu.core_type = #tpu.core_type<tc>, window_params = [{transform_indices = @transform_0, window_bounds = array<i64: 64, 40>}, {pipeline_mode = #tpu.pipeline_mode<synchronous>, transform_indices = @transform_1, window_bounds = array<i64: 40, 128>}, {pipeline_mode = #tpu.pipeline_mode<synchronous>, transform_indices = @transform_2, window_bounds = array<i64: 64, 128>}, {transform_indices = @transform_3, window_bounds = array<i64: 1, 128, 384>}, {transform_indices = @transform_4, window_bounds = array<i64: 1, 128, 128>}, {transform_indices = @transform_5, window_bounds = array<i64: 1, 128, 256>}, {transform_indices = @transform_6, window_bounds = array<i64: 1, 256, 128>}, {transform_indices = @transform_7, window_bounds = array<i64: 1, 8, 384>}, {transform_indices = @transform_8, window_bounds = array<i64: 64, 128>}]} {
    %c0_i32 = arith.constant 0 : i32
    %0 = arith.cmpi eq, %arg1, %c0_i32 : i32
    %1 = arith.extui %0 : i1 to i32
    %c0_i32_0 = arith.constant 0 : i32
    %2 = arith.cmpi ne, %1, %c0_i32_0 : i32
    scf.if %2 {
      %c0_43 = arith.constant 0 : index
      %c0_44 = arith.constant 0 : index
      %151 = vector.load %arg2[%c0_43, %c0_44] : memref<64x40xf32, #tpu.memory_space<vmem>>, vector<64x40xf32>
      %152 = arith.truncf %151 : vector<64x40xf32> to vector<64x40xbf16>
      %c0_45 = arith.constant 0 : index
      %c0_46 = arith.constant 0 : index
      %153 = vector.load %arg3[%c0_45, %c0_46] : memref<40x128xbf16, #tpu.memory_space<vmem>>, vector<40x128xbf16>
      %cst_47 = arith.constant dense<0.000000e+00> : vector<64x128xf32>
      %154 = tpu.matmul %152, %153, %cst_47 {dimension_numbers = #tpu.dot_dimension_numbers<[1], [0], [0], [1], [0, 0, 1, 1], [], []>} : vector<64x40xbf16>, vector<40x128xbf16>, vector<64x128xf32> -> vector<64x128xf32>
      %155 = vector.shape_cast %154 : vector<64x128xf32> to vector<1x64x128xf32>
      %c0_48 = arith.constant 0 : index
      %c0_49 = arith.constant 0 : index
      %156 = vector.load %arg4[%c0_48, %c0_49] : memref<64x128xf32, #tpu.memory_space<vmem>>, vector<64x128xf32>
      %157 = vector.shape_cast %156 : vector<64x128xf32> to vector<1x64x128xf32>
      %158 = arith.addf %155, %157 : vector<1x64x128xf32>
      %159 = vector.shape_cast %158 : vector<1x64x128xf32> to vector<64x128xf32>
      %c0_50 = arith.constant 0 : index
      %c0_51 = arith.constant 0 : index
      %160 = vector.load %arg10[%c0_50, %c0_51] : memref<64x128xf32, #tpu.memory_space<vmem>>, vector<64x128xf32>
      tpu.vector_store %arg10[%c0_50, %c0_51], %159 {strides = array<i32>} : memref<64x128xf32, #tpu.memory_space<vmem>>, vector<64x128xf32>,
    } else {
    }
    %c0 = arith.constant 0 : index
    %c0_1 = arith.constant 0 : index
    %3 = vector.load %arg10[%c0, %c0_1] : memref<64x128xf32, #tpu.memory_space<vmem>>, vector<64x128xf32>
    %4 = arith.truncf %3 : vector<64x128xf32> to vector<64x128xbf16>
    %c0_2 = arith.constant 0 : index
    %c0_3 = arith.constant 0 : index
    %c0_4 = arith.constant 0 : index
    %5 = vector.load %arg9[%c0_2, %c0_3, %c0_4] : memref<1x8x384xf32, #tpu.memory_space<vmem>>, vector<1x8x384xf32>
    %6 = vector.shape_cast %5 : vector<1x8x384xf32> to vector<8x384xf32>
    %7 = vector.extract_strided_slice %6 {offsets = [0, 0], sizes = [1, 128], strides = [1, 1]} : vector<8x384xf32> to vector<1x128xf32>
    %8 = vector.extract_strided_slice %6 {offsets = [0, 128], sizes = [1, 128], strides = [1, 1]} : vector<8x384xf32> to vector<1x128xf32>
    %9 = vector.extract_strided_slice %6 {offsets = [0, 256], sizes = [1, 128], strides = [1, 1]} : vector<8x384xf32> to vector<1x128xf32>
    %10 = vector.extract_strided_slice %6 {offsets = [1, 0], sizes = [1, 256], strides = [1, 1]} : vector<8x384xf32> to vector<1x256xf32>
    %11 = vector.extract_strided_slice %6 {offsets = [2, 0], sizes = [1, 128], strides = [1, 1]} : vector<8x384xf32> to vector<1x128xf32>
    %12 = vector.extract_strided_slice %6 {offsets = [3, 0], sizes = [1, 128], strides = [1, 1]} : vector<8x384xf32> to vector<1x128xf32>
    %13 = vector.extract_strided_slice %6 {offsets = [4, 0], sizes = [1, 128], strides = [1, 1]} : vector<8x384xf32> to vector<1x128xf32>
    %14 = vector.extract_strided_slice %6 {offsets = [5, 0], sizes = [1, 128], strides = [1, 1]} : vector<8x384xf32> to vector<1x128xf32>
    %15 = vector.extract_strided_slice %6 {offsets = [6, 0], sizes = [1, 128], strides = [1, 1]} : vector<8x384xf32> to vector<1x128xf32>
    %16 = vector.extract_strided_slice %6 {offsets = [7, 0], sizes = [1, 128], strides = [1, 1]} : vector<8x384xf32> to vector<1x128xf32>
    %c0_5 = arith.constant 0 : index
    %c0_6 = arith.constant 0 : index
    %c0_7 = arith.constant 0 : index
    %17 = vector.load %arg5[%c0_5, %c0_6, %c0_7] : memref<1x128x384xbf16, #tpu.memory_space<vmem>>, vector<1x128x128xbf16>
    %18 = vector.shape_cast %17 : vector<1x128x128xbf16> to vector<128x128xbf16>
    %cst = arith.constant dense<0.000000e+00> : vector<64x128xf32>
    %19 = tpu.matmul %4, %18, %cst {dimension_numbers = #tpu.dot_dimension_numbers<[1], [0], [0], [1], [0, 0, 1, 1], [], []>} : vector<64x128xbf16>, vector<128x128xbf16>, vector<64x128xf32> -> vector<64x128xf32>
    %20 = vector.broadcast %7 : vector<1x128xf32> to vector<64x128xf32>
    %21 = arith.addf %19, %20 : vector<64x128xf32>
    %22 = arith.truncf %21 : vector<64x128xf32> to vector<64x128xbf16>
    %c0_8 = arith.constant 0 : index
    %c0_9 = arith.constant 0 : index
    %c128 = arith.constant 128 : index
    %23 = vector.load %arg5[%c0_8, %c0_9, %c128] : memref<1x128x384xbf16, #tpu.memory_space<vmem>>, vector<1x128x128xbf16>
    %24 = vector.shape_cast %23 : vector<1x128x128xbf16> to vector<128x128xbf16>
    %cst_10 = arith.constant dense<0.000000e+00> : vector<64x128xf32>
    %25 = tpu.matmul %4, %24, %cst_10 {dimension_numbers = #tpu.dot_dimension_numbers<[1], [0], [0], [1], [0, 0, 1, 1], [], []>} : vector<64x128xbf16>, vector<128x128xbf16>, vector<64x128xf32> -> vector<64x128xf32>
    %26 = vector.broadcast %8 : vector<1x128xf32> to vector<64x128xf32>
    %27 = arith.addf %25, %26 : vector<64x128xf32>
    %28 = arith.truncf %27 : vector<64x128xf32> to vector<64x128xbf16>
    %c0_11 = arith.constant 0 : index
    %c0_12 = arith.constant 0 : index
    %c256 = arith.constant 256 : index
    %29 = vector.load %arg5[%c0_11, %c0_12, %c256] : memref<1x128x384xbf16, #tpu.memory_space<vmem>>, vector<1x128x128xbf16>
    %30 = vector.shape_cast %29 : vector<1x128x128xbf16> to vector<128x128xbf16>
    %cst_13 = arith.constant dense<0.000000e+00> : vector<64x128xf32>
    %31 = tpu.matmul %4, %30, %cst_13 {dimension_numbers = #tpu.dot_dimension_numbers<[1], [0], [0], [1], [0, 0, 1, 1], [], []>} : vector<64x128xbf16>, vector<128x128xbf16>, vector<64x128xf32> -> vector<64x128xf32>
    %32 = vector.broadcast %9 : vector<1x128xf32> to vector<64x128xf32>
    %33 = arith.addf %31, %32 : vector<64x128xf32>
    %34 = arith.truncf %33 : vector<64x128xf32> to vector<64x128xbf16>
    %35 = vector.extract_strided_slice %22 {offsets = [0, 0], sizes = [64, 32], strides = [1, 1]} : vector<64x128xbf16> to vector<64x32xbf16>
    %36 = vector.extract_strided_slice %22 {offsets = [0, 32], sizes = [64, 32], strides = [1, 1]} : vector<64x128xbf16> to vector<64x32xbf16>
    %37 = vector.extract_strided_slice %22 {offsets = [0, 64], sizes = [64, 32], strides = [1, 1]} : vector<64x128xbf16> to vector<64x32xbf16>
    %38 = vector.extract_strided_slice %22 {offsets = [0, 96], sizes = [64, 32], strides = [1, 1]} : vector<64x128xbf16> to vector<64x32xbf16>
    %39 = vector.shape_cast %35 : vector<64x32xbf16> to vector<1x64x32xbf16>
    %40 = vector.shape_cast %36 : vector<64x32xbf16> to vector<1x64x32xbf16>
    %41 = vector.shape_cast %37 : vector<64x32xbf16> to vector<1x64x32xbf16>
    %42 = vector.shape_cast %38 : vector<64x32xbf16> to vector<1x64x32xbf16>
    %43 = tpu.concatenate %39, %40, %41, %42 in 0 : vector<1x64x32xbf16>, vector<1x64x32xbf16>, vector<1x64x32xbf16>, vector<1x64x32xbf16> -> vector<4x64x32xbf16>
    %44 = vector.extract_strided_slice %28 {offsets = [0, 0], sizes = [64, 32], strides = [1, 1]} : vector<64x128xbf16> to vector<64x32xbf16>
    %45 = vector.extract_strided_slice %28 {offsets = [0, 32], sizes = [64, 32], strides = [1, 1]} : vector<64x128xbf16> to vector<64x32xbf16>
    %46 = vector.extract_strided_slice %28 {offsets = [0, 64], sizes = [64, 32], strides = [1, 1]} : vector<64x128xbf16> to vector<64x32xbf16>
    %47 = vector.extract_strided_slice %28 {offsets = [0, 96], sizes = [64, 32], strides = [1, 1]} : vector<64x128xbf16> to vector<64x32xbf16>
    %48 = vector.shape_cast %44 : vector<64x32xbf16> to vector<1x64x32xbf16>
    %49 = vector.shape_cast %45 : vector<64x32xbf16> to vector<1x64x32xbf16>
    %50 = vector.shape_cast %46 : vector<64x32xbf16> to vector<1x64x32xbf16>
    %51 = vector.shape_cast %47 : vector<64x32xbf16> to vector<1x64x32xbf16>
    %52 = tpu.concatenate %48, %49, %50, %51 in 0 : vector<1x64x32xbf16>, vector<1x64x32xbf16>, vector<1x64x32xbf16>, vector<1x64x32xbf16> -> vector<4x64x32xbf16>
    %53 = vector.extract_strided_slice %34 {offsets = [0, 0], sizes = [64, 32], strides = [1, 1]} : vector<64x128xbf16> to vector<64x32xbf16>
    %54 = vector.extract_strided_slice %34 {offsets = [0, 32], sizes = [64, 32], strides = [1, 1]} : vector<64x128xbf16> to vector<64x32xbf16>
    %55 = vector.extract_strided_slice %34 {offsets = [0, 64], sizes = [64, 32], strides = [1, 1]} : vector<64x128xbf16> to vector<64x32xbf16>
    %56 = vector.extract_strided_slice %34 {offsets = [0, 96], sizes = [64, 32], strides = [1, 1]} : vector<64x128xbf16> to vector<64x32xbf16>
    %57 = vector.shape_cast %53 : vector<64x32xbf16> to vector<1x64x32xbf16>
    %58 = vector.shape_cast %54 : vector<64x32xbf16> to vector<1x64x32xbf16>
    %59 = vector.shape_cast %55 : vector<64x32xbf16> to vector<1x64x32xbf16>
    %60 = vector.shape_cast %56 : vector<64x32xbf16> to vector<1x64x32xbf16>
    %61 = tpu.concatenate %57, %58, %59, %60 in 0 : vector<1x64x32xbf16>, vector<1x64x32xbf16>, vector<1x64x32xbf16>, vector<1x64x32xbf16> -> vector<4x64x32xbf16>
    "tpu.trace_start"() <{level = 10 : i32, message = "bqd,bkd->bqk"}> : () -> ()
    %cst_14 = arith.constant dense<0.000000e+00> : vector<4x64x64xf32>
    %62 = tpu.matmul %43, %52, %cst_14 {dimension_numbers = #tpu.dot_dimension_numbers<[2], [2], [1], [1], [0, 0, 0, 1, 1, 1], [0], [0]>} : vector<4x64x32xbf16>, vector<4x64x32xbf16>, vector<4x64x64xf32> -> vector<4x64x64xf32>
    "tpu.trace_stop"() : () -> ()
    %cst_15 = arith.constant dense<0xFF800000> : vector<4x64xf32>
    %63 = vector.multi_reduction <maximumf>, %62, %cst_15 [2] : vector<4x64x64xf32> to vector<4x64xf32>
    %64 = vector.shape_cast %63 : vector<4x64xf32> to vector<4x64x1xf32>
    %65 = vector.broadcast %64 : vector<4x64x1xf32> to vector<4x64x64xf32>
    %66 = arith.subf %62, %65 : vector<4x64x64xf32>
    %67 = math.exp %66 : vector<4x64x64xf32>
    %cst_16 = arith.constant dense<0.000000e+00> : vector<4x64xf32>
    %68 = vector.multi_reduction <add>, %67, %cst_16 [2] : vector<4x64x64xf32> to vector<4x64xf32>
    %69 = vector.shape_cast %68 : vector<4x64xf32> to vector<4x64x1xf32>
    %70 = tpu.reciprocal %69 {approx = true} : vector<4x64x1xf32> -> vector<4x64x1xf32>
    %71 = vector.broadcast %70 : vector<4x64x1xf32> to vector<4x64x64xf32>
    %72 = arith.mulf %67, %71 : vector<4x64x64xf32>
    %73 = arith.truncf %72 : vector<4x64x64xf32> to vector<4x64x64xbf16>
    "tpu.trace_start"() <{level = 10 : i32, message = "bqk,bkd->bqd"}> : () -> ()
    %cst_17 = arith.constant dense<0.000000e+00> : vector<4x64x32xf32>
    %74 = tpu.matmul %73, %61, %cst_17 {dimension_numbers = #tpu.dot_dimension_numbers<[2], [1], [1], [2], [0, 0, 0, 1, 1, 2], [0], [0]>} : vector<4x64x64xbf16>, vector<4x64x32xbf16>, vector<4x64x32xf32> -> vector<4x64x32xf32>
    "tpu.trace_stop"() : () -> ()
    %75 = vector.extract_strided_slice %74 {offsets = [0, 0, 0], sizes = [1, 64, 32], strides = [1, 1, 1]} : vector<4x64x32xf32> to vector<1x64x32xf32>
    %76 = vector.shape_cast %75 : vector<1x64x32xf32> to vector<64x32xf32>
    %77 = vector.extract_strided_slice %74 {offsets = [1, 0, 0], sizes = [1, 64, 32], strides = [1, 1, 1]} : vector<4x64x32xf32> to vector<1x64x32xf32>
    %78 = vector.shape_cast %77 : vector<1x64x32xf32> to vector<64x32xf32>
    %79 = vector.extract_strided_slice %74 {offsets = [2, 0, 0], sizes = [1, 64, 32], strides = [1, 1, 1]} : vector<4x64x32xf32> to vector<1x64x32xf32>
    %80 = vector.shape_cast %79 : vector<1x64x32xf32> to vector<64x32xf32>
    %81 = vector.extract_strided_slice %74 {offsets = [3, 0, 0], sizes = [1, 64, 32], strides = [1, 1, 1]} : vector<4x64x32xf32> to vector<1x64x32xf32>
    %82 = vector.shape_cast %81 : vector<1x64x32xf32> to vector<64x32xf32>
    %83 = tpu.concatenate %76, %78, %80, %82 in 1 : vector<64x32xf32>, vector<64x32xf32>, vector<64x32xf32>, vector<64x32xf32> -> vector<64x128xf32>
    %84 = arith.truncf %83 : vector<64x128xf32> to vector<64x128xbf16>
    %c0_18 = arith.constant 0 : index
    %c0_19 = arith.constant 0 : index
    %c0_20 = arith.constant 0 : index
    %85 = vector.load %arg6[%c0_18, %c0_19, %c0_20] : memref<1x128x128xbf16, #tpu.memory_space<vmem>>, vector<1x128x128xbf16>
    %86 = vector.shape_cast %85 : vector<1x128x128xbf16> to vector<128x128xbf16>
    %cst_21 = arith.constant dense<0.000000e+00> : vector<64x128xf32>
    %87 = tpu.matmul %84, %86, %cst_21 {dimension_numbers = #tpu.dot_dimension_numbers<[1], [0], [0], [1], [0, 0, 1, 1], [], []>} : vector<64x128xbf16>, vector<128x128xbf16>, vector<64x128xf32> -> vector<64x128xf32>
    %88 = vector.broadcast %11 : vector<1x128xf32> to vector<64x128xf32>
    %89 = arith.addf %87, %88 : vector<64x128xf32>
    %90 = arith.addf %3, %89 : vector<64x128xf32>
    %cst_22 = arith.constant dense<0.000000e+00> : vector<64xf32>
    %91 = vector.multi_reduction <add>, %90, %cst_22 [1] : vector<64x128xf32> to vector<64xf32>
    %92 = vector.shape_cast %91 : vector<64xf32> to vector<64x1xf32>
    %cst_23 = arith.constant 1.280000e+02 : f32
    %93 = vector.broadcast %cst_23 : f32 to vector<64x1xf32>
    %94 = arith.divf %92, %93 : vector<64x1xf32>
    %95 = vector.broadcast %94 : vector<64x1xf32> to vector<64x128xf32>
    %96 = arith.subf %90, %95 : vector<64x128xf32>
    %97 = arith.mulf %96, %96 : vector<64x128xf32>
    %cst_24 = arith.constant dense<0.000000e+00> : vector<64xf32>
    %98 = vector.multi_reduction <add>, %97, %cst_24 [1] : vector<64x128xf32> to vector<64xf32>
    %99 = vector.shape_cast %98 : vector<64xf32> to vector<64x1xf32>
    %cst_25 = arith.constant 1.280000e+02 : f32
    %100 = vector.broadcast %cst_25 : f32 to vector<64x1xf32>
    %101 = arith.divf %99, %100 : vector<64x1xf32>
    %102 = vector.broadcast %94 : vector<64x1xf32> to vector<64x128xf32>
    %103 = arith.subf %90, %102 : vector<64x128xf32>
    %cst_26 = arith.constant 9.99999974E-6 : f32
    %104 = vector.broadcast %cst_26 : f32 to vector<64x1xf32>
    %105 = arith.addf %101, %104 : vector<64x1xf32>
    %106 = math.rsqrt %105 : vector<64x1xf32>
    %107 = vector.broadcast %106 : vector<64x1xf32> to vector<64x128xf32>
    %108 = arith.mulf %103, %107 : vector<64x128xf32>
    %109 = vector.broadcast %13 : vector<1x128xf32> to vector<64x128xf32>
    %110 = arith.mulf %108, %109 : vector<64x128xf32>
    %111 = vector.broadcast %14 : vector<1x128xf32> to vector<64x128xf32>
    %112 = arith.addf %110, %111 : vector<64x128xf32>
    %113 = arith.truncf %112 : vector<64x128xf32> to vector<64x128xbf16>
    %c0_27 = arith.constant 0 : index
    %c0_28 = arith.constant 0 : index
    %c0_29 = arith.constant 0 : index
    %114 = vector.load %arg7[%c0_27, %c0_28, %c0_29] : memref<1x128x256xbf16, #tpu.memory_space<vmem>>, vector<1x128x256xbf16>
    %115 = vector.shape_cast %114 : vector<1x128x256xbf16> to vector<128x256xbf16>
    %cst_30 = arith.constant dense<0.000000e+00> : vector<64x256xf32>
    %116 = tpu.matmul %113, %115, %cst_30 {dimension_numbers = #tpu.dot_dimension_numbers<[1], [0], [0], [1], [0, 0, 1, 1], [], []>} : vector<64x128xbf16>, vector<128x256xbf16>, vector<64x256xf32> -> vector<64x256xf32>
    %117 = vector.broadcast %10 : vector<1x256xf32> to vector<64x256xf32>
    %118 = arith.addf %116, %117 : vector<64x256xf32>
    %cst_31 = arith.constant 0.000000e+00 : f32
    %119 = vector.broadcast %cst_31 : f32 to vector<64x256xf32>
    %120 = arith.maximumf %118, %119 : vector<64x256xf32>
    %121 = arith.truncf %120 : vector<64x256xf32> to vector<64x256xbf16>
    %c0_32 = arith.constant 0 : index
    %c0_33 = arith.constant 0 : index
    %c0_34 = arith.constant 0 : index
    %122 = vector.load %arg8[%c0_32, %c0_33, %c0_34] : memref<1x256x128xbf16, #tpu.memory_space<vmem>>, vector<1x256x128xbf16>
    %123 = vector.shape_cast %122 : vector<1x256x128xbf16> to vector<256x128xbf16>
    %cst_35 = arith.constant dense<0.000000e+00> : vector<64x128xf32>
    %124 = tpu.matmul %121, %123, %cst_35 {dimension_numbers = #tpu.dot_dimension_numbers<[1], [0], [0], [1], [0, 0, 1, 1], [], []>} : vector<64x256xbf16>, vector<256x128xbf16>, vector<64x128xf32> -> vector<64x128xf32>
    %125 = vector.broadcast %12 : vector<1x128xf32> to vector<64x128xf32>
    %126 = arith.addf %124, %125 : vector<64x128xf32>
    %127 = arith.addf %112, %126 : vector<64x128xf32>
    %cst_36 = arith.constant dense<0.000000e+00> : vector<64xf32>
    %128 = vector.multi_reduction <add>, %127, %cst_36 [1] : vector<64x128xf32> to vector<64xf32>
    %129 = vector.shape_cast %128 : vector<64xf32> to vector<64x1xf32>
    %cst_37 = arith.constant 1.280000e+02 : f32
    %130 = vector.broadcast %cst_37 : f32 to vector<64x1xf32>
    %131 = arith.divf %129, %130 : vector<64x1xf32>
    %132 = vector.broadcast %131 : vector<64x1xf32> to vector<64x128xf32>
    %133 = arith.subf %127, %132 : vector<64x128xf32>
    %134 = arith.mulf %133, %133 : vector<64x128xf32>
    %cst_38 = arith.constant dense<0.000000e+00> : vector<64xf32>
    %135 = vector.multi_reduction <add>, %134, %cst_38 [1] : vector<64x128xf32> to vector<64xf32>
    %136 = vector.shape_cast %135 : vector<64xf32> to vector<64x1xf32>
    %cst_39 = arith.constant 1.280000e+02 : f32
    %137 = vector.broadcast %cst_39 : f32 to vector<64x1xf32>
    %138 = arith.divf %136, %137 : vector<64x1xf32>
    %139 = vector.broadcast %131 : vector<64x1xf32> to vector<64x128xf32>
    %140 = arith.subf %127, %139 : vector<64x128xf32>
    %cst_40 = arith.constant 9.99999974E-6 : f32
    %141 = vector.broadcast %cst_40 : f32 to vector<64x1xf32>
    %142 = arith.addf %138, %141 : vector<64x1xf32>
    %143 = math.rsqrt %142 : vector<64x1xf32>
    %144 = vector.broadcast %143 : vector<64x1xf32> to vector<64x128xf32>
    %145 = arith.mulf %140, %144 : vector<64x128xf32>
    %146 = vector.broadcast %15 : vector<1x128xf32> to vector<64x128xf32>
    %147 = arith.mulf %145, %146 : vector<64x128xf32>
    %148 = vector.broadcast %16 : vector<1x128xf32> to vector<64x128xf32>
    %149 = arith.addf %147, %148 : vector<64x128xf32>
    %c0_41 = arith.constant 0 : index
    %c0_42 = arith.constant 0 : index
    %150 = vector.load %arg10[%c0_41, %c0_42] : memref<64x128xf32, #tpu.memory_space<vmem>>, vector<64x128xf32>
    tpu.vector_store %arg10[%c0_41, %c0_42], %149 {strides = array<i32>} : memref<64x128xf32, #tpu.memory_space<vmem>>, vector<64x128xf32>,
    return
  }
  func.func @transform_0(%arg0: i32, %arg1: i32) -> (i32, i32) {
    %c0_i32 = arith.constant 0 : i32
    %c0_i32_0 = arith.constant 0 : i32
    return %arg0, %c0_i32 : i32, i32
  }
  func.func @transform_1(%arg0: i32, %arg1: i32) -> (i32, i32) {
    %c0_i32 = arith.constant 0 : i32
    %c0_i32_0 = arith.constant 0 : i32
    %c0_i32_1 = arith.constant 0 : i32
    return %c0_i32, %c0_i32_0 : i32, i32
  }
  func.func @transform_2(%arg0: i32, %arg1: i32) -> (i32, i32) {
    %c0_i32 = arith.constant 0 : i32
    %c0_i32_0 = arith.constant 0 : i32
    %c0_i32_1 = arith.constant 0 : i32
    return %c0_i32, %c0_i32_0 : i32, i32
  }
  func.func @transform_3(%arg0: i32, %arg1: i32) -> (i32, i32, i32) {
    %c0_i32 = arith.constant 0 : i32
    %c0_i32_0 = arith.constant 0 : i32
    %c0_i32_1 = arith.constant 0 : i32
    return %arg1, %c0_i32, %c0_i32_0 : i32, i32, i32
  }
  func.func @transform_4(%arg0: i32, %arg1: i32) -> (i32, i32, i32) {
    %c0_i32 = arith.constant 0 : i32
    %c0_i32_0 = arith.constant 0 : i32
    %c0_i32_1 = arith.constant 0 : i32
    return %arg1, %c0_i32, %c0_i32_0 : i32, i32, i32
  }
  func.func @transform_5(%arg0: i32, %arg1: i32) -> (i32, i32, i32) {
    %c0_i32 = arith.constant 0 : i32
    %c0_i32_0 = arith.constant 0 : i32
    %c0_i32_1 = arith.constant 0 : i32
    return %arg1, %c0_i32, %c0_i32_0 : i32, i32, i32
  }
  func.func @transform_6(%arg0: i32, %arg1: i32) -> (i32, i32, i32) {
    %c0_i32 = arith.constant 0 : i32
    %c0_i32_0 = arith.constant 0 : i32
    %c0_i32_1 = arith.constant 0 : i32
    return %arg1, %c0_i32, %c0_i32_0 : i32, i32, i32
  }
  func.func @transform_7(%arg0: i32, %arg1: i32) -> (i32, i32, i32) {
    %c0_i32 = arith.constant 0 : i32
    %c0_i32_0 = arith.constant 0 : i32
    %c0_i32_1 = arith.constant 0 : i32
    return %arg1, %c0_i32, %c0_i32_0 : i32, i32, i32
  }
  func.func @transform_8(%arg0: i32, %arg1: i32) -> (i32, i32) {
    %c0_i32 = arith.constant 0 : i32
    %c0_i32_0 = arith.constant 0 : i32
    return %arg0, %c0_i32 : i32, i32
  }
}

</mosaic_0001>

<bundles_post_ra>
// kernel: tpu_custom_call.1
= control target key start
LH: loop header
LB: loop body
LE: loop exit
PB: predicated region body
PF: predicated region fallthrough
CT: control target
= control target key end

     0   :  { %s5847_s0 = inlined_call_operand.vmem [shape: f32[128,40], index: 0, kind: input, shape index: {}]   ;;  %s5848_s1 = inlined_call_operand.hbm [shape: bf16[40,128], index: 1, kind: input, shape index: {}]   ;;  %s5849_s2 = inlined_call_operand.hbm [shape: f32[64,128], index: 2, kind: input, shape index: {}]   ;;  %s5850_s3 = inlined_call_operand.hbm [shape: bf16[2,128,384], index: 3, kind: input, shape index: {}]   ;;  %s5851_s4 = inlined_call_operand.vmem [shape: bf16[2,128,128], index: 4, kind: input, shape index: {}]   ;;  %s5852_s5 = inlined_call_operand.hbm [shape: bf16[2,128,256], index: 5, kind: input, shape index: {}]   ;;  %s5853_s6 = inlined_call_operand.hbm [shape: bf16[2,256,128], index: 6, kind: input, shape index: {}]   ;;  %s5854_s7 = inlined_call_operand.vmem [shape: f32[2,8,384], index: 7, kind: input, shape index: {}]   ;;  %s5855_s8 = inlined_call_operand.hbm [shape: f32[128,128], index: 8, kind: output, shape index: {}]  }
   0x1   :  { %5881 = sst [smem:[#allocation25_spill]] %s5847_s0 }
   0x2   :  { %5882 = sst [smem:[#allocation26_spill]] %s5848_s1 }
   0x3   :  { %5883 = sst [smem:[#allocation27_spill]] %s5850_s3 }
   0x4   :  { %5884 = sst [smem:[#allocation28_spill]] %s5851_s4 }
   0x5   :  { %5885 = sst [smem:[#allocation29_spill]] %s5852_s5 }
   0x6   :  { %5886 = sst [smem:[#allocation30_spill]] %s5854_s7 }
   0x7   :  { %5887 = sst [smem:[#allocation31_spill]] %s5855_s8 }
   0x8   :  { %13 = vsyncpa [#allocation3], 0 }
   0x9   :  { %14 = vsyncpa [#allocation6], 0 }
   0xa   :  { %15 = vsyncpa [#allocation4], 0 }
   0xb   :  { %17 = vsyncpa [#allocation4 + $0x1], 0  ;;  %s4654_s27 = smov 0   ;;  %s4656_s28 = smov 0  }
   0xc   :  { %s4658_s29 = smov 0   ;;  %s4660_s30 = smov 0  }
   0xd   :  { %s4662_s9 = smov 0   ;;  %s4664_s10 = smov 0  }
   0xe   :  { %s4666_s11 = smov 0   ;;  %s4668_s12 = smov 0  }
   0xf   :  { %s4670_s13 = smov 0   ;;  %s4672_s14 = smov 0  }
  0x10   :  { %s4674_s15 = smov 0  }
  0x11 LB: > { %5888 = sst [smem:[#allocation15_spill]] %s4549_s27  ;;  %s4708_s16 = sadd.s32 4294967295, %s4589_s15   ;;  %s4589_s15 = sphi %s4674_s15, %s23_s15   ;;  %s4585_s14 = sphi %s4672_s14, %s5941_s14   ;;  %s4581_s13 = sphi %s4670_s13, %s5949_s13   ;;  %s4577_s12 = sphi %s4668_s12, %s5939_s12   ;;  %s4573_s11 = sphi %s4666_s11, %s5948_s11   ;;  %s4569_s10 = sphi %s4664_s10, %s5947_s10   ;;  %s4565_s9 = sphi %s4662_s9, %s5946_s9   ;;  %s4561_s30 = sphi %s4660_s30, %s5945_s30   ;;  %s4557_s29 = sphi %s4658_s29, %s5944_s29   ;;  %s4553_s28 = sphi %s4656_s28, %s5943_s28   ;;  %s4549_s27 = sphi %s4654_s27, %s5942_s27  }
  0x12   : > { %5889 = sst [smem:[#allocation16_spill]] %s4569_s10  ;;  %s3302_s17 = sadd.s32 4294967294, %s4589_s15  }
  0x13   : > { %5890 = sst [smem:[#allocation17_spill]] %s4585_s14  ;;  %p117_p0 = scmp.ne.s32.totalorder %s4569_s10, %s4565_s9 }
  0x14   : > { %5891 = sst [smem:[#allocation18_spill]] %s4589_s15  ;;  %p118_p1 = scmp.eq.s32.totalorder %s4589_s15, 0 }
  0x15   : > { %p123_p2 = scmp.ne.s32.totalorder %s4565_s9, %s4561_s30  ;;  %p5861_p3 = scmp.eq.s32.totalorder %s4708_s16, 0 }
  0x16   : > { %p4718_p4 = por %p118_p1, %p117_p0  ;;  %p250_p5 = scmp.ne.s32.totalorder %s4557_s29, %s4553_s28 }
  0x17   : > { %p4726_p6 = por %p5861_p3, %p123_p2  ;;  %p251_p7 = scmp.eq.s32.totalorder %s4708_s16, 3 }
  0x18   : > { %p256_p8 = scmp.ne.s32.totalorder %s4553_s28, %s4549_s27  ;;  %p257_p9 = scmp.eq.s32.totalorder %s3302_s17, 3 }
  0x19   : > { %s5893_s21 = scalar_select %p4726_p6, 1, 0 }
  0x1a   : > { %p4733_p10 = por %p251_p7, %p250_p5  ;;  %p3303_p11 = scmp.ge.s32.totalorder %s4589_s15, 1 }
  0x1b   : > { %p4738_p12 = por %p257_p9, %p256_p8  ;;  %p264_p13 = scmp.lt.s32.totalorder %s4589_s15, 5 }
  0x1c   : > { %s5894_s22 = scalar_select %p4733_p10, 1, 0 }
  0x1d   : > { %s5896_s23 = scalar_select %p4738_p12, 1, 0 }
  0x1e   : > { %5895 = sst [smem:[#allocation19_spill]] %s5894_s22  ;;  %p4743_p0 = pnand %p3303_p11, %p264_p13 }
  0x1f   : > { %5897 = sst [smem:[#allocation20_spill]] %s5896_s23  ;;  %s4591_s25 = smov [#allocation2]  }
  0x20   : > { %s5898_s24 = scalar_select %p4743_p0, 1, 0 }
  0x21   : > { %s276_s26 = sshll.u32 %s4591_s25, 4  ;;  %p3879_p1 = pneg %p4743_p0  ;;  %s277_s26 = int_to_ptr.vmem [resolvable:$true] %s276_s26 }
  0x22   : > { %p3902_p2 = scmp.lt.s32.totalorder %s4589_s15, 4  ;;  %s5901_s1 = sld [smem:[#allocation26_spill]] }
  0x23   : > { %p4752_p5 = pnand %p3879_p1, %p5861_p3 }
  0x24   : > { %p4758_p7 = pnand %p3902_p2, %p4718_p4 }
  0x25   : > { %s5899_s30 = scalar_select %p4752_p5, 1, 0 }
  0x26   : > { %s5900_s17 = scalar_select %p4758_p7, 1, 0 }
  0x27   : > { %p5873_p9 = pneg %p4752_p5 }
  0x28   : > { %s4313_s25 = scalar_lea.hbm %s5901_s1, 320 }
  0x29   : > { %p4314_p8 = scmp.ne.s32.totalorder %s5901_s1, %s4313_s25  ;;  %p4320_p4 = scmp.lt.u32.totalorder %s4313_s25, %s5901_s1 }
  0x2b   : > { %p4316_p11 = pnand %p5873_p9, %p4314_p8 }
  0x2d   : > { %p4317_p13 = pneg %p4316_p11 }
  0x2f   : > { %p4322_p1 = pnand %p4320_p4, %p4317_p13 }
  0x31   : > { %4325 = shalt.err (!%p4322_p1)
}
  0x32   : > { %s4326_s22 = scalar_lea.vmem %s277_s26, 320  ;;  %p4334_p10 = scmp.lt.s32.totalorder %s277_s26, %s277_s26 }
  0x33   : > { %p4327_p2 = scmp.ne.s32.totalorder %s277_s26, %s4326_s22  ;;  %p4335_p6 = scmp.lt.s32.totalorder %s4326_s22, %s4326_s22 }
  0x35   : > { %p4329_p3 = pnand %p4327_p2, %p5873_p9  ;;  %p4336_p0 = por %p4335_p6, %p4334_p10 }
  0x37   : > { %p4330_p12 = pneg %p4329_p3 }
  0x39   : > { %p4337_p7 = pnand %p4336_p0, %p4330_p12 }
  0x3b   : > { %4340 = shalt.err (!%p4337_p7)
}
  0x3c   : > { %s5866_s27 = smov 64   ;;  %s5867_s8 = smov 4  }
  0x3d   : > { %3882 = dma.hbm_to_vmem [thread:$0]  (!%p4752_p5), %s5901_s1, 320, %s277_s26, [#allocation3], %s5866_s27, %s5866_s27, %s5867_s8  }
  0x3e   : > { %s32_s22 = sadd.s32 1, %s4581_s13  ;;  %s35_s23 = sadd.s32 1, %s4585_s14 }
  0x3f   : > { %p33_p3 = scmp.ge.s32.totalorder %s32_s22, 2  ;;  %s312_s25 = sand.u32 1, %s4589_s15  }
  0x40   : > { %s5870_s20 = sand.u32 1, %s4569_s10   ;;  %s3860_s18 = smul.u32 3072, %s4581_s13 }
  0x41   : > { %s5951_s22 = smov (%p33_p3, %s32_s22), 0  ;;  %s5953_s23 = smov (!%p33_p3, %s35_s23), %s4585_s14 }
  0x42   : > { %5902 = sst [smem:[#allocation21_spill]] %s5951_s22  ;;  %s107_s7 = ssub.s32 %s4581_s13, %s5951_s22 }
  0x43   : > { %s3859_s4 = smul.u32 192, %s5870_s20  ;;  %p37_p6 = scmp.ge.s32.totalorder %s5953_s23, 2 }
  0x44   : > { %p108_p10 = scmp.eq.s32.totalorder %s107_s7, 0  ;;  %s5904_s26 = sadd.s32 1, %s4569_s10 }
  0x45   : > { %s5955_s23 = smov (%p37_p6, %s5953_s23), 0  ;;  %s5906_s3 = sld [smem:[#allocation27_spill]] }
  0x46   : > { %5903 = sst [smem:[#allocation22_spill]] %s5955_s23  ;;  %s237_s27 = ssub.s32 %s4585_s14, %s5955_s23 }
  0x47   : > { %s4804_s19 = scalar_select %p108_p10, %s4569_s10, %s5904_s26  }
  0x48   : > { %p238_p12 = scmp.eq.s32.totalorder %s237_s27, 0  ;;  %s316_s20 = scalar_lea.vmem [#allocation7], %s3859_s4 }
  0x49   : > { %5905 = sst [smem:[#allocation23_spill]] %s4804_s19  ;;  %s323_s7 = sshll.u32 %s316_s20, 4  ;;  %s4813_s7 = int_to_ptr.vmem [resolvable:$true] %s323_s7 }
  0x4a   : > { %s5907_s22 = sadd.s32 1, %s4557_s29  ;;  %s4820_s26 = scalar_lea.sflag [#allocation3], %s312_s25 }
  0x4b   : > { %s4811_s15 = scalar_lea.hbm %s5906_s3, %s3860_s18  ;;  %p5909_p7 = scmp.ne.s32.totalorder %s5900_s17, 0 }
  0x4c   : > { %s4818_s0 = scalar_select %p238_p12, %s4557_s29, %s5907_s22  }
  0x4d   : > { %s4341_s23 = scalar_lea.hbm %s4811_s15, 3072  ;;  %p4826_p8 = pneg %p5909_p7 }
  0x4e   : > { %5908 = sst [smem:[#allocation24_spill]] %s4818_s0  ;;  %p4342_p0 = scmp.ne.s32.totalorder %s4811_s15, %s4341_s23 }
  0x4f   : > { %s5910_s1 = scalar_select %p4826_p8, 1, 0 }
  0x50   : > { %p4344_p11 = pnand %p4826_p8, %p4342_p0  ;;  %s4346_s8 = scalar_lea.hbm %s5906_s3, 6144 }
  0x51   : > { %p4347_p4 = scmp.lt.u32.totalorder %s4811_s15, %s5906_s3  ;;  %p4348_p1 = scmp.lt.u32.totalorder %s4346_s8, %s4341_s23 }
  0x52   : > { %p4345_p13 = pneg %p4344_p11  ;;  %p4350_p3 = scmp.lt.u32.totalorder %s4341_s23, %s4811_s15 }
  0x53   : > { %p4349_p2 = por %p4348_p1, %p4347_p4 }
  0x55   : > { %p4351_p6 = por %p4350_p3, %p4349_p2 }
  0x57   : > { %p4352_p10 = pnand %p4351_p6, %p4345_p13 }
  0x59   : > { %4355 = shalt.err (!%p4352_p10)
}
  0x5a   : > { %s4356_s25 = scalar_lea.vmem %s4813_s7, 3072  ;;  %s4594_s18 = smov [#allocation7]  }
  0x5b   : > { %p4357_p12 = scmp.ne.s32.totalorder %s4813_s7, %s4356_s25  ;;  %s4361_s4 = sshll.u32 %s4594_s18, 4  ;;  %s4362_s4 = int_to_ptr.vmem [resolvable:$false] %s4361_s4 }
  0x5c   : > { %s4363_s27 = scalar_lea.vmem %s4362_s4, 6144  ;;  %p4364_p9 = scmp.lt.s32.totalorder %s4813_s7, %s4362_s4 }
  0x5d   : > { %p4359_p0 = pnand %p4357_p12, %p4826_p8  ;;  %p4365_p5 = scmp.lt.s32.totalorder %s4363_s27, %s4356_s25 }
  0x5f   : > { %p4360_p11 = pneg %p4359_p0  ;;  %p4366_p4 = por %p4365_p5, %p4364_p9 }
  0x61   : > { %p4367_p1 = pnand %p4366_p4, %p4360_p11 }
  0x63   : > { %4370 = shalt.err (!%p4367_p1)
}
  0x64   : > { %s4595_s23 = smov 192   ;;  %s4596_s8 = smov 12  }
  0x65   : > { %3889 = dma.hbm_to_vmem [thread:$0]  (!%p5909_p7), %s4811_s15, 3072, %s4813_s7, %s4820_s26, %s4595_s23, %s4595_s23, %s4596_s8  }
  0x66   : > { %s5911_s20 = sand.u32 1, %s4569_s10   ;;  %s3434_s25 = sshll.u32 %s4581_s13, 11 }
  0x67   : > { %s4852_s22 = sshll.u32 %s5911_s20, 7  ;;  %s5912_s5 = sld [smem:[#allocation29_spill]] }
  0x68   : > { %s345_s3 = scalar_lea.vmem [#allocation8], %s4852_s22 }
  0x69   : > { %s352_s14 = sshll.u32 %s345_s3, 4  ;;  %s4863_s14 = int_to_ptr.vmem [resolvable:$true] %s352_s14 }
  0x6d   : > { %s4860_s27 = scalar_lea.hbm %s5912_s5, %s3434_s25  ;;  %s4376_s8 = scalar_lea.hbm %s5912_s5, 4096 }
  0x6e   : > { %s4371_s15 = scalar_lea.hbm %s4860_s27, 2048  ;;  %p4377_p2 = scmp.lt.u32.totalorder %s4860_s27, %s5912_s5 }
  0x6f   : > { %p4372_p5 = scmp.ne.s32.totalorder %s4860_s27, %s4371_s15  ;;  %p4378_p3 = scmp.lt.u32.totalorder %s4376_s8, %s4371_s15 }
  0x70   : > { %p4380_p10 = scmp.lt.u32.totalorder %s4371_s15, %s4860_s27 }
  0x71   : > { %p4374_p9 = pnand %p4372_p5, %p4826_p8  ;;  %p4379_p6 = por %p4378_p3, %p4377_p2 }
  0x73   : > { %p4375_p13 = pneg %p4374_p9  ;;  %p4381_p12 = por %p4380_p10, %p4379_p6 }
  0x75   : > { %p4382_p0 = pnand %p4381_p12, %p4375_p13 }
  0x77   : > { %4385 = shalt.err (!%p4382_p0)
}
  0x78   : > { %s4386_s3 = scalar_lea.vmem %s4863_s14, 2048  ;;  %s4597_s4 = smov [#allocation8]  }
  0x79   : > { %p4387_p11 = scmp.ne.s32.totalorder %s4863_s14, %s4386_s3  ;;  %s4391_s7 = sshll.u32 %s4597_s4, 4  ;;  %s4392_s7 = int_to_ptr.vmem [resolvable:$false] %s4391_s7 }
  0x7a   : > { %s4393_s23 = scalar_lea.vmem %s4392_s7, 4096  ;;  %p4394_p5 = scmp.lt.s32.totalorder %s4863_s14, %s4392_s7 }
  0x7b   : > { %p4389_p4 = pnand %p4387_p11, %p4826_p8  ;;  %p4395_p9 = scmp.lt.s32.totalorder %s4393_s23, %s4386_s3 }
  0x7d   : > { %p4390_p1 = pneg %p4389_p4  ;;  %p4396_p2 = por %p4395_p9, %p4394_p5 }
  0x7f   : > { %p4397_p3 = pnand %p4396_p2, %p4390_p1 }
  0x81   : > { %4400 = shalt.err (!%p4397_p3)
}
  0x82   : > { %s4598_s15 = smov 128   ;;  %s4599_s8 = smov 8  }
  0x83   : > { %3892 = dma.hbm_to_vmem [thread:$0]  (!%p5909_p7), %s4860_s27, 2048, %s4863_s14, %s4820_s26, %s4598_s15, %s4598_s15, %s4599_s8  }
  0x84   : > { %s4600_s20 = smov [#allocation5]   ;;  %s4892_s3 = scalar_lea.hbm %s5853_s6, %s3434_s25 }
  0x85   : > { %s289_s18 = sshll.u32 %s4600_s20, 4  ;;  %s4401_s19 = scalar_lea.hbm %s5849_s2, 1024  ;;  %s290_s18 = int_to_ptr.vmem [resolvable:$true] %s289_s18 }
  0x86   : > { %p4402_p13 = scmp.ne.s32.totalorder %s5849_s2, %s4401_s19  ;;  %p5913_p6 = scmp.ne.s32.totalorder %s5899_s30, 0 }
  0x87   : > { %p4408_p11 = scmp.lt.u32.totalorder %s4401_s19, %s5849_s2 }
  0x88   : > { %p5914_p10 = pneg %p5913_p6 }
  0x8a   : > { %p4404_p12 = pnand %p4402_p13, %p5914_p10 }
  0x8c   : > { %p4405_p0 = pneg %p4404_p12 }
  0x8e   : > { %p4410_p4 = pnand %p4408_p11, %p4405_p0 }
  0x90   : > { %4413 = shalt.err (!%p4410_p4)
}
  0x91   : > { %s4414_s25 = scalar_lea.vmem %s290_s18, 1024  ;;  %p5915_p5 = pmov %p5914_p10 }
  0x92   : > { %p4415_p1 = scmp.ne.s32.totalorder %s290_s18, %s4414_s25  ;;  %p4422_p3 = scmp.lt.s32.totalorder %s290_s18, %s290_s18 }
  0x93   : > { %p4423_p7 = scmp.lt.s32.totalorder %s4414_s25, %s4414_s25 }
  0x94   : > { %p4417_p9 = pnand %p4415_p1, %p5915_p5 }
  0x95   : > { %p4424_p8 = por %p4423_p7, %p4422_p3 }
  0x96   : > { %p4418_p2 = pneg %p4417_p9 }
  0x98   : > { %p4425_p10 = pnand %p4424_p8, %p4418_p2 }
  0x9a   : > { %4428 = shalt.err (!%p4425_p10)
}
  0x9b   : > { %3885 = dma.hbm_to_vmem [thread:$0]  (!%p5913_p6), %s5849_s2, 1024, %s290_s18, [#allocation6], %s4598_s15, %s4598_s15, %s4599_s8  }
  0x9c   : > { %s366_s10 = scalar_lea.vmem [#allocation9], %s4852_s22  ;;  %s4429_s20 = scalar_lea.hbm %s4892_s3, 2048 }
  0x9d   : > { %s373_s19 = sshll.u32 %s366_s10, 4  ;;  %p4430_p7 = scmp.ne.s32.totalorder %s4892_s3, %s4429_s20  ;;  %s4915_s19 = int_to_ptr.vmem [resolvable:$true] %s373_s19 }
  0x9e   : > { %p5916_p8 = scmp.ne.s32.totalorder %s5910_s1, 0  ;;  %s4434_s7 = scalar_lea.hbm %s5853_s6, 4096 }
  0x9f   : > { %p4435_p0 = scmp.lt.u32.totalorder %s4892_s3, %s5853_s6  ;;  %p4436_p11 = scmp.lt.u32.totalorder %s4434_s7, %s4429_s20 }
  0xa0   : > { %p4432_p13 = pnand %p4430_p7, %p5916_p8  ;;  %p4438_p6 = scmp.lt.u32.totalorder %s4429_s20, %s4892_s3 }
  0xa1   : > { %p4437_p4 = por %p4436_p11, %p4435_p0 }
  0xa2   : > { %p4433_p12 = pneg %p4432_p13 }
  0xa3   : > { %p4439_p1 = por %p4438_p6, %p4437_p4 }
  0xa5   : > { %p4440_p5 = pnand %p4439_p1, %p4433_p12 }
  0xa7   : > { %4443 = shalt.err (!%p4440_p5)
}
  0xa8   : > { %s4444_s22 = scalar_lea.vmem %s4915_s19, 2048  ;;  %s4601_s15 = smov [#allocation9]  }
  0xa9   : > { %p4445_p9 = scmp.ne.s32.totalorder %s4915_s19, %s4444_s22  ;;  %s4449_s8 = sshll.u32 %s4601_s15, 4  ;;  %s4450_s8 = int_to_ptr.vmem [resolvable:$false] %s4449_s8 }
  0xaa   : > { %s4451_s18 = scalar_lea.vmem %s4450_s8, 4096  ;;  %p4452_p10 = scmp.lt.s32.totalorder %s4915_s19, %s4450_s8 }
  0xab   : > { %p4447_p2 = pnand %p4445_p9, %p5916_p8  ;;  %p4453_p7 = scmp.lt.s32.totalorder %s4451_s18, %s4444_s22 }
  0xad   : > { %p4448_p3 = pneg %p4447_p2  ;;  %p4454_p13 = por %p4453_p7, %p4452_p10 }
  0xaf   : > { %p4455_p0 = pnand %p4454_p13, %p4448_p3 }
  0xb1   : > { %4458 = shalt.err (!%p4455_p0)
}
  0xb2   : > { %p5917_p12 = scmp.ne.s32.totalorder %s5900_s17, 0  ;;  %s5918_s27 = smov 4  }
  0xb3   : > { %s5919_s25 = smov 64   ;;  %p5920_p8 = scmp.ne.s32.totalorder %s5898_s24, 0 }
  0xb4   : > { %3895 = dma.hbm_to_vmem [thread:$0]  (!%p5917_p12), %s4892_s3, 2048, %s4915_s19, %s4820_s26, %s5919_s25, %s5919_s25, %s5918_s27  }
  0xb5   : > { %393 = sbr.rel (%p5920_p8) target bundleno = 3134 (0xc3e), region = 52  ;;  %p5921_p11 = scmp.eq.s32.totalorder (!%p5920_p8), %s4708_s16, 0 }
  0xbc   : > { %4532 = dma.done.wait (%p5921_p11), [#allocation3], 320   ;;  %p5922_p4 = pmov %p5921_p11 }
  0xbe   : > { %4534 = vsyncadd (%p5922_p4), [#allocation3], 4294966976  ;;  %p5923_p6 = pmov %p5922_p4 }
  0xbf   : > { %p5924_p1 = pmov %p5922_p4 }
  0xc0   : > { %4536 = dma.done.wait (%p5923_p6), [#allocation6], 1024  }
  0xc1   : > { %4538 = vsyncadd (%p5924_p1), [#allocation6], 4294966272  ;;  %s403_s17 = sand.u32 1, %s4708_s16   ;;  %s405_s26 = sand.u32 1, %s4565_s9  }
  0xc2   : > { %s3861_s1 = smul.u32 192, %s405_s26  ;;  %s404_s24 = scalar_lea.sflag [#allocation3], %s403_s17 }
  0xc3   : > { %p5925_p5 = scmp.ne.s32.totalorder %s5893_s21, 0 }
  0xc4   : > { %s4954_s3 = scalar_lea.vmem [#allocation7], %s3861_s1 }
  0xc5   : > { %4540 = dma.done.wait (%p5925_p5), %s404_s24, 7168  }
  0xc6   : > { %4542 = vsyncadd (%p5925_p5), %s404_s24, 4294960128  ;;  %s3317_s0 = sshll.u32 %s405_s26, 7  ;;  %s480_s5 = sand.u32 1, %s4553_s28  }
  0xc7   : > { %s3319_s10 = sshll.u32 %s480_s5, 6  ;;  %s3320_s16 = sshll.u32 %s4577_s12, 3 }
  0xc8   : > { %p484_p9 = scmp.lt.s32.totalorder %s3320_s16, 15  ;;  %p489_p2 = scmp.lt.s32.totalorder %s4573_s11, 1 }
  0xc9   : > { %s5926_s7 = sld [smem:[#allocation25_spill]]  ;;  %s5927_s15 = sld [smem:[#allocation28_spill]] }
  0xca   : > { %s5957_s16 = smov (!%p484_p9, %s3320_s16), 15  ;;  %s5928_s17 = sld [smem:[#allocation30_spill]] }
  0xcb   : > { %s490_s19 = scalar_select %p489_p2, %s4573_s11, 1 }
  0xcc   : > { %s3321_s20 = sshll.u32 %s5957_s16, 3  ;;  %s4981_s1 = scalar_lea.vmem [#allocation8], %s3317_s0 }
  0xcd   : > { %s3436_s23 = sshll.u32 %s490_s19, 6  ;;  %s3862_s18 = smul.u32 24, %s490_s19 }
  0xce   : > { %s4983_s24 = scalar_lea.vmem [#allocation9], %s3317_s0  ;;  %s4985_s16 = scalar_lea.vmem [#allocation10], %s3319_s10 }
  0xcf   : > { %s4969_s21 = scalar_lea.vmem %s5926_s7, %s3321_s20  ;;  %s4974_s8 = scalar_lea.vmem %s5927_s15, %s3436_s23 }
  0xd0   : > { %s4979_s26 = scalar_lea.vmem %s5928_s17, %s3862_s18  ;;  %p3325_p3 = scmp.ne.s32.totalorder %s4573_s11, 0 }
  0xd1   : > { %v4008_v0 = vld [vmem:[#allocation2] sm:$0xff] (!%p3325_p3)   ;;  %v4009_v1 = vld [vmem:[#allocation2 + $0x8] sm:$0xff] (!%p3325_p3)   ;;  %vm537_vm0 = vcmask (!%p3325_p3), 326656   ;;  %v4010_v6 = vld [vmem:[#allocation2 + $0x10] ss:$0 sps:$4 sm:$0xff] (!%p3325_p3)   ;;  %vm550_vm1 = vcmask (!%p3325_p3), 1043456  }
  0xd2   : > { %504 = sbr.rel (%p3325_p3) target bundleno = 440 (0x1b8), region = 76  ;;  %3597 = vmatprep.subr.bf16.mxu0 (!%p3325_p3), %v4008_v0  ;;  %3835 = vmatprep.subr.bf16.mxu1 (!%p3325_p3), %v4008_v0  ;;  %v505_v2 = vld [vmem:[%s4969_s21] sm:$0xff] (!%p3325_p3)  ;;  %v506_v3 = vld [vmem:[%s4969_s21 + $0x8] sm:$0xff] (!%p3325_p3)  ;;  %v507_v9 = vld [vmem:[%s4969_s21 + $0x10] sm:$0xff] (!%p3325_p3)  ;;  %v552_v13 = vsel (!%p3325_p3), %vm550_vm1, %v4010_v6, 0 }
  0xd3   : > { %3598 = vmatpush3.bf16.msra.mxu0 (!%p3325_p3), %v4008_v0  ;;  %3838 = vmatpush3.bf16.msra.mxu1 (!%p3325_p3), %v4008_v0  ;;  %v509_v4 = vld [vmem:[%s4969_s21 + $0x20] sm:$0xff] (!%p3325_p3)  ;;  %v510_v5 = vld [vmem:[%s4969_s21 + $0x28] sm:$0xff] (!%p3325_p3)  ;;  %v513_v7 = vpack.c.bf16 (!%p3325_p3), %v506_v3, %v505_v2  ;;  %v508_v10 = vld [vmem:[%s4969_s21 + $0x18] sm:$0xff] (!%p3325_p3) }
  0xd4   : > { %3599 = vmatprep.subr.bf16.mxu0 (!%p3325_p3), %v4009_v1  ;;  %3836 = vmatprep.subr.bf16.mxu1 (!%p3325_p3), %v4009_v1  ;;  %v515_v8 = vpack.c.bf16 (!%p3325_p3), %v510_v5, %v509_v4  ;;  %v511_v11 = vld [vmem:[%s4969_s21 + $0x30] sm:$0xff] (!%p3325_p3)  ;;  %v512_v12 = vld [vmem:[%s4969_s21 + $0x38] sm:$0xff] (!%p3325_p3)  ;;  %v514_v14 = vpack.c.bf16 (!%p3325_p3), %v508_v10, %v507_v9  ;;  %v621_v16 = vld [vmem:[#allocation5 + $0x10] sm:$0xff] (!%p3325_p3) }
  0xd5   : > { %3603 = vmatprep.mubr.msk.bf16.mxu0 (!%p3325_p3), %vm537_vm0, %v513_v7  ;;  %v516_v15 = vpack.c.bf16 (!%p3325_p3), %v512_v12, %v511_v11  ;;  %v625_v17 = vld [vmem:[#allocation5 + $0x30] sm:$0xff] (!%p3325_p3)  ;;  %v619_v18 = vld [vmem:[#allocation5] sm:$0xff] (!%p3325_p3)  ;;  %v622_v22 = vld [vmem:[#allocation5 + $0x18] sm:$0xff] (!%p3325_p3) }
  0xd6   : > { %3607 = vmatprep.mubr.msk.bf16.mxu1 (!%p3325_p3), %vm537_vm0, %v515_v8  ;;  %v623_v19 = vld [vmem:[#allocation5 + $0x20] sm:$0xff] (!%p3325_p3)  ;;  %v626_v23 = vld [vmem:[#allocation5 + $0x38] sm:$0xff] (!%p3325_p3)  ;;  %v620_v28 = vld [vmem:[#allocation5 + $0x8] sm:$0xff] (!%p3325_p3) }
  0xd7   : > { %3600 = vmatpush3.bf16.msra.mxu0 (!%p3325_p3), %v4009_v1  ;;  %3839 = vmatpush3.bf16.msra.mxu1 (!%p3325_p3), %v4009_v1  ;;  %v624_v29 = vld [vmem:[#allocation5 + $0x28] sm:$0xff] (!%p3325_p3) }
  0xd8   : > { %3841 = vmatprep.subr.msk.bf16.mxu0 (!%p3325_p3), %vm550_vm1, %v4010_v6  ;;  %3842 = vmatprep.subr.msk.bf16.mxu1 (!%p3325_p3), %vm550_vm1, %v4010_v6 }
  0xdb   : > { %3602 = vmatpush3.bf16.msra.mxu0 %v552_v13  ;;  %3840 = vmatpush3.bf16.msra.mxu1 %v552_v13 }
  0xde   : > { %3604 = vmatmul.mubr.msk.bf16.vlgmr.msra.gmra.mrb[0].mxu0 %vm537_vm0, %v514_v14  ;;  %3608 = vmatmul.mubr.msk.bf16.vlgmr.msra.gmra.mrb[0].mxu1 %vm537_vm0, %v516_v15 }
 0x1b1   : > { %v3605_v20 = vpop.f32.mrb[0].mxu0  ;;  %v3609_v21 = vpop.f32.mrb[0].mxu1 }
 0x1b2   : > { %v629_v24 = vadd.f32 %v3605_v20, %v621_v16  ;;  %v633_v25 = vadd.f32 %v3609_v21, %v625_v17  ;;  %v588_v26 = vpop.f32.mrb[1].mxu0  ;;  %v604_v27 = vpop.f32.mrb[1].mxu1 }
 0x1b3   : > { %v627_v30 = vadd.f32 %v619_v18, %v588_v26  ;;  %v631_v31 = vadd.f32 %v623_v19, %v604_v27  ;;  %v3606_v32 = vpop.f32.mrb[2].mxu0  ;;  %v3610_v33 = vpop.f32.mrb[2].mxu1 }
 0x1b4   : > { %637 = vst [vmem:[%s4985_s16 + $0x10] sm:$0xff] %v629_v24  ;;  %641 = vst [vmem:[%s4985_s16 + $0x30] sm:$0xff] %v633_v25  ;;  %v630_v34 = vadd.f32 %v3606_v32, %v622_v22  ;;  %v634_v35 = vadd.f32 %v3610_v33, %v626_v23  ;;  %v591_v36 = vpop.f32.mrb[3].mxu0  ;;  %v607_v37 = vpop.f32.mrb[3].mxu1 }
 0x1b5   : > { %635 = vst [vmem:[%s4985_s16] sm:$0xff] %v627_v30  ;;  %639 = vst [vmem:[%s4985_s16 + $0x20] sm:$0xff] %v631_v31  ;;  %v628_v38 = vadd.f32 %v620_v28, %v591_v36  ;;  %v632_v39 = vadd.f32 %v624_v29, %v607_v37 }
 0x1b6   : > { %638 = vst [vmem:[%s4985_s16 + $0x18] sm:$0xff] %v630_v34  ;;  %642 = vst [vmem:[%s4985_s16 + $0x38] sm:$0xff] %v634_v35 }
 0x1b7   : > { %636 = vst [vmem:[%s4985_s16 + $0x8] sm:$0xff] %v628_v38  ;;  %640 = vst [vmem:[%s4985_s16 + $0x28] sm:$0xff] %v632_v39 }
 0x1b8 PF: > { %v4071_v40 = vld [vmem:[%s4954_s3 + $0x4] ss:$12 sps:$4 sm:$0xff]   ;;  %v4072_v41 = vld [vmem:[%s4954_s3 + $0x1c] ss:$12 sps:$4 sm:$0xff]   ;;  %v4074_v42 = vld [vmem:[%s4954_s3] ss:$12 sps:$4 sm:$0xff]   ;;  %v674_v12 = vlaneseq }
 0x1b9   : > { %3635 = vmatprep.subr.bf16.mxu1 %v4071_v40  ;;  %v4073_v43 = vld [vmem:[%s4954_s3 + $0x34] ss:$12 sps:$4 sm:$0xff]   ;;  %3611 = vmatprep.subr.bf16.mxu0 %v4074_v42  ;;  %v4076_v44 = vld [vmem:[%s4954_s3 + $0x18] ss:$12 sps:$4 sm:$0xff]   ;;  %v4078_v45 = vld [vmem:[%s4954_s3 + $0x30] ss:$12 sps:$4 sm:$0xff]  }
 0x1ba   : > { %3636 = vmatpush3.bf16.msra.mxu1 %v4071_v40  ;;  %3612 = vmatpush3.bf16.msra.mxu0 %v4074_v42  ;;  %v4075_v46 = vld [vmem:[%s4954_s3 + $0x4c] ss:$12 sps:$4 sm:$0xff]   ;;  %v4080_v47 = vld [vmem:[%s4954_s3 + $0x48] ss:$12 sps:$4 sm:$0xff]   ;;  %v4077_v48 = vld [vmem:[%s4954_s3 + $0x64] ss:$12 sps:$4 sm:$0xff]  }
 0x1bb   : > { %3637 = vmatprep.subr.bf16.mxu1 %v4072_v41  ;;  %3613 = vmatprep.subr.bf16.mxu0 %v4076_v44  ;;  %v4082_v52 = vld [vmem:[%s4954_s3 + $0x60] ss:$12 sps:$4 sm:$0xff]   ;;  %v4079_v53 = vld [vmem:[%s4954_s3 + $0x7c] ss:$12 sps:$4 sm:$0xff]   ;;  %v4084_v54 = vld [vmem:[%s4954_s3 + $0x78] ss:$12 sps:$4 sm:$0xff]  }
 0x1bc   : > { %v643_v49 = vld [vmem:[%s4985_s16] sm:$0xff]  ;;  %v4085_v56 = vld [vmem:[%s4954_s3 + $0x90] ss:$12 sps:$4 sm:$0xff]   ;;  %v4083_v57 = vld [vmem:[%s4954_s3 + $0xac] ss:$12 sps:$4 sm:$0xff]   ;;  %v5040_v13 = vshrl.u32 %v674_v12, 7 }
 0x1bd   : > { %v4081_v55 = vld [vmem:[%s4954_s3 + $0x94] ss:$12 sps:$4 sm:$0xff]   ;;  %v646_v59 = vld [vmem:[%s4985_s16 + $0x18] sm:$0xff]  ;;  %v655_v16 = vld [vmem:[%s4979_s26] sm:$0xff]  ;;  %vm1165_vm2 = vcmask 261120   ;;  %s4602_s11 = smov 96  }
 0x1be   : > { %3638 = vmatpush3.bf16.msra.mxu1 %v4072_v41  ;;  %3614 = vmatpush3.bf16.msra.mxu0 %v4076_v44  ;;  %v644_v50 = vld [vmem:[%s4985_s16 + $0x8] sm:$0xff]  ;;  %v645_v58 = vld [vmem:[%s4985_s16 + $0x10] sm:$0xff]  ;;  %v647_v60 = vld [vmem:[%s4985_s16 + $0x20] sm:$0xff]  ;;  %v5043_v14 = vsub.s32 0, %v5040_v13  ;;  %s4604_s0 = smov 32   ;;  %vm1522_vm3 = vcmask 523264  }
 0x1bf   : > { %3639 = vmatprep.subr.bf16.mxu1 %v4073_v43  ;;  %3615 = vmatprep.subr.bf16.mxu0 %v4078_v45  ;;  %v651_v51 = vpack.c.bf16 %v644_v50, %v643_v49  ;;  %v648_v61 = vld [vmem:[%s4985_s16 + $0x28] sm:$0xff]  ;;  %v652_v0 = vpack.c.bf16 %v646_v59, %v645_v58  ;;  %v649_v2 = vld [vmem:[%s4985_s16 + $0x30] sm:$0xff]  ;;  %v650_v3 = vld [vmem:[%s4985_s16 + $0x38] sm:$0xff]  ;;  %vm2311_vm4 = vcmask 785408   ;;  %s5929_s10 = sld [smem:[#allocation19_spill]]  ;;  %s3437_s19 = sshll.u32 %s4577_s12, 10 }
 0x1c0   : > { %v4086_v62 = vld [vmem:[%s4954_s3 + $0xa8] ss:$12 sps:$4 sm:$0xff]   ;;  %v653_v1 = vpack.c.bf16 %v648_v61, %v647_v60  ;;  %v4088_v4 = vld [vmem:[%s4954_s3 + $0x20] ss:$12 sps:$4 sm:$0xff]   ;;  %v4089_v5 = vld [vmem:[%s4954_s3 + $0x38] ss:$12 sps:$4 sm:$0xff]   ;;  %v654_v6 = vpack.c.bf16 %v650_v3, %v649_v2  ;;  %v677_v20 = vrot.slane %v655_v16, %v5043_v14 }
 0x1c1   : > { %3651 = vmatprep.mubr.bf16.mxu1 %v651_v51  ;;  %3627 = vmatprep.mubr.bf16.mxu0 %v651_v51  ;;  %v4087_v63 = vld [vmem:[%s4954_s3 + $0x8] ss:$12 sps:$4 sm:$0xff]   ;;  %v4090_v7 = vld [vmem:[%s4954_s3 + $0x50] ss:$12 sps:$4 sm:$0xff]   ;;  %v4092_v9 = vld [vmem:[%s4954_s3 + $0x80] ss:$12 sps:$4 sm:$0xff]  }
 0x1c2   : > { %3640 = vmatpush3.bf16.msra.mxu1 %v4073_v43  ;;  %3616 = vmatpush3.bf16.msra.mxu0 %v4078_v45  ;;  %v4091_v8 = vld [vmem:[%s4954_s3 + $0x68] ss:$12 sps:$4 sm:$0xff]   ;;  %v4093_v10 = vld [vmem:[%s4954_s3 + $0x98] ss:$12 sps:$4 sm:$0xff]   ;;  %v4094_v11 = vld [vmem:[%s4954_s3 + $0xb0] ss:$12 sps:$4 sm:$0xff]  }
 0x1c3   : > { %3641 = vmatprep.subr.bf16.mxu1 %v4075_v46  ;;  %3617 = vmatprep.subr.bf16.mxu0 %v4080_v47  ;;  %v656_v15 = vld [vmem:[%s4979_s26 + $0x8] sm:$0xff]  ;;  %s4603_s3 = smov 64   ;;  %s3122_s20 = sshll.u32 %s4985_s16, 4  ;;  %s5780_s20 = int_to_ptr.vmem [resolvable:$true] %s3122_s20 }
 0x1c4   : > { %v814_v17 = vrot.slane %v656_v15, %v5043_v14  ;;  %s5930_s7 = sld [smem:[#allocation31_spill]]  ;;  %s5786_s23 = scalar_lea.sflag [#allocation4], %s480_s5 }
 0x1c5   : > { %s4459_s12 = scalar_lea.vmem %s5780_s20, 1024  ;;  %p5931_p7 = scmp.ne.s32.totalorder %s5929_s10, 0 }
 0x1c6   : > { %3642 = vmatpush3.bf16.msra.mxu1 %v4075_v46  ;;  %3618 = vmatpush3.bf16.msra.mxu0 %v4080_v47  ;;  %p4460_p10 = scmp.ne.s32.totalorder %s5780_s20, %s4459_s12  ;;  %s4606_s14 = smov [#allocation10]  }
 0x1c7   : > { %3643 = vmatprep.subr.bf16.mxu1 %v4077_v48  ;;  %3619 = vmatprep.subr.bf16.mxu0 %v4082_v52  ;;  %s4463_s22 = sshll.u32 %s4606_s14, 4  ;;  %s4464_s22 = int_to_ptr.vmem [resolvable:$false] %s4463_s22 }
 0x1c8   : > { %p4461_p13 = pnand %p4460_p10, %p5931_p7  ;;  %s4465_s15 = scalar_lea.vmem %s4464_s22, 2048 }
 0x1c9   : > { %p4466_p12 = scmp.lt.s32.totalorder %s5780_s20, %s4464_s22  ;;  %p4467_p8 = scmp.lt.s32.totalorder %s4465_s15, %s4459_s12 }
 0x1ca   : > { %3644 = vmatpush3.bf16.msra.mxu1 %v4077_v48  ;;  %3620 = vmatpush3.bf16.msra.mxu0 %v4082_v52  ;;  %s5778_s21 = scalar_lea.hbm %s5930_s7, %s3437_s19  ;;  %p4462_p0 = pneg %p4461_p13 }
 0x1cb   : > { %3645 = vmatprep.subr.bf16.mxu1 %v4079_v53  ;;  %3621 = vmatprep.subr.bf16.mxu0 %v4084_v54  ;;  %p4468_p11 = por %p4467_p8, %p4466_p12 }
 0x1cd   : > { %p4469_p4 = pnand %p4468_p11, %p4462_p0 }
 0x1ce   : > { %3646 = vmatpush3.bf16.msra.mxu1 %v4079_v53  ;;  %3622 = vmatpush3.bf16.msra.mxu0 %v4084_v54 }
 0x1cf   : > { %3647 = vmatprep.subr.bf16.mxu1 %v4081_v55  ;;  %3623 = vmatprep.subr.bf16.mxu0 %v4085_v56 }
 0x1d2   : > { %3648 = vmatpush3.bf16.msra.mxu1 %v4081_v55  ;;  %3624 = vmatpush3.bf16.msra.mxu0 %v4085_v56 }
 0x1d3   : > { %3649 = vmatprep.subr.bf16.mxu1 %v4083_v57  ;;  %3625 = vmatprep.subr.bf16.mxu0 %v4086_v62 }
 0x1d6   : > { %3650 = vmatpush3.bf16.msra.mxu1 %v4083_v57  ;;  %3626 = vmatpush3.bf16.msra.mxu0 %v4086_v62 }
 0x1d7   : > { %3659 = vmatprep.subr.bf16.mxu0 %v4087_v63 }
 0x1d9   : > { %3652 = vmatmul.mubr.bf16.vlgmr.msra.gmra.mrb[0].mxu1 %v652_v0  ;;  %3628 = vmatmul.mubr.bf16.vlgmr.msra.gmra.mrb[0].mxu0 %v652_v0 }
 0x1da   : > { %3655 = vmatprep.mubr.bf16.mxu1 %v653_v1  ;;  %3631 = vmatprep.mubr.bf16.mxu0 %v653_v1 }
 0x1db   : > { %3660 = vmatpush3.bf16.msra.mxu0 %v4087_v63  ;;  %v657_v63 = vld [vmem:[%s4979_s26 + $0x10] sm:$0xff] }
 0x1dc   : > { %3661 = vmatprep.subr.bf16.mxu0 %v4088_v4 }
 0x1df   : > { %3662 = vmatpush3.bf16.msra.mxu0 %v4088_v4 }
 0x1e0   : > { %3663 = vmatprep.subr.bf16.mxu0 %v4089_v5 }
 0x1e1   : > { %3656 = vmatmul.mubr.bf16.gmra.mrb[4].mxu1 %v654_v6  ;;  %3632 = vmatmul.mubr.bf16.gmra.mrb[4].mxu0 %v654_v6 }
 0x1e2   : > { %3675 = vmatprep.mubr.bf16.mxu0 %v651_v51 }
 0x1e3   : > { %3664 = vmatpush3.bf16.msra.mxu0 %v4089_v5 }
 0x1e4   : > { %3665 = vmatprep.subr.bf16.mxu0 %v4090_v7 }
 0x1e7   : > { %3666 = vmatpush3.bf16.msra.mxu0 %v4090_v7 }
 0x1e8   : > { %3667 = vmatprep.subr.bf16.mxu0 %v4091_v8 }
 0x1eb   : > { %3668 = vmatpush3.bf16.msra.mxu0 %v4091_v8 }
 0x1ec   : > { %3669 = vmatprep.subr.bf16.mxu0 %v4092_v9 }
 0x1ef   : > { %3670 = vmatpush3.bf16.msra.mxu0 %v4092_v9 }
 0x1f0   : > { %3671 = vmatprep.subr.bf16.mxu0 %v4093_v10 }
 0x1f3   : > { %3672 = vmatpush3.bf16.msra.mxu0 %v4093_v10 }
 0x1f4   : > { %3673 = vmatprep.subr.bf16.mxu0 %v4094_v11 }
 0x1f7   : > { %3674 = vmatpush3.bf16.msra.mxu0 %v4094_v11 }
 0x1fa   : > { %3676 = vmatmul.mubr.bf16.vlgmr.msra.gmra.mrb[8].mxu0 %v652_v0 }
 0x1fb   : > { %3679 = vmatprep.mubr.bf16.mxu0 %v653_v1  ;;  %v951_v1 = vrot.slane %v657_v63, %v5043_v14 }
 0x202   : > { %3680 = vmatmul.mubr.bf16.gmra.mrb[12].mxu0 %v654_v6 }
 0x2ac   : > { %v3653_v18 = vpop.f32.mrb[0].mxu1  ;;  %v3629_v25 = vpop.f32.mrb[0].mxu0 }
 0x2ad   : > { %v897_v19 = vpop.f32.mrb[1].mxu1  ;;  %v906_v22 = vadd.f32 %v3653_v18, %v814_v17  ;;  %v769_v28 = vadd.f32 %v3629_v25, %v677_v20  ;;  %v760_v29 = vpop.f32.mrb[1].mxu0 }
 0x2ae   : > { %v3654_v21 = vpop.f32.mrb[2].mxu1  ;;  %v898_v26 = vadd.f32 %v897_v19, %v814_v17  ;;  %v761_v31 = vadd.f32 %v760_v29, %v677_v20  ;;  %v3630_v32 = vpop.f32.mrb[2].mxu0 }
 0x2af   : > { %v909_v23 = vadd.f32 %v3654_v21, %v814_v17  ;;  %v900_v24 = vpop.f32.mrb[3].mxu1  ;;  %v772_v34 = vadd.f32 %v3630_v32, %v677_v20  ;;  %v763_v35 = vpop.f32.mrb[3].mxu0 }
 0x2b0   : > { %v901_v27 = vadd.f32 %v900_v24, %v814_v17  ;;  %v764_v36 = vadd.f32 %v763_v35, %v677_v20 }
 0x2b1   : > { %v929_v30 = vpack.c.bf16 %v909_v23, %v906_v22  ;;  %v792_v39 = vpack.c.bf16 %v772_v34, %v769_v28 }
 0x2b2   : > { %v928_v33 = vpack.c.bf16 %v901_v27, %v898_v26  ;;  %v791_v41 = vpack.c.bf16 %v764_v36, %v761_v31 }
 0x2b3   : > { %v1182_v58 = vsel %vm1165_vm2, %v929_v30, 0 }
 0x2b4   : > { %v3657_v37 = vpop.f32.mrb[4].mxu1  ;;  %1101 = vrot.lane.b32.xlu0 %v928_v33, %s4602_s11  ;;  %3843 = vmatprep.subr.msk.bf16.mxu1 %vm1165_vm2, %v928_v33  ;;  %v1179_v38 = vsel %vm1165_vm2, %v928_v33, 0  ;;  %v3633_v46 = vpop.f32.mrb[4].mxu0 }
 0x2b5   : > { %v913_v40 = vpop.f32.mrb[5].mxu1  ;;  %3684 = vmatpush3.bf16.xpose.msra.mxu1 %v1179_v38  ;;  %v922_v43 = vadd.f32 %v3657_v37, %v814_v17  ;;  %3691 = vmatprep.mubr.msk.bf16.mxu1 %vm1165_vm2, %v791_v41  ;;  %v785_v49 = vadd.f32 %v3633_v46, %v677_v20  ;;  %v776_v50 = vpop.f32.mrb[5].mxu0 }
 0x2b6   : > { %v3658_v42 = vpop.f32.mrb[6].mxu1  ;;  %3844 = vmatprep.subr.msk.bf16.mxu1 %vm1165_vm2, %v929_v30  ;;  %v914_v47 = vadd.f32 %v913_v40, %v814_v17  ;;  %v777_v52 = vadd.f32 %v776_v50, %v677_v20  ;;  %v3634_v53 = vpop.f32.mrb[6].mxu0 }
 0x2b7   : > { %v925_v44 = vadd.f32 %v3658_v42, %v814_v17  ;;  %v916_v45 = vpop.f32.mrb[7].mxu1  ;;  %v788_v55 = vadd.f32 %v3634_v53, %v677_v20  ;;  %v779_v56 = vpop.f32.mrb[7].mxu0 }
 0x2b8   : > { %v917_v48 = vadd.f32 %v916_v45, %v814_v17  ;;  %1103 = vrot.lane.b32.xlu0 %v929_v30, %s4602_s11  ;;  %v780_v57 = vadd.f32 %v779_v56, %v677_v20 }
 0x2b9   : > { %v931_v51 = vpack.c.bf16 %v925_v44, %v922_v43  ;;  %v794_v59 = vpack.c.bf16 %v788_v55, %v785_v49 }
 0x2ba   : > { %v930_v54 = vpack.c.bf16 %v917_v48, %v914_v47  ;;  %v793_v60 = vpack.c.bf16 %v780_v57, %v777_v52 }
 0x2bb   : > { %v1188_v62 = vsel %vm1165_vm2, %v931_v51, 0 }
 0x2bc   : > { %1105 = vrot.lane.b32.xlu1 %v930_v54, %s4602_s11  ;;  %1107 = vrot.lane.b32.xlu0 %v931_v51, %s4602_s11  ;;  %v1185_v61 = vsel %vm1165_vm2, %v930_v54, 0 }
 0x2bd   : > { %3686 = vmatpush3.bf16.xpose.msra.mxu1 %v1182_v58 }
 0x2be   : > { %3845 = vmatprep.subr.msk.bf16.mxu1 %vm1165_vm2, %v930_v54 }
 0x2c0   : > { %1109 = vrot.lane.b32.xlu1 %v928_v33, %s4603_s3  ;;  %1073 = vrot.lane.b32.xlu0 %v791_v41, %s4602_s11 }
 0x2c4   : > { %1111 = vrot.lane.b32.xlu1 %v929_v30, %s4603_s3  ;;  %1113 = vrot.lane.b32.xlu0 %v930_v54, %s4603_s3 }
 0x2c5   : > { %3688 = vmatpush3.bf16.xpose.msra.mxu1 %v1185_v61 }
 0x2c6   : > { %3846 = vmatprep.subr.msk.bf16.mxu1 %vm1165_vm2, %v931_v51 }
 0x2c8   : > { %1075 = vrot.lane.b32.xlu1 %v792_v39, %s4602_s11  ;;  %1077 = vrot.lane.b32.xlu0 %v793_v60, %s4602_s11 }
 0x2cc   : > { %1117 = vrot.lane.b32.xlu1 %v928_v33, %s4604_s0  ;;  %1115 = vrot.lane.b32.xlu0 %v931_v51, %s4603_s3 }
 0x2cd   : > { %3690 = vmatpush3.bf16.xpose.msra.mxu1 %v1188_v62  ;;  %v3677_v0 = vpop.f32.mrb[8].mxu0 }
 0x2ce   : > { %v1034_v2 = vpop.f32.mrb[9].mxu0  ;;  %v1043_v4 = vadd.f32 %v3677_v0, %v951_v1 }
 0x2cf   : > { %v3678_v3 = vpop.f32.mrb[10].mxu0  ;;  %v1035_v5 = vadd.f32 %v1034_v2, %v951_v1 }
 0x2d0   : > { %1079 = vrot.lane.b32.xlu1 %v794_v59, %s4602_s11  ;;  %1081 = vrot.lane.b32.xlu0 %v791_v41, %s4603_s3  ;;  %v1046_v6 = vadd.f32 %v3678_v3, %v951_v1  ;;  %v1037_v7 = vpop.f32.mrb[11].mxu0 }
 0x2d1   : > { %v1038_v8 = vadd.f32 %v1037_v7, %v951_v1 }
 0x2d2   : > { %v5087_v10 = vpack.c.bf16 %v1046_v6, %v1043_v4 }
 0x2d3   : > { %v5089_v15 = vpack.c.bf16 %v1038_v8, %v1035_v5 }
 0x2d4   : > { %1119 = vrot.lane.b32.xlu1 %v929_v30, %s4604_s0  ;;  %1121 = vrot.lane.b32.xlu0 %v930_v54, %s4604_s0 }
 0x2d5   : > { %3692 = vmatmul.mubr.msk.bf16.vlgmr.msra.gmra.mrb[8].mxu1 %vm1165_vm2, %v792_v39  ;;  %v3681_v9 = vpop.f32.mrb[12].mxu0 }
 0x2d6   : > { %3695 = vmatprep.mubr.msk.bf16.mxu1 %vm1165_vm2, %v793_v60  ;;  %v1059_v11 = vadd.f32 %v3681_v9, %v951_v1  ;;  %v1050_v12 = vpop.f32.mrb[13].mxu0 }
 0x2d7   : > { %v1051_v16 = vadd.f32 %v1050_v12, %v951_v1  ;;  %v3682_v17 = vpop.f32.mrb[14].mxu0 }
 0x2d8   : > { %1083 = vrot.lane.b32.xlu1 %v792_v39, %s4603_s3  ;;  %1087 = vrot.lane.b32.xlu0 %v794_v59, %s4603_s3  ;;  %v1062_v14 = vadd.f32 %v3682_v17, %v951_v1  ;;  %v1053_v18 = vpop.f32.mrb[15].mxu0 }
 0x2d9   : > { %v1054_v19 = vadd.f32 %v1053_v18, %v951_v1 }
 0x2da   : > { %v5095_v20 = vpack.c.bf16 %v1062_v14, %v1059_v11 }
 0x2db   : > { %v5097_v21 = vpack.c.bf16 %v1054_v19, %v1051_v16 }
 0x2dc   : > { %1085 = vrot.lane.b32.xlu1 %v793_v60, %s4603_s3  ;;  %1089 = vrot.lane.b32.xlu0 %v791_v41, %s4604_s0 }
 0x2dd   : > { %3696 = vmatmul.mubr.msk.bf16.gmra.mrb[12].mxu1 %vm1165_vm2, %v794_v59 }
 0x2e0   : > { %1123 = vrot.lane.b32.xlu1 %v931_v51, %s4604_s0  ;;  %1093 = vrot.lane.b32.xlu0 %v793_v60, %s4604_s0 }
 0x2e4   : > { %1091 = vrot.lane.b32.xlu1 %v792_v39, %s4604_s0  ;;  %1143 = vrot.lane.b32.xlu0 %v5087_v10, %s4603_s3 }
 0x2e8   : > { %1095 = vrot.lane.b32.xlu1 %v794_v59, %s4604_s0  ;;  %1141 = vrot.lane.b32.xlu0 %v5089_v15, %s4603_s3 }
 0x2ec   : > { %1131 = vrot.lane.b32.xlu1 %v5087_v10, %s4602_s11  ;;  %1133 = vrot.lane.b32.xlu0 %v5097_v21, %s4602_s11 }
 0x2f0   : > { %1129 = vrot.lane.b32.xlu1 %v5089_v15, %s4602_s11 }
 0x2f4   : > { %1135 = vrot.lane.b32.xlu1 %v5095_v20, %s4602_s11 }
 0x2f8   : > { %1145 = vrot.lane.b32.xlu1 %v5097_v21, %s4603_s3 }
 0x326   : > { %v1102_v22 = vpop.permute.xlu0 %1101 }
 0x327   : > { %3847 = vmatprep.subr.msk.bf16.mxu0 %vm1165_vm2, %v1102_v22  ;;  %v1268_v23 = vsel %vm1165_vm2, %v1102_v22, 0 }
 0x328   : > { %3700 = vmatpush3.bf16.xpose.msra.mxu0 %v1268_v23 }
 0x32a   : > { %v1104_v24 = vpop.permute.xlu0 %1103 }
 0x32b   : > { %3848 = vmatprep.subr.msk.bf16.mxu0 %vm1165_vm2, %v1104_v24  ;;  %v1271_v27 = vsel %vm1165_vm2, %v1104_v24, 0 }
 0x32e   : > { %v1106_v25 = vpop.permute.xlu1 %1105  ;;  %v1108_v26 = vpop.permute.xlu0 %1107 }
 0x32f   : > { %v1274_v33 = vsel %vm1165_vm2, %v1106_v25, 0  ;;  %v1277_v39 = vsel %vm1165_vm2, %v1108_v26, 0 }
 0x330   : > { %3702 = vmatpush3.bf16.xpose.msra.mxu0 %v1271_v27 }
 0x331   : > { %3849 = vmatprep.subr.msk.bf16.mxu0 %vm1165_vm2, %v1106_v25 }
 0x332   : > { %v1110_v28 = vpop.permute.xlu1 %1109  ;;  %v1074_v29 = vpop.permute.xlu0 %1073 }
 0x333   : > { %3851 = vmatprep.subr.msk.bf16.mxu1 %vm1165_vm2, %v1110_v28  ;;  %v1357_v30 = vsel %vm1165_vm2, %v1110_v28, 0  ;;  %3707 = vmatprep.mubr.msk.bf16.mxu0 %vm1165_vm2, %v1074_v29 }
 0x334   : > { %3716 = vmatpush3.bf16.xpose.msra.mxu1 %v1357_v30 }
 0x336   : > { %v1112_v31 = vpop.permute.xlu1 %1111  ;;  %v1114_v32 = vpop.permute.xlu0 %1113 }
 0x337   : > { %3852 = vmatprep.subr.msk.bf16.mxu1 %vm1165_vm2, %v1112_v31  ;;  %v1360_v36 = vsel %vm1165_vm2, %v1112_v31, 0  ;;  %v1363_v42 = vsel %vm1165_vm2, %v1114_v32, 0 }
 0x338   : > { %3704 = vmatpush3.bf16.xpose.msra.mxu0 %v1274_v33 }
 0x339   : > { %3850 = vmatprep.subr.msk.bf16.mxu0 %vm1165_vm2, %v1108_v26 }
 0x33a   : > { %v1076_v34 = vpop.permute.xlu1 %1075  ;;  %v1078_v35 = vpop.permute.xlu0 %1077 }
 0x33c   : > { %3718 = vmatpush3.bf16.xpose.msra.mxu1 %v1360_v36 }
 0x33d   : > { %3853 = vmatprep.subr.msk.bf16.mxu1 %vm1165_vm2, %v1114_v32 }
 0x33e   : > { %v1118_v37 = vpop.permute.xlu1 %1117  ;;  %v1116_v38 = vpop.permute.xlu0 %1115 }
 0x33f   : > { %v1446_v45 = vsel %vm1165_vm2, %v1118_v37, 0  ;;  %v1366_v47 = vsel %vm1165_vm2, %v1116_v38, 0 }
 0x340   : > { %3706 = vmatpush3.bf16.xpose.msra.mxu0 %v1277_v39 }
 0x341   : > { %3855 = vmatprep.subr.msk.bf16.mxu0 %vm1165_vm2, %v1118_v37 }
 0x342   : > { %v1080_v40 = vpop.permute.xlu1 %1079  ;;  %v1082_v41 = vpop.permute.xlu0 %1081 }
 0x343   : > { %3723 = vmatprep.mubr.msk.bf16.mxu1 %vm1165_vm2, %v1082_v41 }
 0x344   : > { %3720 = vmatpush3.bf16.xpose.msra.mxu1 %v1363_v42 }
 0x345   : > { %3854 = vmatprep.subr.msk.bf16.mxu1 %vm1165_vm2, %v1116_v38 }
 0x346   : > { %v1120_v43 = vpop.permute.xlu1 %1119  ;;  %v1122_v44 = vpop.permute.xlu0 %1121 }
 0x347   : > { %3708 = vmatmul.mubr.msk.bf16.vlgmr.msra.gmra.mrb[16].mxu0 %vm1165_vm2, %v1076_v34  ;;  %v1449_v50 = vsel %vm1165_vm2, %v1120_v43, 0  ;;  %v1452_v52 = vsel %vm1165_vm2, %v1122_v44, 0 }
 0x348   : > { %3711 = vmatprep.mubr.msk.bf16.mxu0 %vm1165_vm2, %v1078_v35  ;;  %3732 = vmatpush3.bf16.xpose.msra.mxu0 %v1446_v45 }
 0x349   : > { %3856 = vmatprep.subr.msk.bf16.mxu0 %vm1165_vm2, %v1120_v43 }
 0x34a   : > { %v1088_v46 = vpop.permute.xlu0 %1087  ;;  %v1084_v48 = vpop.permute.xlu1 %1083 }
 0x34c   : > { %3722 = vmatpush3.bf16.xpose.msra.mxu1 %v1366_v47 }
 0x34d   : > { %3747 = vmatprep.subr.bf16.mxu1 %v5089_v15 }
 0x34e   : > { %v1090_v49 = vpop.permute.xlu0 %1089  ;;  %v1086_v51 = vpop.permute.xlu1 %1085 }
 0x34f   : > { %3712 = vmatmul.mubr.msk.bf16.gmra.mrb[20].mxu0 %vm1165_vm2, %v1080_v40 }
 0x350   : > { %3734 = vmatpush3.bf16.xpose.msra.mxu0 %v1449_v50  ;;  %3739 = vmatprep.mubr.msk.bf16.mxu0 %vm1165_vm2, %v1090_v49 }
 0x351   : > { %3857 = vmatprep.subr.msk.bf16.mxu0 %vm1165_vm2, %v1122_v44 }
 0x352   : > { %v1124_v53 = vpop.permute.xlu1 %1123  ;;  %v1094_v56 = vpop.permute.xlu0 %1093 }
 0x353   : > { %3724 = vmatmul.mubr.msk.bf16.vlgmr.msra.gmra.mrb[16].mxu1 %vm1165_vm2, %v1084_v48  ;;  %v1455_v54 = vsel %vm1165_vm2, %v1124_v53, 0 }
 0x354   : > { %3727 = vmatprep.mubr.msk.bf16.mxu1 %vm1165_vm2, %v1086_v51  ;;  %3748 = vmatpush3.bf16.msra.mxu1 %v5089_v15 }
 0x355   : > { %3749 = vmatprep.subr.bf16.mxu1 %v5087_v10 }
 0x356   : > { %v1092_v55 = vpop.permute.xlu1 %1091 }
 0x358   : > { %3736 = vmatpush3.bf16.xpose.msra.mxu0 %v1452_v52  ;;  %3750 = vmatpush3.bf16.msra.mxu1 %v5087_v10 }
 0x359   : > { %3858 = vmatprep.subr.msk.bf16.mxu0 %vm1165_vm2, %v1124_v53  ;;  %3751 = vmatprep.subr.bf16.mxu1 %v5097_v21 }
 0x35a   : > { %v1096_v57 = vpop.permute.xlu1 %1095 }
 0x35b   : > { %3728 = vmatmul.mubr.msk.bf16.gmra.mrb[20].mxu1 %vm1165_vm2, %v1088_v46 }
 0x35c   : > { %3752 = vmatpush3.bf16.msra.mxu1 %v5097_v21 }
 0x35d   : > { %3753 = vmatprep.subr.bf16.mxu1 %v5095_v20 }
 0x35e   : > { %v5155_v59 = vpop.permute.xlu1 %1131 }
 0x360   : > { %3738 = vmatpush3.bf16.xpose.msra.mxu0 %v1455_v54  ;;  %3754 = vmatpush3.bf16.msra.mxu1 %v5095_v20 }
 0x362   : > { %v5167_v1 = vpop.permute.xlu1 %1129 }
 0x363   : > { %3763 = vmatprep.subr.bf16.mxu1 %v5167_v1 }
 0x367   : > { %3740 = vmatmul.mubr.msk.bf16.vlgmr.msra.gmra.mrb[24].mxu0 %vm1165_vm2, %v1092_v55 }
 0x368   : > { %3743 = vmatprep.mubr.msk.bf16.mxu0 %vm1165_vm2, %v1094_v56 }
 0x36f   : > { %3744 = vmatmul.mubr.msk.bf16.gmra.mrb[28].mxu0 %vm1165_vm2, %v1096_v57 }
 0x3a8   : > { %v5153_v58 = vpop.f32.mrb[8].mxu1 }
 0x3a9   : > { %v5157_v60 = vpop.f32.mrb[9].mxu1  ;;  %v1529_v61 = vsel %vm1522_vm3, %v5153_v58, -inf }
 0x3aa   : > { %1530 = vmax.xlane.f32.xlu0 %v1529_v61  ;;  %v5161_v62 = vpop.f32.mrb[10].mxu1  ;;  %v1523_v2 = vsel %vm1522_vm3, %v5157_v60, -inf }
 0x3ab   : > { %v5163_v63 = vpop.f32.mrb[11].mxu1  ;;  %v1532_v5 = vsel %vm1522_vm3, %v5161_v62, -inf }
 0x3ac   : > { %v1526_v0 = vsel %vm1522_vm3, %v5163_v63, -inf }
 0x3ad   : > { %1527 = vmax.xlane.f32.xlu1 %v1526_v0 }
 0x3ae   : > { %1524 = vmax.xlane.f32.xlu0 %v1523_v2 }
 0x3b0   : > { %v5172_v3 = vpop.f32.mrb[12].mxu1 }
 0x3b1   : > { %v5174_v4 = vpop.f32.mrb[13].mxu1  ;;  %v1541_v6 = vsel %vm1522_vm3, %v5172_v3, -inf }
 0x3b2   : > { %1533 = vmax.xlane.f32.xlu0 %v1532_v5  ;;  %1542 = vmax.xlane.f32.xlu1 %v1541_v6  ;;  %v5180_v7 = vpop.f32.mrb[14].mxu1  ;;  %v1535_v9 = vsel %vm1522_vm3, %v5174_v4, -inf  ;;  %v5278_v5 = vpop.permute.xlu0 %1143 }
 0x3b3   : > { %v5182_v8 = vpop.f32.mrb[15].mxu1  ;;  %v1544_v11 = vsel %vm1522_vm3, %v5180_v7, -inf }
 0x3b4   : > { %v1538_v12 = vsel %vm1522_vm3, %v5182_v8, -inf }
 0x3b6   : > { %1536 = vmax.xlane.f32.xlu1 %v1535_v9  ;;  %1545 = vmax.xlane.f32.xlu0 %v1544_v11  ;;  %v5280_v6 = vpop.permute.xlu0 %1141  ;;  %v5286_v11 = vpop.permute.xlu1 %1135 }
 0x3ba   : > { %1539 = vmax.xlane.f32.xlu0 %v1538_v12  ;;  %v5284_v9 = vpop.permute.xlu0 %1133 }
 0x41a   : > { %v5190_v16 = vpop.f32.mrb[16].mxu0 }
 0x41b   : > { %v5192_v17 = vpop.f32.mrb[17].mxu0  ;;  %v1553_v14 = vsel %vm1522_vm3, %v5190_v16, -inf }
 0x41c   : > { %v5196_v18 = vpop.f32.mrb[18].mxu0  ;;  %1554 = vmax.xlane.f32.xlu1 %v1553_v14  ;;  %v1547_v33 = vsel %vm1522_vm3, %v5192_v17, -inf  ;;  %v5290_v14 = vpop.permute.xlu1 %1145 }
 0x41d   : > { %v5198_v19 = vpop.f32.mrb[19].mxu0  ;;  %v1556_v22 = vsel %vm1522_vm3, %v5196_v18, -inf }
 0x41e   : > { %1557 = vmax.xlane.f32.xlu0 %v1556_v22  ;;  %v1550_v34 = vsel %vm1522_vm3, %v5198_v19, -inf }
 0x422   : > { %v5202_v23 = vpop.f32.mrb[20].mxu0 }
 0x423   : > { %v5204_v24 = vpop.f32.mrb[21].mxu0  ;;  %v1565_v41 = vsel %vm1522_vm3, %v5202_v23, -inf }
 0x424   : > { %v5206_v25 = vpop.f32.mrb[22].mxu0  ;;  %v1559_v47 = vsel %vm1522_vm3, %v5204_v24, -inf }
 0x425   : > { %v5208_v26 = vpop.f32.mrb[23].mxu0  ;;  %v1568_v42 = vsel %vm1522_vm3, %v5206_v25, -inf }
 0x426   : > { %v5210_v27 = vpop.f32.mrb[16].mxu1  ;;  %v1562_v50 = vsel %vm1522_vm3, %v5208_v26, -inf }
 0x427   : > { %v5212_v28 = vpop.f32.mrb[17].mxu1  ;;  %v1577_v29 = vsel %vm1522_vm3, %v5210_v27, -inf }
 0x428   : > { %1578 = vmax.xlane.f32.xlu1 %v1577_v29  ;;  %v5216_v30 = vpop.f32.mrb[18].mxu1  ;;  %v1571_v37 = vsel %vm1522_vm3, %v5212_v28, -inf }
 0x429   : > { %v5218_v31 = vpop.f32.mrb[19].mxu1  ;;  %v1580_v32 = vsel %vm1522_vm3, %v5216_v30, -inf }
 0x42a   : > { %1581 = vmax.xlane.f32.xlu0 %v1580_v32  ;;  %v1574_v40 = vsel %vm1522_vm3, %v5218_v31, -inf }
 0x42c   : > { %1548 = vmax.xlane.f32.xlu1 %v1547_v33 }
 0x42e   : > { %1551 = vmax.xlane.f32.xlu0 %v1550_v34  ;;  %v5226_v35 = vpop.f32.mrb[20].mxu1 }
 0x42f   : > { %v5228_v36 = vpop.f32.mrb[21].mxu1  ;;  %v1589_v43 = vsel %vm1522_vm3, %v5226_v35, -inf }
 0x430   : > { %1572 = vmax.xlane.f32.xlu1 %v1571_v37  ;;  %v5232_v38 = vpop.f32.mrb[22].mxu1  ;;  %v1583_v51 = vsel %vm1522_vm3, %v5228_v36, -inf }
 0x431   : > { %v5234_v39 = vpop.f32.mrb[23].mxu1  ;;  %v1592_v44 = vsel %vm1522_vm3, %v5232_v38, -inf }
 0x432   : > { %1575 = vmax.xlane.f32.xlu0 %v1574_v40  ;;  %v1586_v52 = vsel %vm1522_vm3, %v5234_v39, -inf }
 0x434   : > { %1566 = vmax.xlane.f32.xlu1 %v1565_v41 }
 0x436   : > { %1569 = vmax.xlane.f32.xlu0 %v1568_v42 }
 0x437   : > { %v1531_v12 = vpop.xlane.xlu0 %1530 }
 0x438   : > { %1590 = vmax.xlane.f32.xlu1 %v1589_v43  ;;  %v1621_v33 = vsub.f32 %v5153_v58, %v1531_v12 }
 0x43a   : > { %v5246_v45 = vpop.f32.mrb[24].mxu0  ;;  %1593 = vmax.xlane.f32.xlu0 %v1592_v44  ;;  %v1528_v29 = vpop.xlane.xlu1 %1527  ;;  %v1655_v40 = vmul.f32 1.442695, %v1621_v33 }
 0x43b   : > { %v5248_v46 = vpop.f32.mrb[25].mxu0  ;;  %v1601_v54 = vsel %vm1522_vm3, %v5246_v45, -inf  ;;  %v1525_v22 = vpop.xlane.xlu0 %1524  ;;  %v1620_v43 = vsub.f32 %v5163_v63, %v1528_v29 }
 0x43c   : > { %v5252_v48 = vpop.f32.mrb[26].mxu0  ;;  %1560 = vmax.xlane.f32.xlu1 %v1559_v47  ;;  %v1595_v0 = vsel %vm1522_vm3, %v5248_v46, -inf  ;;  %v1619_v41 = vsub.f32 %v5157_v60, %v1525_v22  ;;  %4143 = vpow2.f32 %v1655_v40 }
 0x43d   : > { %v5254_v49 = vpop.f32.mrb[27].mxu0  ;;  %v1604_v57 = vsel %vm1522_vm3, %v5252_v48, -inf }
 0x43e   : > { %1563 = vmax.xlane.f32.xlu0 %v1562_v50  ;;  %v1598_v2 = vsel %vm1522_vm3, %v5254_v49, -inf }
 0x43f   : > { %v1534_v32 = vpop.xlane.xlu0 %1533  ;;  %v1543_v37 = vpop.xlane.xlu1 %1542 }
 0x440   : > { %1584 = vmax.xlane.f32.xlu1 %v1583_v51  ;;  %v1622_v34 = vsub.f32 %v5161_v62, %v1534_v32  ;;  %v1625_v47 = vsub.f32 %v5172_v3, %v1543_v37  ;;  %v1653_v51 = vmul.f32 1.442695, %v1620_v43 }
 0x442   : > { %v5262_v53 = vpop.f32.mrb[28].mxu0  ;;  %1587 = vmax.xlane.f32.xlu0 %v1586_v52  ;;  %v1657_v44 = vmul.f32 1.442695, %v1622_v34  ;;  %v1663_v62 = vmul.f32 1.442695, %v1625_v47 }
 0x443   : > { %v5266_v55 = vpop.f32.mrb[29].mxu0  ;;  %v1546_v42 = vpop.xlane.xlu0 %1545  ;;  %v1613_v60 = vsel %vm1522_vm3, %v5262_v53, -inf }
 0x444   : > { %1602 = vmax.xlane.f32.xlu1 %v1601_v54  ;;  %v5268_v56 = vpop.f32.mrb[30].mxu0  ;;  %v1537_v50 = vpop.xlane.xlu1 %1536  ;;  %4145 = vpow2.f32 %v1657_v44  ;;  %v1626_v52 = vsub.f32 %v5180_v7, %v1546_v42  ;;  %v1607_v7 = vsel %vm1522_vm3, %v5266_v55, -inf }
 0x445   : > { %v5272_v61 = vpop.f32.mrb[31].mxu0  ;;  %v1623_v54 = vsub.f32 %v5174_v4, %v1537_v50  ;;  %v1616_v3 = vsel %vm1522_vm3, %v5268_v56, -inf }
 0x446   : > { %1605 = vmax.xlane.f32.xlu0 %v1604_v57  ;;  %v1665_v63 = vmul.f32 1.442695, %v1626_v52  ;;  %v1610_v12 = vsel %vm1522_vm3, %v5272_v61, -inf }
 0x447   : > { %v1540_v58 = vpop.xlane.xlu0 %1539 }
 0x448   : > { %1596 = vmax.xlane.f32.xlu1 %v1595_v0  ;;  %v1624_v57 = vsub.f32 %v5182_v8, %v1540_v58  ;;  %v1659_v0 = vmul.f32 1.442695, %v1623_v54 }
 0x44a   : > { %1599 = vmax.xlane.f32.xlu0 %v1598_v2  ;;  %v5306_v2 = vpop.eup %4143  ;;  %v1661_v4 = vmul.f32 1.442695, %v1624_v57 }
 0x44b   : > { %v1721_v8 = vsel %vm1522_vm3, %v5306_v2, 0.0 }
 0x44e   : > { %v5310_v22 = vpop.eup %4145 }
 0x44f   : > { %v1724_v32 = vsel %vm1522_vm3, %v5310_v22, 0.0 }
 0x459   : > { %1147 = vrot.lane.b32.xlu1 %v5095_v20, %s4603_s3 }
 0x460   : > { %1153 = vrot.lane.b32.xlu0 %v5089_v15, %s4604_s0  ;;  %v1651_v15 = vmul.f32 1.442695, %v1619_v41 }
 0x462   : > { %4147 = vpow2.f32 %v1651_v15 }
 0x463   : > { %4149 = vpow2.f32 %v1653_v51 }
 0x464   : > { %4151 = vpow2.f32 %v1663_v62 }
 0x465   : > { %4153 = vpow2.f32 %v1665_v63 }
 0x466   : > { %4155 = vpow2.f32 %v1659_v0 }
 0x467   : > { %4157 = vpow2.f32 %v1661_v4 }
 0x46c   : > { %v5314_v29 = vpop.eup %4147 }
 0x46d   : > { %v5318_v33 = vpop.eup %4149  ;;  %v1715_v34 = vsel %vm1522_vm3, %v5314_v29, 0.0 }
 0x46e   : > { %v5322_v37 = vpop.eup %4151  ;;  %v1718_v40 = vsel %vm1522_vm3, %v5318_v33, 0.0 }
 0x46f   : > { %v5326_v41 = vpop.eup %4153  ;;  %v1733_v42 = vsel %vm1522_vm3, %v5322_v37, 0.0 }
 0x470   : > { %v5330_v43 = vpop.eup %4155  ;;  %v1736_v44 = vsel %vm1522_vm3, %v5326_v41, 0.0 }
 0x471   : > { %v5334_v15 = vpop.eup %4157  ;;  %v1727_v47 = vsel %vm1522_vm3, %v5330_v43, 0.0 }
 0x472   : > { %v1730_v50 = vsel %vm1522_vm3, %v5334_v15, 0.0 }
 0x47d   : > { %1614 = vmax.xlane.f32.xlu1 %v1613_v60 }
 0x47f   : > { %1617 = vmax.xlane.f32.xlu0 %v1616_v3 }
 0x481   : > { %1608 = vmax.xlane.f32.xlu1 %v1607_v7 }
 0x483   : > { %1611 = vmax.xlane.f32.xlu0 %v1610_v12 }
 0x485   : > { %1722 = vadd.xlane.f32.xlu1 %v1721_v8 }
 0x487   : > { %1725 = vadd.xlane.f32.xlu0 %v1724_v32 }
 0x489   : > { %1716 = vadd.xlane.f32.xlu1 %v1715_v34 }
 0x48b   : > { %1719 = vadd.xlane.f32.xlu0 %v1718_v40 }
 0x48d   : > { %1734 = vadd.xlane.f32.xlu1 %v1733_v42 }
 0x48f   : > { %1737 = vadd.xlane.f32.xlu0 %v1736_v44 }
 0x491   : > { %1728 = vadd.xlane.f32.xlu1 %v1727_v47 }
 0x493   : > { %1731 = vadd.xlane.f32.xlu0 %v1730_v50 }
 0x4a9   : > { %v1555_v51 = vpop.xlane.xlu1 %1554 }
 0x4aa   : > { %v1629_v52 = vsub.f32 %v5190_v16, %v1555_v51 }
 0x4ab   : > { %v1558_v62 = vpop.xlane.xlu0 %1557 }
 0x4ac   : > { %v1671_v58 = vmul.f32 1.442695, %v1629_v52  ;;  %v1630_v16 = vsub.f32 %v5196_v18, %v1558_v62 }
 0x4ae   : > { %4159 = vpow2.f32 %v1671_v58  ;;  %v1673_v40 = vmul.f32 1.442695, %v1630_v16 }
 0x4b5   : > { %v1579_v54 = vpop.xlane.xlu1 %1578 }
 0x4b6   : > { %v1637_v60 = vsub.f32 %v5210_v27, %v1579_v54 }
 0x4b7   : > { %v1582_v63 = vpop.xlane.xlu0 %1581 }
 0x4b8   : > { %v5342_v57 = vpop.eup %4159  ;;  %v1687_v3 = vmul.f32 1.442695, %v1637_v60  ;;  %v1638_v42 = vsub.f32 %v5216_v30, %v1582_v63 }
 0x4b9   : > { %v1549_v0 = vpop.xlane.xlu1 %1548  ;;  %v1745_v7 = vsel %vm1522_vm3, %v5342_v57, 0.0 }
 0x4ba   : > { %4161 = vpow2.f32 %v1687_v3  ;;  %v1627_v4 = vsub.f32 %v5192_v17, %v1549_v0  ;;  %1746 = vadd.xlane.f32.xlu1 %v1745_v7  ;;  %v1689_v52 = vmul.f32 1.442695, %v1638_v42 }
 0x4bb   : > { %v1552_v12 = vpop.xlane.xlu0 %1551 }
 0x4bc   : > { %v1667_v8 = vmul.f32 1.442695, %v1627_v4  ;;  %v1628_v18 = vsub.f32 %v5198_v19, %v1552_v12 }
 0x4bd   : > { %v1573_v32 = vpop.xlane.xlu1 %1572 }
 0x4be   : > { %4163 = vpow2.f32 %v1667_v8  ;;  %v1635_v27 = vsub.f32 %v5212_v28, %v1573_v32 }
 0x4bf   : > { %v1576_v34 = vpop.xlane.xlu0 %1575 }
 0x4c0   : > { %v1683_v44 = vmul.f32 1.442695, %v1635_v27  ;;  %v1636_v63 = vsub.f32 %v5218_v31, %v1576_v34 }
 0x4c1   : > { %v1567_v47 = vpop.xlane.xlu1 %1566 }
 0x4c2   : > { %4165 = vpow2.f32 %v1683_v44  ;;  %v1633_v50 = vsub.f32 %v5202_v23, %v1567_v47  ;;  %v1669_v23 = vmul.f32 1.442695, %v1628_v18  ;;  %v1685_v16 = vmul.f32 1.442695, %v1636_v63 }
 0x4c3   : > { %v1570_v51 = vpop.xlane.xlu0 %1569  ;;  %4167 = vpow2.f32 %v1673_v40 }
 0x4c4   : > { %v5351_v17 = vpop.eup %4161  ;;  %v1679_v58 = vmul.f32 1.442695, %v1633_v50  ;;  %v1634_v4 = vsub.f32 %v5206_v25, %v1570_v51 }
 0x4c5   : > { %v1591_v62 = vpop.xlane.xlu1 %1590  ;;  %v1769_v28 = vsel %vm1522_vm3, %v5351_v17, 0.0 }
 0x4c6   : > { %4169 = vpow2.f32 %v1679_v58  ;;  %v1641_v30 = vsub.f32 %v5226_v35, %v1591_v62  ;;  %1770 = vadd.xlane.f32.xlu0 %v1769_v28  ;;  %v1681_v40 = vmul.f32 1.442695, %v1634_v4 }
 0x4c7   : > { %v1594_v54 = vpop.xlane.xlu0 %1593  ;;  %4171 = vpow2.f32 %v1689_v52 }
 0x4c8   : > { %v5357_v60 = vpop.eup %4163  ;;  %v1695_v3 = vmul.f32 1.442695, %v1641_v30  ;;  %v1642_v8 = vsub.f32 %v5232_v38, %v1594_v54 }
 0x4c9   : > { %v1561_v0 = vpop.xlane.xlu1 %1560  ;;  %v1739_v19 = vsel %vm1522_vm3, %v5357_v60, 0.0 }
 0x4ca   : > { %4173 = vpow2.f32 %v1695_v3  ;;  %v1631_v7 = vsub.f32 %v5204_v24, %v1561_v0  ;;  %1740 = vadd.xlane.f32.xlu1 %v1739_v19  ;;  %v1697_v47 = vmul.f32 1.442695, %v1642_v8 }
 0x4cb   : > { %v1564_v35 = vpop.xlane.xlu0 %1563  ;;  %4175 = vpow2.f32 %v1669_v23 }
 0x4cc   : > { %v5364_v12 = vpop.eup %4165  ;;  %v1675_v32 = vmul.f32 1.442695, %v1631_v7  ;;  %v1632_v25 = vsub.f32 %v5208_v26, %v1564_v35 }
 0x4cd   : > { %v1585_v31 = vpop.xlane.xlu1 %1584  ;;  %v1763_v27 = vsel %vm1522_vm3, %v5364_v12, 0.0  ;;  %v5369_v34 = vpop.eup %4167 }
 0x4ce   : > { %4177 = vpow2.f32 %v1675_v32  ;;  %v1639_v24 = vsub.f32 %v5228_v36, %v1585_v31  ;;  %1764 = vadd.xlane.f32.xlu0 %v1763_v27  ;;  %v1748_v52 = vsel %vm1522_vm3, %v5369_v34, 0.0  ;;  %v1677_v26 = vmul.f32 1.442695, %v1632_v25 }
 0x4cf   : > { %v1588_v42 = vpop.xlane.xlu0 %1587  ;;  %4179 = vpow2.f32 %v1685_v16 }
 0x4d0   : > { %v5373_v44 = vpop.eup %4169  ;;  %v1691_v38 = vmul.f32 1.442695, %v1639_v24  ;;  %v1640_v58 = vsub.f32 %v5234_v39, %v1588_v42 }
 0x4d1   : > { %v1603_v50 = vpop.xlane.xlu1 %1602  ;;  %v1757_v51 = vsel %vm1522_vm3, %v5373_v44, 0.0  ;;  %v5379_v18 = vpop.eup %4171 }
 0x4d2   : > { %4181 = vpow2.f32 %v1691_v38  ;;  %v1645_v36 = vsub.f32 %v5246_v45, %v1603_v50  ;;  %1758 = vadd.xlane.f32.xlu1 %v1757_v51  ;;  %1749 = vadd.xlane.f32.xlu0 %v1748_v52  ;;  %v1772_v63 = vsel %vm1522_vm3, %v5379_v18, 0.0  ;;  %v1693_v39 = vmul.f32 1.442695, %v1640_v58 }
 0x4d3   : > { %4183 = vpow2.f32 %v1681_v40  ;;  %v1606_v62 = vpop.xlane.xlu0 %1605 }
 0x4d4   : > { %v5383_v28 = vpop.eup %4173  ;;  %4185 = vpow2.f32 %v1697_v47  ;;  %v1703_v30 = vmul.f32 1.442695, %v1645_v36  ;;  %v1646_v0 = vsub.f32 %v5252_v48, %v1606_v62 }
 0x4d5   : > { %v1597_v54 = vpop.xlane.xlu1 %1596  ;;  %v1781_v23 = vsel %vm1522_vm3, %v5383_v28, 0.0  ;;  %v5389_v3 = vpop.eup %4175  ;;  %4187 = vpow2.f32 %v1677_v26 }
 0x4d6   : > { %v1643_v45 = vsub.f32 %v5248_v46, %v1597_v54  ;;  %1782 = vadd.xlane.f32.xlu1 %v1781_v23  ;;  %1773 = vadd.xlane.f32.xlu0 %v1772_v63  ;;  %4189 = vpow2.f32 %v1703_v30  ;;  %v1742_v8 = vsel %vm1522_vm3, %v5389_v3, 0.0  ;;  %v1705_v32 = vmul.f32 1.442695, %v1646_v0 }
 0x4d7   : > { %v1600_v19 = vpop.xlane.xlu0 %1599  ;;  %4191 = vpow2.f32 %v1693_v39 }
 0x4d8   : > { %v5393_v7 = vpop.eup %4177  ;;  %v1699_v4 = vmul.f32 1.442695, %v1643_v45  ;;  %v1644_v35 = vsub.f32 %v5254_v49, %v1600_v19 }
 0x4d9   : > { %v1751_v16 = vsel %vm1522_vm3, %v5393_v7, 0.0  ;;  %v5400_v46 = vpop.eup %4179  ;;  %v5440_v63 = vpop.permute.xlu1 %1147 }
 0x4da   : > { %1752 = vadd.xlane.f32.xlu1 %v1751_v16  ;;  %1743 = vadd.xlane.f32.xlu0 %v1742_v8  ;;  %4193 = vpow2.f32 %v1699_v4  ;;  %v1701_v31 = vmul.f32 1.442695, %v1644_v35  ;;  %v1766_v24 = vsel %vm1522_vm3, %v5400_v46, 0.0 }
 0x4db   : > { %4195 = vpow2.f32 %v1705_v32  ;;  %v5442_v45 = vpop.permute.xlu0 %1153 }
 0x4dc   : > { %v5402_v48 = vpop.eup %4181  ;;  %4197 = vpow2.f32 %v1701_v31 }
 0x4dd   : > { %v5404_v27 = vpop.eup %4183  ;;  %v1775_v49 = vsel %vm1522_vm3, %v5402_v48, 0.0 }
 0x4de   : > { %v5410_v40 = vpop.eup %4185  ;;  %1776 = vadd.xlane.f32.xlu1 %v1775_v49  ;;  %1767 = vadd.xlane.f32.xlu0 %v1766_v24  ;;  %v1760_v47 = vsel %vm1522_vm3, %v5404_v27, 0.0 }
 0x4df   : > { %v5412_v25 = vpop.eup %4187  ;;  %v1784_v42 = vsel %vm1522_vm3, %v5410_v40, 0.0 }
 0x4e0   : > { %v5418_v38 = vpop.eup %4189  ;;  %v1754_v52 = vsel %vm1522_vm3, %v5412_v25, 0.0 }
 0x4e1   : > { %v5420_v50 = vpop.eup %4191  ;;  %v1793_v51 = vsel %vm1522_vm3, %v5418_v38, 0.0 }
 0x4e2   : > { %1785 = vadd.xlane.f32.xlu1 %v1784_v42  ;;  %1761 = vadd.xlane.f32.xlu0 %v1760_v47  ;;  %v1778_v62 = vsel %vm1522_vm3, %v5420_v50, 0.0 }
 0x4e4   : > { %v5426_v36 = vpop.eup %4193 }
 0x4e5   : > { %v5428_v26 = vpop.eup %4195  ;;  %v1787_v58 = vsel %vm1522_vm3, %v5426_v36, 0.0 }
 0x4e6   : > { %1794 = vadd.xlane.f32.xlu1 %v1793_v51  ;;  %1755 = vadd.xlane.f32.xlu0 %v1754_v52  ;;  %v5434_v30 = vpop.eup %4197  ;;  %v1796_v54 = vsel %vm1522_vm3, %v5428_v26, 0.0 }
 0x4e7   : > { %v1790_v23 = vsel %vm1522_vm3, %v5434_v30, 0.0 }
 0x4ea   : > { %1788 = vadd.xlane.f32.xlu1 %v1787_v58  ;;  %1779 = vadd.xlane.f32.xlu0 %v1778_v62 }
 0x4ee   : > { %1797 = vadd.xlane.f32.xlu1 %v1796_v54  ;;  %1791 = vadd.xlane.f32.xlu0 %v1790_v23 }
 0x50a   : > { %v1615_v39 = vpop.xlane.xlu1 %1614 }
 0x50b   : > { %v1649_v0 = vsub.f32 %v5262_v53, %v1615_v39 }
 0x50c   : > { %v1618_v19 = vpop.xlane.xlu0 %1617 }
 0x50d   : > { %v1711_v4 = vmul.f32 1.442695, %v1649_v0  ;;  %v1650_v35 = vsub.f32 %v5268_v56, %v1618_v19 }
 0x50e   : > { %v1609_v16 = vpop.xlane.xlu1 %1608 }
 0x50f   : > { %4199 = vpow2.f32 %v1711_v4  ;;  %v1647_v8 = vsub.f32 %v5266_v55, %v1609_v16  ;;  %v1713_v32 = vmul.f32 1.442695, %v1650_v35 }
 0x510   : > { %v1612_v31 = vpop.xlane.xlu0 %1611 }
 0x511   : > { %v1707_v49 = vmul.f32 1.442695, %v1647_v8  ;;  %v1648_v24 = vsub.f32 %v5272_v61, %v1612_v31 }
 0x512   : > { %v1723_v42 = vpop.xlane.xlu1 %1722 }
 0x513   : > { %4201 = vpow2.f32 %v1707_v49  ;;  %v1709_v47 = vmul.f32 1.442695, %v1648_v24 }
 0x514   : > { %4203 = vpow2.f32 %v1713_v32  ;;  %v1726_v51 = vpop.xlane.xlu0 %1725 }
 0x515   : > { %4205 = vpow2.f32 %v1709_v47 }
 0x516   : > { %4207 = vrcp.f32 %v1726_v51  ;;  %v1717_v53 = vpop.xlane.xlu1 %1716 }
 0x517   : > { %4209 = vrcp.f32 %v1717_v53 }
 0x518   : > { %4211 = vrcp.f32 %v1723_v42  ;;  %v1720_v56 = vpop.xlane.xlu0 %1719 }
 0x519   : > { %v5448_v52 = vpop.eup %4199  ;;  %4213 = vrcp.f32 %v1720_v56 }
 0x51a   : > { %v1735_v55 = vpop.xlane.xlu1 %1734  ;;  %v1805_v58 = vsel %vm1522_vm3, %v5448_v52, 0.0 }
 0x51b   : > { %1806 = vadd.xlane.f32.xlu0 %v1805_v58 }
 0x51c   : > { %v1738_v61 = vpop.xlane.xlu0 %1737 }
 0x51d   : > { %v5452_v62 = vpop.eup %4201  ;;  %4215 = vrcp.f32 %v1738_v61 }
 0x51e   : > { %v5454_v54 = vpop.eup %4203  ;;  %v1729_v23 = vpop.xlane.xlu1 %1728  ;;  %v1799_v39 = vsel %vm1522_vm3, %v5452_v62, 0.0 }
 0x51f   : > { %v5458_v0 = vpop.eup %4205  ;;  %4217 = vrcp.f32 %v1729_v23  ;;  %1800 = vadd.xlane.f32.xlu1 %v1799_v39  ;;  %v1808_v32 = vsel %vm1522_vm3, %v5454_v54, 0.0 }
 0x520   : > { %v4208_v19 = vpop.eup %4207  ;;  %4219 = vrcp.f32 %v1735_v55  ;;  %v1732_v4 = vpop.xlane.xlu0 %1731  ;;  %v1802_v35 = vsel %vm1522_vm3, %v5458_v0, 0.0 }
 0x521   : > { %v4210_v16 = vpop.eup %4209  ;;  %4221 = vrcp.f32 %v1732_v4  ;;  %1803 = vadd.xlane.f32.xlu0 %v1802_v35  ;;  %v1846_v49 = vmul.f32 %v4208_v19, %v5310_v22 }
 0x522   : > { %v4212_v8 = vpop.eup %4211  ;;  %v1843_v24 = vmul.f32 %v4210_v16, %v5314_v29 }
 0x523   : > { %v4214_v31 = vpop.eup %4213  ;;  %1809 = vadd.xlane.f32.xlu1 %v1808_v32  ;;  %v1845_v47 = vmul.f32 %v4212_v8, %v5306_v2 }
 0x524   : > { %v1844_v42 = vmul.f32 %v4214_v31, %v5318_v33 }
 0x525   : > { %v1876_v53 = vpack.c.bf16 %v1846_v49, %v1845_v47 }
 0x526   : > { %v1875_v51 = vpack.c.bf16 %v1844_v42, %v1843_v24 }
 0x527   : > { %v4216_v56 = vpop.eup %4215 }
 0x528   : > { %3755 = vmatprep.mubr.msk.bf16.mxu1 %vm1522_vm3, %v1875_v51  ;;  %v1850_v22 = vmul.f32 %v4216_v56, %v5326_v41 }
 0x529   : > { %v4218_v55 = vpop.eup %4217  ;;  %3756 = vmatmul.mubr.msk.bf16.vlgmr.msra.gmra.mrb[24].mxu1 %vm1522_vm3, %v1876_v53 }
 0x52a   : > { %v4220_v58 = vpop.eup %4219  ;;  %3764 = vmatpush3.bf16.msra.mxu1 %v5167_v1  ;;  %v1847_v29 = vmul.f32 %v4218_v55, %v5330_v43 }
 0x52b   : > { %v4222_v61 = vpop.eup %4221  ;;  %3765 = vmatprep.subr.bf16.mxu1 %v5155_v59  ;;  %v1849_v33 = vmul.f32 %v4220_v58, %v5322_v37 }
 0x52c   : > { %v1848_v2 = vmul.f32 %v4222_v61, %v5334_v15 }
 0x52d   : > { %v1878_v39 = vpack.c.bf16 %v1850_v22, %v1849_v33 }
 0x52e   : > { %3766 = vmatpush3.bf16.msra.mxu1 %v5155_v59  ;;  %v1877_v23 = vpack.c.bf16 %v1848_v2, %v1847_v29 }
 0x52f   : > { %3767 = vmatprep.subr.bf16.mxu1 %v5284_v9 }
 0x530   : > { %3759 = vmatprep.mubr.msk.bf16.mxu1 %vm1522_vm3, %v1877_v23 }
 0x531   : > { %3760 = vmatmul.mubr.msk.bf16.gmra.mrb[28].mxu1 %vm1522_vm3, %v1878_v39 }
 0x532   : > { %3768 = vmatpush3.bf16.msra.mxu1 %v5284_v9 }
 0x533   : > { %3769 = vmatprep.subr.bf16.mxu1 %v5286_v11 }
 0x534   : > { %1157 = vrot.lane.b32.xlu1 %v5097_v21, %s4604_s0 }
 0x536   : > { %3770 = vmatpush3.bf16.msra.mxu1 %v5286_v11 }
 0x537   : > { %3779 = vmatprep.subr.bf16.mxu1 %v5280_v6  ;;  %1155 = vrot.lane.b32.xlu0 %v5087_v10, %s4604_s0 }
 0x538   : > { %1159 = vrot.lane.b32.xlu1 %v5095_v20, %s4604_s0 }
 0x547   : > { %v1747_v59 = vpop.xlane.xlu1 %1746 }
 0x553   : > { %v1771_v1 = vpop.xlane.xlu0 %1770 }
 0x557   : > { %v1741_v37 = vpop.xlane.xlu1 %1740 }
 0x55b   : > { %v1765_v41 = vpop.xlane.xlu0 %1764 }
 0x55f   : > { %v1759_v9 = vpop.xlane.xlu1 %1758  ;;  %v1750_v43 = vpop.xlane.xlu0 %1749 }
 0x560   : > { %4223 = vrcp.f32 %v1750_v43 }
 0x561   : > { %4225 = vrcp.f32 %v1741_v37 }
 0x562   : > { %4227 = vrcp.f32 %v1747_v59 }
 0x563   : > { %v1774_v15 = vpop.xlane.xlu0 %1773  ;;  %v1783_v19 = vpop.xlane.xlu1 %1782 }
 0x567   : > { %v1744_v21 = vpop.xlane.xlu0 %1743  ;;  %v1753_v11 = vpop.xlane.xlu1 %1752 }
 0x568   : > { %4229 = vrcp.f32 %v1744_v21 }
 0x569   : > { %4231 = vrcp.f32 %v1765_v41 }
 0x56a   : > { %v4224_v10 = vpop.eup %4223  ;;  %4233 = vrcp.f32 %v1753_v11 }
 0x56b   : > { %v1768_v4 = vpop.xlane.xlu0 %1767  ;;  %v1777_v16 = vpop.xlane.xlu1 %1776  ;;  %v1854_v31 = vmul.f32 %v4224_v10, %v5369_v34 }
 0x56c   : > { %v4226_v20 = vpop.eup %4225 }
 0x56d   : > { %v4228_v8 = vpop.eup %4227  ;;  %v1851_v24 = vmul.f32 %v4226_v20, %v5357_v60 }
 0x56e   : > { %v1853_v47 = vmul.f32 %v4228_v8, %v5342_v57 }
 0x56f   : > { %v1762_v35 = vpop.xlane.xlu0 %1761  ;;  %v1786_v51 = vpop.xlane.xlu1 %1785 }
 0x570   : > { %4235 = vrcp.f32 %v1762_v35  ;;  %v1880_v56 = vpack.c.bf16 %v1854_v31, %v1853_v47 }
 0x571   : > { %4237 = vrcp.f32 %v1768_v4 }
 0x572   : > { %v4230_v32 = vpop.eup %4229  ;;  %4239 = vrcp.f32 %v1759_v9 }
 0x573   : > { %v1756_v49 = vpop.xlane.xlu0 %1755  ;;  %v1852_v42 = vmul.f32 %v4230_v32, %v5389_v3  ;;  %v4232_v58 = vpop.eup %4231 }
 0x574   : > { %4241 = vrcp.f32 %v1756_v49  ;;  %v4234_v34 = vpop.eup %4233  ;;  %v1795_v57 = vpop.xlane.xlu1 %1794 }
 0x575   : > { %v1879_v53 = vpack.c.bf16 %v1852_v42, %v1851_v24  ;;  %4243 = vrcp.f32 %v1774_v15 }
 0x577   : > { %3771 = vmatprep.mubr.msk.bf16.mxu1 %vm1522_vm3, %v1879_v53  ;;  %v1780_v55 = vpop.xlane.xlu0 %1779 }
 0x578   : > { %3772 = vmatmul.mubr.msk.bf16.vlgmr.msra.gmra.mrb[32].mxu1 %vm1522_vm3, %v1880_v56  ;;  %4245 = vrcp.f32 %v1780_v55  ;;  %v1789_v59 = vpop.xlane.xlu1 %1788 }
 0x579   : > { %3780 = vmatpush3.bf16.msra.mxu1 %v5280_v6  ;;  %4247 = vrcp.f32 %v1771_v1  ;;  %v1855_v6 = vmul.f32 %v4234_v34, %v5393_v7 }
 0x57a   : > { %3781 = vmatprep.subr.bf16.mxu1 %v5278_v5  ;;  %v4236_v60 = vpop.eup %4235  ;;  %4249 = vrcp.f32 %v1777_v16 }
 0x57b   : > { %v4238_v3 = vpop.eup %4237  ;;  %v1858_v29 = vmul.f32 %v4236_v60, %v5404_v27  ;;  %v1792_v2 = vpop.xlane.xlu0 %1791  ;;  %4251 = vrcp.f32 %v1786_v51 }
 0x57c   : > { %v4240_v61 = vpop.eup %4239  ;;  %v1860_v23 = vmul.f32 %v4238_v3, %v5400_v46  ;;  %4253 = vrcp.f32 %v1792_v2  ;;  %v1798_v10 = vpop.xlane.xlu1 %1797 }
 0x57d   : > { %3782 = vmatpush3.bf16.msra.mxu1 %v5278_v5  ;;  %v1857_v39 = vmul.f32 %v4240_v61, %v5373_v44  ;;  %v1859_v5 = vmul.f32 %v4232_v58, %v5364_v12  ;;  %4255 = vrcp.f32 %v1783_v19 }
 0x57e   : > { %v4242_v22 = vpop.eup %4241  ;;  %3783 = vmatprep.subr.bf16.mxu1 %v5290_v14  ;;  %4257 = vrcp.f32 %v1789_v59 }
 0x57f   : > { %v1856_v33 = vmul.f32 %v4242_v22, %v5412_v25  ;;  %v1882_v27 = vpack.c.bf16 %v1858_v29, %v1857_v39  ;;  %v4244_v37 = vpop.eup %4243  ;;  %v1883_v7 = vpack.c.bf16 %v1860_v23, %v1859_v5  ;;  %4259 = vrcp.f32 %v1798_v10 }
 0x580   : > { %v1862_v12 = vmul.f32 %v4244_v37, %v5379_v18  ;;  %4261 = vrcp.f32 %v1795_v57  ;;  %v4095_v37 = vld [vmem:[%s4974_s8] sm:$0xff]  }
 0x581   : > { %3784 = vmatpush3.bf16.msra.mxu1 %v5290_v14  ;;  %v1881_v1 = vpack.c.bf16 %v1856_v33, %v1855_v6  ;;  %3811 = vmatprep.subr.bf16.mxu0 %v4095_v37 }
 0x582   : > { %3785 = vmatprep.subr.bf16.mxu1 %v5440_v63  ;;  %v4246_v25 = vpop.eup %4245  ;;  %3812 = vmatpush3.bf16.msra.mxu0 %v4095_v37 }
 0x583   : > { %3775 = vmatprep.mubr.msk.bf16.mxu1 %vm1522_vm3, %v1881_v1  ;;  %v4248_v44 = vpop.eup %4247  ;;  %v1864_v46 = vmul.f32 %v4246_v25, %v5420_v50 }
 0x584   : > { %3776 = vmatmul.mubr.msk.bf16.gmra.mrb[36].mxu1 %vm1522_vm3, %v1882_v27  ;;  %v4250_v14 = vpop.eup %4249  ;;  %v1861_v41 = vmul.f32 %v4248_v44, %v5351_v17  ;;  %v4097_v44 = vld [vmem:[%s4974_s8 + $0x10] sm:$0xff]  }
 0x585   : > { %3786 = vmatpush3.bf16.msra.mxu1 %v5440_v63  ;;  %3787 = vmatprep.mubr.msk.bf16.mxu1 %vm1522_vm3, %v1883_v7  ;;  %v1863_v9 = vmul.f32 %v4250_v14, %v5402_v48  ;;  %v4252_v15 = vpop.eup %4251  ;;  %v4096_v7 = vld [vmem:[%s4974_s8 + $0x8] sm:$0xff]  }
 0x586   : > { %3795 = vmatprep.subr.bf16.mxu1 %v5442_v45  ;;  %v1884_v43 = vpack.c.bf16 %v1862_v12, %v1861_v41  ;;  %v4254_v21 = vpop.eup %4253  ;;  %v1866_v11 = vmul.f32 %v4252_v15, %v5410_v40  ;;  %3813 = vmatprep.subr.bf16.mxu0 %v4096_v7 }
 0x587   : > { %v1885_v19 = vpack.c.bf16 %v1864_v46, %v1863_v9  ;;  %v4256_v63 = vpop.eup %4255  ;;  %v1868_v50 = vmul.f32 %v4254_v21, %v5434_v30  ;;  %3814 = vmatpush3.bf16.msra.mxu0 %v4096_v7 }
 0x588   : > { %v4258_v18 = vpop.eup %4257  ;;  %v1865_v17 = vmul.f32 %v4256_v63, %v5383_v28  ;;  %3815 = vmatprep.subr.bf16.mxu0 %v4097_v44 }
 0x589   : > { %v1867_v48 = vmul.f32 %v4258_v18, %v5426_v36  ;;  %v4260_v36 = vpop.eup %4259 }
 0x58a   : > { %v1886_v4 = vpack.c.bf16 %v1866_v11, %v1865_v17  ;;  %v4262_v8 = vpop.eup %4261  ;;  %v1870_v24 = vmul.f32 %v4260_v36, %v5428_v26  ;;  %v4100_v17 = vld [vmem:[%s4974_s8 + $0x28] sm:$0xff]  }
 0x58b   : > { %v1887_v35 = vpack.c.bf16 %v1868_v50, %v1867_v48  ;;  %v1869_v47 = vmul.f32 %v4262_v8, %v5418_v38  ;;  %3816 = vmatpush3.bf16.msra.mxu0 %v4097_v44 }
 0x58c   : > { %3788 = vmatmul.mubr.msk.bf16.vlgmr.msra.gmra.mrb[40].mxu1 %vm1522_vm3, %v1884_v43  ;;  %v4098_v43 = vld [vmem:[%s4974_s8 + $0x18] sm:$0xff]  }
 0x58d   : > { %3796 = vmatpush3.bf16.msra.mxu1 %v5442_v45  ;;  %3791 = vmatprep.mubr.msk.bf16.mxu1 %vm1522_vm3, %v1885_v19  ;;  %v1888_v53 = vpack.c.bf16 %v1870_v24, %v1869_v47  ;;  %v4099_v19 = vld [vmem:[%s4974_s8 + $0x20] sm:$0xff]  }
 0x58e   : > { %3817 = vmatprep.subr.bf16.mxu0 %v4098_v43 }
 0x58f   : > { %3818 = vmatpush3.bf16.msra.mxu0 %v4098_v43 }
 0x590   : > { %3819 = vmatprep.subr.bf16.mxu0 %v4099_v19 }
 0x593   : > { %3820 = vmatpush3.bf16.msra.mxu0 %v4099_v19 }
 0x594   : > { %3792 = vmatmul.mubr.msk.bf16.gmra.mrb[44].mxu1 %vm1522_vm3, %v1886_v4  ;;  %3821 = vmatprep.subr.bf16.mxu0 %v4100_v17  ;;  %v4101_v4 = vld [vmem:[%s4974_s8 + $0x30] sm:$0xff]  }
 0x595   : > { %3803 = vmatprep.mubr.msk.bf16.mxu1 %vm1522_vm3, %v1887_v35  ;;  %v4102_v35 = vld [vmem:[%s4974_s8 + $0x38] sm:$0xff]  }
 0x597   : > { %3822 = vmatpush3.bf16.msra.mxu0 %v4100_v17 }
 0x598   : > { %3823 = vmatprep.subr.bf16.mxu0 %v4101_v4 }
 0x59b   : > { %3824 = vmatpush3.bf16.msra.mxu0 %v4101_v4 }
 0x59c   : > { %3825 = vmatprep.subr.bf16.mxu0 %v4102_v35 }
 0x59f   : > { %3826 = vmatpush3.bf16.msra.mxu0 %v4102_v35 }
 0x5a8   : > { %v1807_v16 = vpop.xlane.xlu0 %1806 }
 0x5ac   : > { %v1801_v45 = vpop.xlane.xlu1 %1800 }
 0x5ad   : > { %4263 = vrcp.f32 %v1801_v45 }
 0x5ae   : > { %v1804_v20 = vpop.xlane.xlu0 %1803 }
 0x5af   : > { %4265 = vrcp.f32 %v1804_v20 }
 0x5b0   : > { %v1810_v40 = vpop.xlane.xlu1 %1809 }
 0x5b1   : > { %4267 = vrcp.f32 %v1810_v40 }
 0x5b2   : > { %v1156_v30 = vpop.permute.xlu0 %1155  ;;  %4269 = vrcp.f32 %v1807_v16 }
 0x5b3   : > { %3797 = vmatprep.subr.bf16.mxu1 %v1156_v30 }
 0x5b4   : > { %v1158_v28 = vpop.permute.xlu1 %1157  ;;  %3798 = vmatpush3.bf16.msra.mxu1 %v1156_v30 }
 0x5b5   : > { %3799 = vmatprep.subr.bf16.mxu1 %v1158_v28 }
 0x5b7   : > { %v4264_v32 = vpop.eup %4263 }
 0x5b8   : > { %v1160_v31 = vpop.permute.xlu1 %1159  ;;  %3800 = vmatpush3.bf16.msra.mxu1 %v1158_v28  ;;  %v1871_v51 = vmul.f32 %v4264_v32, %v5452_v62 }
 0x5b9   : > { %v4266_v49 = vpop.eup %4265  ;;  %3801 = vmatprep.subr.bf16.mxu1 %v1160_v31 }
 0x5ba   : > { %v1872_v42 = vmul.f32 %v4266_v49, %v5458_v0 }
 0x5bb   : > { %v4268_v56 = vpop.eup %4267 }
 0x5bc   : > { %3802 = vmatpush3.bf16.msra.mxu1 %v1160_v31  ;;  %v1889_v55 = vpack.c.bf16 %v1872_v42, %v1871_v51  ;;  %v4270_v58 = vpop.eup %4269  ;;  %v1874_v34 = vmul.f32 %v4268_v56, %v5454_v54 }
 0x5bd   : > { %v1873_v26 = vmul.f32 %v4270_v58, %v5448_v52 }
 0x5bf   : > { %3804 = vmatmul.mubr.msk.bf16.vlgmr.msra.gmra.mrb[48].mxu1 %vm1522_vm3, %v1888_v53  ;;  %v1890_v60 = vpack.c.bf16 %v1874_v34, %v1873_v26 }
 0x5c0   : > { %3807 = vmatprep.mubr.msk.bf16.mxu1 %vm1522_vm3, %v1889_v55 }
 0x5c7   : > { %3808 = vmatmul.mubr.msk.bf16.gmra.mrb[52].mxu1 %vm1522_vm3, %v1890_v60 }
 0x5fc   : > { %v5535_v0 = vpop.f32.mrb[24].mxu1 }
 0x5fd   : > { %v5537_v38 = vpop.f32.mrb[25].mxu1 }
 0x5fe   : > { %v5539_v62 = vpop.f32.mrb[26].mxu1 }
 0x5ff   : > { %v5541_v57 = vpop.f32.mrb[27].mxu1 }
 0x604   : > { %v5543_v3 = vpop.f32.mrb[28].mxu1 }
 0x605   : > { %v5545_v61 = vpop.f32.mrb[29].mxu1 }
 0x606   : > { %v5547_v22 = vpop.f32.mrb[30].mxu1 }
 0x607   : > { %v5549_v52 = vpop.f32.mrb[31].mxu1 }
 0x64b   : > { %v3773_v54 = vpop.f32.mrb[32].mxu1 }
 0x64c   : > { %v2014_v29 = vpop.f32.mrb[33].mxu1 }
 0x64d   : > { %v3774_v2 = vpop.f32.mrb[34].mxu1 }
 0x64e   : > { %v4011_v6 = vpack.i.bf16 %v3774_v2, %v3773_v54  ;;  %v2017_v33 = vpop.f32.mrb[35].mxu1 }
 0x64f   : > { %v4016_v23 = vpack.i.bf16 %v2017_v33, %v2014_v29 }
 0x650   : > { %4012 = vrot.lane.b32.xlu1 %v4011_v6, %s4604_s0 }
 0x651   : > { %4017 = vrot.lane.b32.xlu0 %v4016_v23, %s4604_s0 }
 0x657   : > { %v3777_v39 = vpop.f32.mrb[36].mxu1 }
 0x658   : > { %v2030_v59 = vpop.f32.mrb[37].mxu1 }
 0x659   : > { %v3778_v1 = vpop.f32.mrb[38].mxu1 }
 0x65a   : > { %v4046_v5 = vpack.i.bf16 %v3778_v1, %v3777_v39  ;;  %v2033_v27 = vpop.f32.mrb[39].mxu1 }
 0x65b   : > { %v4041_v25 = vpack.i.bf16 %v2033_v27, %v2030_v59 }
 0x65f   : > { %v3789_v14 = vpop.f32.mrb[40].mxu1 }
 0x660   : > { %v2091_v12 = vpop.f32.mrb[41].mxu1 }
 0x661   : > { %v3790_v46 = vpop.f32.mrb[42].mxu1 }
 0x662   : > { %v4021_v41 = vpack.i.bf16 %v3790_v46, %v3789_v14  ;;  %v2094_v9 = vpop.f32.mrb[43].mxu1 }
 0x663   : > { %v4026_v15 = vpack.i.bf16 %v2094_v9, %v2091_v12 }
 0x664   : > { %4022 = vrot.lane.b32.xlu1 %v4021_v41, %s4603_s3 }
 0x665   : > { %4027 = vrot.lane.b32.xlu0 %v4026_v15, %s4603_s3 }
 0x667   : > { %v3793_v21 = vpop.f32.mrb[44].mxu1 }
 0x668   : > { %v2107_v63 = vpop.f32.mrb[45].mxu1 }
 0x669   : > { %v3794_v18 = vpop.f32.mrb[46].mxu1 }
 0x66a   : > { %v4056_v11 = vpack.i.bf16 %v3794_v18, %v3793_v21  ;;  %v2110_v50 = vpop.f32.mrb[47].mxu1 }
 0x66b   : > { %v4051_v48 = vpack.i.bf16 %v2110_v50, %v2107_v63 }
 0x692   : > { %v3805_v10 = vpop.f32.mrb[48].mxu1 }
 0x693   : > { %v2168_v16 = vpop.f32.mrb[49].mxu1 }
 0x694   : > { %v3806_v45 = vpop.f32.mrb[50].mxu1 }
 0x695   : > { %v4036_v20 = vpack.i.bf16 %v3806_v45, %v3805_v10  ;;  %v2171_v40 = vpop.f32.mrb[51].mxu1 }
 0x696   : > { %v4031_v30 = vpack.i.bf16 %v2171_v40, %v2168_v16 }
 0x697   : > { %4037 = vrot.lane.b32.xlu1 %v4036_v20, %s4602_s11 }
 0x698   : > { %4032 = vrot.lane.b32.xlu0 %v4031_v30, %s4602_s11 }
 0x69a   : > { %v3809_v28 = vpop.f32.mrb[52].mxu1 }
 0x69b   : > { %4047 = vrot.lane.b32.xlu1 %v4046_v5, %s4604_s0  ;;  %v2184_v36 = vpop.f32.mrb[53].mxu1 }
 0x69c   : > { %4042 = vrot.lane.b32.xlu0 %v4041_v25, %s4604_s0  ;;  %v3810_v8 = vpop.f32.mrb[54].mxu1 }
 0x69d   : > { %v4066_v32 = vpack.i.bf16 %v3810_v8, %v3809_v28  ;;  %v2187_v31 = vpop.f32.mrb[55].mxu1 }
 0x69e   : > { %v4061_v49 = vpack.i.bf16 %v2187_v31, %v2184_v36 }
 0x69f   : > { %4057 = vrot.lane.b32.xlu1 %v4056_v11, %s4603_s3 }
 0x6a0   : > { %4052 = vrot.lane.b32.xlu0 %v4051_v48, %s4603_s3 }
 0x6a3   : > { %4067 = vrot.lane.b32.xlu1 %v4066_v32, %s4602_s11 }
 0x6a4   : > { %4062 = vrot.lane.b32.xlu0 %v4061_v49, %s4602_s11 }
 0x6c2   : > { %v4013_v24 = vpop.permute.xlu1 %4012 }
 0x6c3   : > { %v4018_v42 = vpop.permute.xlu0 %4017  ;;  %v4015_v51 = vunpack.i.h.bf16 %v4013_v24  ;;  %v4014_v53 = vunpack.i.l.bf16 %v4013_v24 }
 0x6c4   : > { %v4020_v55 = vunpack.i.h.bf16 %v4018_v42  ;;  %v4019_v58 = vunpack.i.l.bf16 %v4018_v42  ;;  %v2342_v42 = vsub.s32 2, %v5040_v13 }
 0x6c5   : > { %v2298_v29 = vsel %vm1165_vm2, %v5539_v62, %v4015_v51  ;;  %v2297_v2 = vsel %vm1165_vm2, %v5535_v0, %v4014_v53 }
 0x6c6   : > { %v2296_v33 = vsel %vm1165_vm2, %v5541_v57, %v4020_v55  ;;  %v2295_v23 = vsel %vm1165_vm2, %v5537_v38, %v4019_v58 }
 0x6d6   : > { %v4023_v47 = vpop.permute.xlu1 %4022 }
 0x6d7   : > { %v4028_v56 = vpop.permute.xlu0 %4027  ;;  %v4025_v34 = vunpack.i.h.bf16 %v4023_v47  ;;  %v4024_v26 = vunpack.i.l.bf16 %v4023_v47  ;;  %v5605_v47 = vld [vmem:[%s4979_s26] sm:$0xff] }
 0x6d8   : > { %v4030_v60 = vunpack.i.h.bf16 %v4028_v56  ;;  %v4029_v54 = vunpack.i.l.bf16 %v4028_v56  ;;  %v2343_v51 = vrot.slane %v5605_v47, %v2342_v42 }
 0x6d9   : > { %v2306_v5 = vsel %vm1522_vm3, %v2298_v29, %v4025_v34  ;;  %v2305_v27 = vsel %vm1522_vm3, %v2297_v2, %v4024_v26  ;;  %v4305_v2 = vld [vmem:[%s4985_s16 + $0x8] sm:$0xff] }
 0x6da   : > { %v2303_v7 = vsel %vm1522_vm3, %v2295_v23, %v4029_v54  ;;  %v2304_v0 = vsel %vm1522_vm3, %v2296_v33, %v4030_v60  ;;  %v4304_v60 = vld [vmem:[%s4985_s16] sm:$0xff]  ;;  %v4306_v33 = vld [vmem:[%s4985_s16 + $0x10] sm:$0xff] }
 0x709   : > { %v4038_v6 = vpop.permute.xlu1 %4037 }
 0x70a   : > { %v4040_v39 = vunpack.i.h.bf16 %v4038_v6  ;;  %v4039_v59 = vunpack.i.l.bf16 %v4038_v6  ;;  %v4033_v1 = vpop.permute.xlu0 %4032 }
 0x70b   : > { %v4035_v37 = vunpack.i.h.bf16 %v4033_v1  ;;  %v4034_v62 = vunpack.i.l.bf16 %v4033_v1 }
 0x70c   : > { %v2315_v25 = vsel %vm2311_vm4, %v2306_v5, %v4040_v39  ;;  %v2314_v57 = vsel %vm2311_vm4, %v2305_v27, %v4039_v59  ;;  %v4307_v59 = vld [vmem:[%s4985_s16 + $0x18] sm:$0xff] }
 0x70d   : > { %v2321_v44 = vpack.c.bf16 %v2315_v25, %v2314_v57  ;;  %v4048_v14 = vpop.permute.xlu1 %4047  ;;  %v2312_v38 = vsel %vm2311_vm4, %v2303_v7, %v4034_v62  ;;  %v2313_v12 = vsel %vm2311_vm4, %v2304_v0, %v4035_v37  ;;  %v4308_v25 = vld [vmem:[%s4985_s16 + $0x20] sm:$0xff] }
 0x70e   : > { %v4043_v46 = vpop.permute.xlu0 %4042  ;;  %v2320_v41 = vpack.c.bf16 %v2313_v12, %v2312_v38  ;;  %v4050_v9 = vunpack.i.h.bf16 %v4048_v14  ;;  %v4049_v43 = vunpack.i.l.bf16 %v4048_v14  ;;  %v4309_v38 = vld [vmem:[%s4985_s16 + $0x28] sm:$0xff] }
 0x70f   : > { %v4045_v19 = vunpack.i.h.bf16 %v4043_v46  ;;  %v4044_v21 = vunpack.i.l.bf16 %v4043_v46  ;;  %v4310_v46 = vld [vmem:[%s4985_s16 + $0x30] sm:$0xff] }
 0x710   : > { %3827 = vmatprep.mubr.bf16.mxu0 %v2320_v41  ;;  %v2302_v48 = vsel %vm1165_vm2, %v5547_v22, %v4050_v9  ;;  %v2301_v4 = vsel %vm1165_vm2, %v5543_v3, %v4049_v43  ;;  %v4311_v9 = vld [vmem:[%s4985_s16 + $0x38] sm:$0xff] }
 0x711   : > { %v4058_v15 = vpop.permute.xlu1 %4057  ;;  %3828 = vmatmul.mubr.bf16.vlgmr.msra.gmra.mrb[32].mxu0 %v2321_v44  ;;  %v2300_v10 = vsel %vm1165_vm2, %v5549_v52, %v4045_v19  ;;  %v2299_v16 = vsel %vm1165_vm2, %v5545_v61, %v4044_v21  ;;  %v4105_v19 = vld [vmem:[%s4981_s1 + $0x4] ss:$8 sps:$4 sm:$0xff]   ;;  %v4108_v21 = vld [vmem:[%s4981_s1 + $0x14] ss:$8 sps:$4 sm:$0xff]  }
 0x712   : > { %v4053_v63 = vpop.permute.xlu0 %4052  ;;  %v4060_v18 = vunpack.i.h.bf16 %v4058_v15  ;;  %v4059_v11 = vunpack.i.l.bf16 %v4058_v15  ;;  %v4103_v15 = vld [vmem:[%s4981_s1] ss:$8 sps:$4 sm:$0xff]   ;;  %2686 = vmatprep.subr.bf16.mxu1 %v4105_v19 }
 0x713   : > { %v4055_v50 = vunpack.i.h.bf16 %v4053_v63  ;;  %v4054_v17 = vunpack.i.l.bf16 %v4053_v63  ;;  %2687 = vmatpush1.bf16.msra.mxu1 %v4103_v15  ;;  %v4106_v63 = vld [vmem:[%s4981_s1 + $0x10] ss:$8 sps:$4 sm:$0xff]  }
 0x714   : > { %v2309_v30 = vsel %vm1522_vm3, %v2301_v4, %v4059_v11  ;;  %v2310_v28 = vsel %vm1522_vm3, %v2302_v48, %v4060_v18  ;;  %2688 = vmatprep.subr.bf16.mxu1 %v4108_v21 }
 0x715   : > { %v4068_v35 = vpop.permute.xlu1 %4067  ;;  %v2307_v8 = vsel %vm1522_vm3, %v2299_v16, %v4054_v17  ;;  %v2308_v3 = vsel %vm1522_vm3, %v2300_v10, %v4055_v50 }
 0x716   : > { %v4070_v45 = vunpack.i.h.bf16 %v4068_v35  ;;  %v4069_v20 = vunpack.i.l.bf16 %v4068_v35  ;;  %v4063_v40 = vpop.permute.xlu0 %4062 }
 0x717   : > { %v4065_v36 = vunpack.i.h.bf16 %v4063_v40  ;;  %v4064_v22 = vunpack.i.l.bf16 %v4063_v40  ;;  %2689 = vmatpush1.bf16.msra.mxu1 %v4106_v63 }
 0x718   : > { %v2318_v32 = vsel %vm2311_vm4, %v2309_v30, %v4069_v20  ;;  %v2319_v52 = vsel %vm2311_vm4, %v2310_v28, %v4070_v45 }
 0x719   : > { %v2316_v61 = vsel %vm2311_vm4, %v2307_v8, %v4064_v22  ;;  %v2317_v31 = vsel %vm2311_vm4, %v2308_v3, %v4065_v36  ;;  %v2323_v49 = vpack.c.bf16 %v2319_v52, %v2318_v32 }
 0x71a   : > { %v2322_v24 = vpack.c.bf16 %v2317_v31, %v2316_v61 }
 0x71c   : > { %3831 = vmatprep.mubr.bf16.mxu0 %v2322_v24 }
 0x71d   : > { %3832 = vmatmul.mubr.bf16.gmra.mrb[36].mxu0 %v2323_v49 }
 0x7e4   : > { %v3829_v53 = vpop.f32.mrb[32].mxu0 }
 0x7e5   : > { %v2426_v56 = vpop.f32.mrb[33].mxu0  ;;  %v2435_v26 = vadd.f32 %v3829_v53, %v2343_v51 }
 0x7e6   : > { %v2427_v55 = vadd.f32 %v2426_v56, %v2343_v51  ;;  %v3830_v58 = vpop.f32.mrb[34].mxu0 }
 0x7e7   : > { %v2429_v34 = vpop.f32.mrb[35].mxu0  ;;  %v2459_v23 = vadd.f32 %v4306_v33, %v2435_v26  ;;  %v2438_v39 = vadd.f32 %v3830_v58, %v2343_v51  ;;  %v4111_v26 = vld [vmem:[%s4981_s1 + $0x24] ss:$8 sps:$4 sm:$0xff]   ;;  %v4115_v33 = vld [vmem:[%s4981_s1 + $0x40] ss:$8 sps:$4 sm:$0xff]  }
 0x7e8   : > { %v2457_v54 = vadd.f32 %v4304_v60, %v2427_v55  ;;  %v2430_v29 = vadd.f32 %v2429_v34, %v2343_v51  ;;  %2690 = vmatprep.subr.bf16.mxu1 %v4111_v26 }
 0x7e9   : > { %v2460_v1 = vadd.f32 %v4307_v59, %v2438_v39  ;;  %v4118_v39 = vld [vmem:[%s4981_s1 + $0x50] ss:$8 sps:$4 sm:$0xff]   ;;  %v4123_v59 = vld [vmem:[%s4981_s1 + $0x64] ss:$8 sps:$4 sm:$0xff]  }
 0x7ea   : > { %v2458_v6 = vadd.f32 %v4305_v2, %v2430_v29  ;;  %2465 = vadd.xlane.f32.xlu0 %v2457_v54  ;;  %v4114_v29 = vld [vmem:[%s4981_s1 + $0x34] ss:$8 sps:$4 sm:$0xff]   ;;  %v4112_v2 = vld [vmem:[%s4981_s1 + $0x30] ss:$8 sps:$4 sm:$0xff]  }
 0x7ec   : > { %2467 = vadd.xlane.f32.xlu1 %v2458_v6 }
 0x7ee   : > { %2469 = vadd.xlane.f32.xlu0 %v2459_v23 }
 0x7f0   : > { %v3833_v5 = vpop.f32.mrb[36].mxu0 }
 0x7f1   : > { %v2442_v27 = vpop.f32.mrb[37].mxu0  ;;  %v2451_v0 = vadd.f32 %v3833_v5, %v2343_v51  ;;  %v4126_v5 = vld [vmem:[%s4981_s1 + $0x74] ss:$8 sps:$4 sm:$0xff]  }
 0x7f2   : > { %v2443_v37 = vadd.f32 %v2442_v27, %v2343_v51  ;;  %v3834_v62 = vpop.f32.mrb[38].mxu0  ;;  %2471 = vadd.xlane.f32.xlu0 %v2460_v1  ;;  %v4124_v27 = vld [vmem:[%s4981_s1 + $0x70] ss:$8 sps:$4 sm:$0xff]  }
 0x7f3   : > { %v2445_v7 = vpop.f32.mrb[39].mxu0  ;;  %v2454_v14 = vadd.f32 %v3834_v62, %v2343_v51  ;;  %v2463_v41 = vadd.f32 %v4310_v46, %v2451_v0  ;;  %v4127_v62 = vld [vmem:[%s4983_s24 + $0x40] sm:$0xff]   ;;  %v4129_v0 = vld [vmem:[%s4983_s24 + $0x48] sm:$0xff]  }
 0x7f4   : > { %v2461_v57 = vadd.f32 %v4308_v25, %v2443_v37  ;;  %v2446_v44 = vadd.f32 %v2445_v7, %v2343_v51  ;;  %v4605_v37 = vmov 0   ;;  %v4128_v7 = vld [vmem:[%s4983_s24] sm:$0xff]   ;;  %3557 = vmatprep.subr.bf16.mxu0 %v4127_v62  ;;  %v4130_v25 = vld [vmem:[%s4983_s24 + $0x8] sm:$0xff]  }
 0x7f5   : > { %v2464_v43 = vadd.f32 %v4311_v9, %v2454_v14  ;;  %2718 = vmatprep.mubr.bf16.mxu1 %v4605_v37  ;;  %3558 = vmatpush3.bf16.msra.mxu0 %v4128_v7  ;;  %v4133_v14 = vld [vmem:[%s4983_s24 + $0x58] sm:$0xff]   ;;  %v4136_v46 = vld [vmem:[%s4983_s24 + $0x20] sm:$0xff]  }
 0x7f6   : > { %v2462_v12 = vadd.f32 %v4309_v38, %v2446_v44  ;;  %2473 = vadd.xlane.f32.xlu1 %v2461_v57  ;;  %3559 = vmatprep.subr.bf16.mxu0 %v4129_v0  ;;  %v4132_v44 = vld [vmem:[%s4983_s24 + $0x10] sm:$0xff]   ;;  %v4134_v38 = vld [vmem:[%s4983_s24 + $0x18] sm:$0xff]  }
 0x7f8   : > { %2475 = vadd.xlane.f32.xlu0 %v2462_v12 }
 0x7f9   : > { %3560 = vmatpush3.bf16.msra.mxu0 %v4130_v25 }
 0x7fa   : > { %2477 = vadd.xlane.f32.xlu1 %v2463_v41 }
 0x7fc   : > { %2479 = vadd.xlane.f32.xlu0 %v2464_v43 }
 0x877   : > { %v2466_v18 = vpop.xlane.xlu0 %2465 }
 0x878   : > { %v2482_v11 = vmul.f32 0.0078125, %v2466_v18 }
 0x879   : > { %v2468_v50 = vpop.xlane.xlu1 %2467 }
 0x87a   : > { %v5620_v17 = vsub.f32 %v2457_v54, %v2482_v11  ;;  %v2483_v48 = vmul.f32 0.0078125, %v2468_v50  ;;  %v4109_v54 = vld [vmem:[%s4981_s1 + $0x20] ss:$8 sps:$4 sm:$0xff]  }
 0x87b   : > { %v2470_v4 = vpop.xlane.xlu0 %2469  ;;  %2691 = vmatpush1.bf16.msra.mxu1 %v4109_v54 }
 0x87c   : > { %v5622_v35 = vsub.f32 %v2458_v6, %v2483_v48  ;;  %v2484_v10 = vmul.f32 0.0078125, %v2470_v4  ;;  %v2498_v16 = vmul.f32 %v5620_v17, %v5620_v17  ;;  %2692 = vmatprep.subr.bf16.mxu1 %v4114_v29  ;;  %v4117_v6 = vld [vmem:[%s4981_s1 + $0x44] ss:$8 sps:$4 sm:$0xff]  }
 0x87e   : > { %v5626_v45 = vsub.f32 %v2459_v23, %v2484_v10  ;;  %2506 = vadd.xlane.f32.xlu1 %v2498_v16  ;;  %v2499_v20 = vmul.f32 %v5622_v35, %v5622_v35  ;;  %v4120_v23 = vld [vmem:[%s4981_s1 + $0x54] ss:$8 sps:$4 sm:$0xff]   ;;  %v2556_v10 = vsub.s32 4, %v5040_v13 }
 0x87f   : > { %v2472_v40 = vpop.xlane.xlu0 %2471  ;;  %2693 = vmatpush1.bf16.msra.mxu1 %v4112_v2 }
 0x880   : > { %v2485_v30 = vmul.f32 0.0078125, %v2472_v40  ;;  %2508 = vadd.xlane.f32.xlu0 %v2499_v20  ;;  %v2500_v28 = vmul.f32 %v5626_v45, %v5626_v45  ;;  %2694 = vmatprep.subr.bf16.mxu1 %v4117_v6 }
 0x882   : > { %v5632_v36 = vsub.f32 %v2460_v1, %v2485_v30  ;;  %2510 = vadd.xlane.f32.xlu1 %v2500_v28  ;;  %v4121_v1 = vld [vmem:[%s4981_s1 + $0x60] ss:$8 sps:$4 sm:$0xff]   ;;  %v2557_v30 = vrot.slane %v5605_v47, %v2556_v10 }
 0x883   : > { %v2474_v22 = vpop.xlane.xlu1 %2473  ;;  %2695 = vmatpush1.bf16.msra.mxu1 %v4115_v33 }
 0x884   : > { %v2486_v8 = vmul.f32 0.0078125, %v2474_v22  ;;  %v2501_v3 = vmul.f32 %v5632_v36, %v5632_v36  ;;  %2696 = vmatprep.subr.bf16.mxu1 %v4120_v23  ;;  %v2568_v22 = vsub.s32 5, %v5040_v13 }
 0x885   : > { %v2476_v32 = vpop.xlane.xlu0 %2475 }
 0x886   : > { %v5636_v52 = vsub.f32 %v2461_v57, %v2486_v8  ;;  %v2487_v61 = vmul.f32 0.0078125, %v2476_v32  ;;  %2512 = vadd.xlane.f32.xlu0 %v2501_v3  ;;  %v4131_v57 = vld [vmem:[%s4983_s24 + $0x50] sm:$0xff]   ;;  %v2569_v26 = vrot.slane %v5605_v47, %v2568_v22 }
 0x887   : > { %v2478_v31 = vpop.xlane.xlu1 %2477  ;;  %2697 = vmatpush1.bf16.msra.mxu1 %v4118_v39  ;;  %3561 = vmatprep.subr.bf16.mxu0 %v4131_v57 }
 0x888   : > { %v5638_v49 = vsub.f32 %v2462_v12, %v2487_v61  ;;  %v2488_v24 = vmul.f32 0.0078125, %v2478_v31  ;;  %v2502_v42 = vmul.f32 %v5636_v52, %v5636_v52  ;;  %2698 = vmatprep.subr.bf16.mxu1 %v4123_v59  ;;  %3562 = vmatpush3.bf16.msra.mxu0 %v4132_v44  ;;  %v4135_v12 = vld [vmem:[%s4983_s24 + $0x60] sm:$0xff]  }
 0x889   : > { %v2480_v51 = vpop.xlane.xlu0 %2479  ;;  %3563 = vmatprep.subr.bf16.mxu0 %v4133_v14 }
 0x88a   : > { %v5642_v53 = vsub.f32 %v2463_v41, %v2488_v24  ;;  %v2489_v56 = vmul.f32 0.0078125, %v2480_v51  ;;  %2514 = vadd.xlane.f32.xlu1 %v2502_v42  ;;  %v2503_v55 = vmul.f32 %v5638_v49, %v5638_v49  ;;  %v4137_v41 = vld [vmem:[%s4983_s24 + $0x68] sm:$0xff]  }
 0x88b   : > { %2699 = vmatpush1.bf16.msra.mxu1 %v4121_v1 }
 0x88c   : > { %v5646_v58 = vsub.f32 %v2464_v43, %v2489_v56  ;;  %2516 = vadd.xlane.f32.xlu0 %v2503_v55  ;;  %v2504_v34 = vmul.f32 %v5642_v53, %v5642_v53  ;;  %2700 = vmatprep.subr.bf16.mxu1 %v4126_v5 }
 0x88d   : > { %3564 = vmatpush3.bf16.msra.mxu0 %v4134_v38 }
 0x88e   : > { %2518 = vadd.xlane.f32.xlu1 %v2504_v34  ;;  %v2505_v60 = vmul.f32 %v5646_v58, %v5646_v58  ;;  %3565 = vmatprep.subr.bf16.mxu0 %v4135_v12 }
 0x88f   : > { %2701 = vmatpush1.bf16.msra.mxu1 %v4124_v27 }
 0x890   : > { %2520 = vadd.xlane.f32.xlu0 %v2505_v60 }
 0x891   : > { %3566 = vmatpush3.bf16.msra.mxu0 %v4136_v46 }
 0x892   : > { %3567 = vmatprep.subr.bf16.mxu0 %v4137_v41 }
 0x90b   : > { %v2507_v9 = vpop.xlane.xlu1 %2506 }
 0x90c   : > { %v2522_v43 = vmul.f32 0.0078125, %v2507_v9 }
 0x90d   : > { %v2509_v15 = vpop.xlane.xlu0 %2508 }
 0x90e   : > { %v2530_v19 = vadd.f32 1e-05, %v2522_v43  ;;  %v2523_v21 = vmul.f32 0.0078125, %v2509_v15 }
 0x90f   : > { %v2511_v63 = vpop.xlane.xlu1 %2510 }
 0x910   : > { %4271 = vrsqrt.f32 %v2530_v19  ;;  %v2531_v18 = vadd.f32 1e-05, %v2523_v21  ;;  %v2524_v11 = vmul.f32 0.0078125, %v2511_v63  ;;  %v4139_v21 = vld [vmem:[%s4983_s24 + $0x70] sm:$0xff]  }
 0x911   : > { %v4140_v63 = vld [vmem:[%s4983_s24 + $0x30] sm:$0xff]  }
 0x912   : > { %4273 = vrsqrt.f32 %v2531_v18  ;;  %v2532_v50 = vadd.f32 1e-05, %v2524_v11  ;;  %v4141_v18 = vld [vmem:[%s4983_s24 + $0x78] sm:$0xff]  }
 0x913   : > { %v2513_v48 = vpop.xlane.xlu0 %2512  ;;  %v4142_v11 = vld [vmem:[%s4983_s24 + $0x38] sm:$0xff]  }
 0x914   : > { %4275 = vrsqrt.f32 %v2532_v50  ;;  %v2525_v4 = vmul.f32 0.0078125, %v2513_v48  ;;  %v4312_v48 = vld [vmem:[%s4979_s26 + $0x8] sm:$0xff] }
 0x916   : > { %v2533_v16 = vadd.f32 1e-05, %v2525_v4 }
 0x917   : > { %v2515_v20 = vpop.xlane.xlu1 %2514 }
 0x918   : > { %4277 = vrsqrt.f32 %v2533_v16  ;;  %v2526_v40 = vmul.f32 0.0078125, %v2515_v20 }
 0x919   : > { %v2517_v28 = vpop.xlane.xlu0 %2516 }
 0x91a   : > { %v4272_v8 = vpop.eup %4271  ;;  %v2534_v3 = vadd.f32 1e-05, %v2526_v40  ;;  %v2527_v32 = vmul.f32 0.0078125, %v2517_v28 }
 0x91b   : > { %v2546_v61 = vmul.f32 %v4272_v8, %v5620_v17  ;;  %v2519_v31 = vpop.xlane.xlu1 %2518 }
 0x91c   : > { %v4274_v24 = vpop.eup %4273  ;;  %4279 = vrsqrt.f32 %v2534_v3  ;;  %v2535_v42 = vadd.f32 1e-05, %v2527_v32  ;;  %v2528_v51 = vmul.f32 0.0078125, %v2519_v31 }
 0x91d   : > { %v2558_v56 = vmul.f32 %v2557_v30, %v2546_v61  ;;  %v2547_v55 = vmul.f32 %v4274_v24, %v5622_v35  ;;  %v2521_v34 = vpop.xlane.xlu0 %2520 }
 0x91e   : > { %v4276_v60 = vpop.eup %4275  ;;  %4281 = vrsqrt.f32 %v2535_v42  ;;  %v2529_v54 = vmul.f32 0.0078125, %v2521_v34  ;;  %v2536_v2 = vadd.f32 1e-05, %v2528_v51 }
 0x91f   : > { %v2559_v29 = vmul.f32 %v2557_v30, %v2547_v55  ;;  %v5682_v33 = vadd.f32 %v2569_v26, %v2558_v56  ;;  %v2548_v23 = vmul.f32 %v4276_v60, %v5626_v45 }
 0x920   : > { %v2537_v6 = vadd.f32 1e-05, %v2529_v54 }
 0x921   : > { %v5684_v17 = vadd.f32 %v2569_v26, %v2559_v29  ;;  %v2560_v1 = vmul.f32 %v2557_v30, %v2548_v23 }
 0x922   : > { %v4278_v39 = vpop.eup %4277  ;;  %4283 = vrsqrt.f32 %v2537_v6 }
 0x923   : > { %v2578_v35 = vpack.c.bf16 %v5684_v17, %v5682_v33  ;;  %v2549_v59 = vmul.f32 %v4278_v39, %v5632_v36  ;;  %4285 = vrsqrt.f32 %v2536_v2  ;;  %v5693_v0 = vadd.f32 %v2569_v26, %v2560_v1 }
 0x925   : > { %2719 = vmatmul.mubr.bf16.vlgmr.msra.gmra.mrb[56].mxu1 %v2578_v35  ;;  %v2561_v5 = vmul.f32 %v2557_v30, %v2549_v59 }
 0x926   : > { %v4280_v27 = vpop.eup %4279  ;;  %2728 = vmatprep.mubr.bf16.mxu1 %v4605_v37 }
 0x927   : > { %v5691_v62 = vadd.f32 %v2569_v26, %v2561_v5  ;;  %v2550_v45 = vmul.f32 %v4280_v27, %v5636_v52 }
 0x928   : > { %v4282_v7 = vpop.eup %4281 }
 0x929   : > { %v2551_v25 = vmul.f32 %v4282_v7, %v5638_v49  ;;  %v2579_v57 = vpack.c.bf16 %v5691_v62, %v5693_v0  ;;  %v2562_v14 = vmul.f32 %v2557_v30, %v2550_v45 }
 0x92b   : > { %v2563_v36 = vmul.f32 %v2557_v30, %v2551_v25  ;;  %v5703_v52 = vadd.f32 %v2569_v26, %v2562_v14 }
 0x92c   : > { %v4284_v44 = vpop.eup %4283 }
 0x92d   : > { %2729 = vmatmul.mubr.bf16.gmra.mrb[60].mxu1 %v2579_v57  ;;  %v4286_v38 = vpop.eup %4285  ;;  %v5700_v12 = vadd.f32 %v2569_v26, %v2563_v36  ;;  %v2553_v46 = vmul.f32 %v4284_v44, %v5646_v58 }
 0x92e   : > { %2738 = vmatprep.mubr.bf16.mxu1 %v4605_v37  ;;  %v2552_v49 = vmul.f32 %v4286_v38, %v5642_v53  ;;  %v4138_v53 = vld [vmem:[%s4983_s24 + $0x28] sm:$0xff]  }
 0x92f   : > { %v2580_v41 = vpack.c.bf16 %v5700_v12, %v5703_v52  ;;  %v2565_v9 = vmul.f32 %v2557_v30, %v2553_v46  ;;  %3568 = vmatpush3.bf16.msra.mxu0 %v4138_v53 }
 0x930   : > { %v2564_v43 = vmul.f32 %v2557_v30, %v2552_v49  ;;  %3569 = vmatprep.subr.bf16.mxu0 %v4139_v21 }
 0x931   : > { %v5709_v15 = vadd.f32 %v2569_v26, %v2565_v9 }
 0x932   : > { %v5711_v19 = vadd.f32 %v2569_v26, %v2564_v43 }
 0x933   : > { %3570 = vmatpush3.bf16.msra.mxu0 %v4140_v63 }
 0x934   : > { %v2581_v58 = vpack.c.bf16 %v5709_v15, %v5711_v19  ;;  %3571 = vmatprep.subr.bf16.mxu0 %v4141_v18 }
 0x935   : > { %2739 = vmatmul.mubr.bf16.gmra.mrb[64].mxu1 %v2580_v41 }
 0x936   : > { %2748 = vmatprep.mubr.bf16.mxu1 %v4605_v37  ;;  %v2600_v37 = vsub.s32 1, %v5040_v13 }
 0x937   : > { %3572 = vmatpush3.bf16.msra.mxu0 %v4142_v11 }
 0x938   : > { %v2601_v50 = vrot.slane %v5605_v47, %v2600_v37  ;;  %v2605_v4 = vrot.slane %v4312_v48, %v2600_v37 }
 0x93d   : > { %2749 = vmatmul.mubr.bf16.gmra.mrb[68].mxu1 %v2581_v58 }
 0x9f8   : > { %v2720_v10 = vpop.f32.mrb[56].mxu1 }
 0x9f9   : > { %v2721_v16 = vadd.f32 %v2720_v10, %v2601_v50  ;;  %v2722_v20 = vpop.f32.mrb[57].mxu1 }
 0x9fa   : > { %v2723_v40 = vadd.f32 %v2722_v20, %v2605_v4  ;;  %v2724_v30 = vpop.f32.mrb[58].mxu1 }
 0x9fb   : > { %v2725_v28 = vadd.f32 %v2724_v30, %v2601_v50  ;;  %v2726_v22 = vpop.f32.mrb[59].mxu1  ;;  %v2759_v3 = vmax.f32 %v2721_v16, 0.0  ;;  %v2817_v30 = vsub.s32 3, %v5040_v13 }
 0x9fc   : > { %v2727_v8 = vadd.f32 %v2726_v22, %v2605_v4  ;;  %v2760_v61 = vmax.f32 %v2723_v40, 0.0 }
 0x9fd   : > { %v2761_v32 = vmax.f32 %v2725_v28, 0.0  ;;  %v2818_v22 = vrot.slane %v5605_v47, %v2817_v30 }
 0x9fe   : > { %v2762_v31 = vmax.f32 %v2727_v8, 0.0 }
 0x9ff   : > { %v2775_v24 = vpack.c.bf16 %v2761_v32, %v2759_v3 }
 0xa00   : > { %v2776_v42 = vpack.c.bf16 %v2762_v31, %v2760_v61  ;;  %v2730_v51 = vpop.f32.mrb[60].mxu1 }
 0xa01   : > { %v2731_v56 = vadd.f32 %v2730_v51, %v2601_v50  ;;  %v2732_v55 = vpop.f32.mrb[61].mxu1 }
 0xa02   : > { %v2733_v34 = vadd.f32 %v2732_v55, %v2605_v4  ;;  %v2734_v26 = vpop.f32.mrb[62].mxu1  ;;  %2947 = vmatprep.mubr.bf16.mxu0 %v2776_v42 }
 0xa03   : > { %v2735_v60 = vadd.f32 %v2734_v26, %v2601_v50  ;;  %v2736_v54 = vpop.f32.mrb[63].mxu1  ;;  %2948 = vmatmul.mubr.bf16.vlgmr.msra.gmra.mrb[40].mxu0 %v2775_v24  ;;  %v2763_v2 = vmax.f32 %v2731_v56, 0.0 }
 0xa04   : > { %v2737_v29 = vadd.f32 %v2736_v54, %v2605_v4  ;;  %v2764_v23 = vmax.f32 %v2733_v34, 0.0 }
 0xa05   : > { %v2765_v6 = vmax.f32 %v2735_v60, 0.0 }
 0xa06   : > { %v2766_v39 = vmax.f32 %v2737_v29, 0.0 }
 0xa07   : > { %v2777_v35 = vpack.c.bf16 %v2765_v6, %v2763_v2 }
 0xa08   : > { %v2778_v59 = vpack.c.bf16 %v2766_v39, %v2764_v23  ;;  %v2740_v1 = vpop.f32.mrb[64].mxu1 }
 0xa09   : > { %v2741_v5 = vadd.f32 %v2740_v1, %v2601_v50  ;;  %v2742_v27 = vpop.f32.mrb[65].mxu1 }
 0xa0a   : > { %v2743_v7 = vadd.f32 %v2742_v27, %v2605_v4  ;;  %v2744_v45 = vpop.f32.mrb[66].mxu1  ;;  %2955 = vmatprep.mubr.bf16.mxu0 %v2778_v59 }
 0xa0b   : > { %v2745_v25 = vadd.f32 %v2744_v45, %v2601_v50  ;;  %v2746_v57 = vpop.f32.mrb[67].mxu1  ;;  %2956 = vmatmul.mubr.bf16.gmra.mrb[44].mxu0 %v2777_v35  ;;  %v2767_v44 = vmax.f32 %v2741_v5, 0.0 }
 0xa0c   : > { %v2747_v36 = vadd.f32 %v2746_v57, %v2605_v4  ;;  %v2768_v38 = vmax.f32 %v2743_v7, 0.0 }
 0xa0d   : > { %v2769_v14 = vmax.f32 %v2745_v25, 0.0 }
 0xa0e   : > { %v2770_v46 = vmax.f32 %v2747_v36, 0.0 }
 0xa0f   : > { %v2779_v49 = vpack.c.bf16 %v2769_v14, %v2767_v44 }
 0xa10   : > { %v2780_v41 = vpack.c.bf16 %v2770_v46, %v2768_v38  ;;  %v2750_v9 = vpop.f32.mrb[68].mxu1 }
 0xa11   : > { %v2751_v43 = vadd.f32 %v2750_v9, %v2601_v50  ;;  %v2752_v58 = vpop.f32.mrb[69].mxu1 }
 0xa12   : > { %v2753_v53 = vadd.f32 %v2752_v58, %v2605_v4  ;;  %v2754_v21 = vpop.f32.mrb[70].mxu1  ;;  %2963 = vmatprep.mubr.bf16.mxu0 %v2780_v41 }
 0xa13   : > { %v2755_v63 = vadd.f32 %v2754_v21, %v2601_v50  ;;  %v2756_v18 = vpop.f32.mrb[71].mxu1  ;;  %2964 = vmatmul.mubr.bf16.gmra.mrb[48].mxu0 %v2779_v49  ;;  %v2771_v37 = vmax.f32 %v2751_v43, 0.0 }
 0xa14   : > { %v2757_v11 = vadd.f32 %v2756_v18, %v2605_v4  ;;  %v2772_v10 = vmax.f32 %v2753_v53, 0.0 }
 0xa15   : > { %v2773_v48 = vmax.f32 %v2755_v63, 0.0 }
 0xa16   : > { %v2774_v16 = vmax.f32 %v2757_v11, 0.0 }
 0xa17   : > { %v2781_v20 = vpack.c.bf16 %v2773_v48, %v2771_v37 }
 0xa18   : > { %v2782_v40 = vpack.c.bf16 %v2774_v16, %v2772_v10 }
 0xa1a   : > { %2971 = vmatprep.mubr.bf16.mxu0 %v2782_v40 }
 0xa1b   : > { %2972 = vmatmul.mubr.bf16.gmra.mrb[52].mxu0 %v2781_v20 }
 0xad6   : > { %v3573_v28 = vpop.f32.mrb[40].mxu0 }
 0xad7   : > { %v3574_v8 = vpop.f32.mrb[41].mxu0 }
 0xad8   : > { %v3575_v3 = vadd.f32 %v3574_v8, %v3573_v28  ;;  %v3576_v32 = vpop.f32.mrb[42].mxu0 }
 0xad9   : > { %v3577_v50 = vpop.f32.mrb[43].mxu0 }
 0xada   : > { %v2950_v61 = vadd.f32 %v3575_v3, %v2818_v22  ;;  %v3578_v31 = vadd.f32 %v3577_v50, %v3576_v32 }
 0xadc   : > { %v2953_v4 = vadd.f32 %v3578_v31, %v2818_v22  ;;  %v2980_v24 = vadd.f32 %v2950_v61, %v5682_v33 }
 0xade   : > { %2988 = vadd.xlane.f32.xlu1 %v2980_v24  ;;  %v3579_v42 = vpop.f32.mrb[44].mxu0  ;;  %v2981_v51 = vadd.f32 %v2953_v4, %v5684_v17 }
 0xadf   : > { %v3580_v56 = vpop.f32.mrb[45].mxu0 }
 0xae0   : > { %v3581_v55 = vadd.f32 %v3580_v56, %v3579_v42  ;;  %2990 = vadd.xlane.f32.xlu0 %v2981_v51  ;;  %v3582_v34 = vpop.f32.mrb[46].mxu0 }
 0xae1   : > { %v3583_v26 = vpop.f32.mrb[47].mxu0 }
 0xae2   : > { %v2958_v60 = vadd.f32 %v3581_v55, %v2818_v22  ;;  %v3584_v54 = vadd.f32 %v3583_v26, %v3582_v34 }
 0xae4   : > { %v2961_v29 = vadd.f32 %v3584_v54, %v2818_v22  ;;  %v2982_v2 = vadd.f32 %v2958_v60, %v5693_v0 }
 0xae6   : > { %2992 = vadd.xlane.f32.xlu1 %v2982_v2  ;;  %v3585_v6 = vpop.f32.mrb[48].mxu0  ;;  %v2983_v23 = vadd.f32 %v2961_v29, %v5691_v62 }
 0xae7   : > { %v3586_v39 = vpop.f32.mrb[49].mxu0 }
 0xae8   : > { %v3587_v33 = vadd.f32 %v3586_v39, %v3585_v6  ;;  %2994 = vadd.xlane.f32.xlu0 %v2983_v23  ;;  %v3588_v35 = vpop.f32.mrb[50].mxu0 }
 0xae9   : > { %v3589_v59 = vpop.f32.mrb[51].mxu0 }
 0xaea   : > { %v2966_v17 = vadd.f32 %v3587_v33, %v2818_v22  ;;  %v3590_v1 = vadd.f32 %v3589_v59, %v3588_v35  ;;  %v3090_v33 = vsub.s32 7, %v5040_v13 }
 0xaec   : > { %v2969_v5 = vadd.f32 %v3590_v1, %v2818_v22  ;;  %v2984_v27 = vadd.f32 %v2966_v17, %v5703_v52  ;;  %v3091_v1 = vrot.slane %v5605_v47, %v3090_v33 }
 0xaee   : > { %2996 = vadd.xlane.f32.xlu1 %v2984_v27  ;;  %v3591_v7 = vpop.f32.mrb[52].mxu0  ;;  %v2985_v45 = vadd.f32 %v2969_v5, %v5700_v12 }
 0xaef   : > { %v3592_v25 = vpop.f32.mrb[53].mxu0 }
 0xaf0   : > { %v3593_v0 = vadd.f32 %v3592_v25, %v3591_v7  ;;  %2998 = vadd.xlane.f32.xlu0 %v2985_v45  ;;  %v3594_v57 = vpop.f32.mrb[54].mxu0 }
 0xaf1   : > { %v3595_v36 = vpop.f32.mrb[55].mxu0 }
 0xaf2   : > { %v2974_v62 = vadd.f32 %v3593_v0, %v2818_v22  ;;  %v3596_v44 = vadd.f32 %v3595_v36, %v3594_v57 }
 0xaf4   : > { %v2977_v14 = vadd.f32 %v3596_v44, %v2818_v22  ;;  %v2986_v38 = vadd.f32 %v2974_v62, %v5711_v19 }
 0xaf6   : > { %3000 = vadd.xlane.f32.xlu1 %v2986_v38  ;;  %v2987_v46 = vadd.f32 %v2977_v14, %v5709_v15 }
 0xaf8   : > { %3002 = vadd.xlane.f32.xlu0 %v2987_v46 }
 0xb6b   : > { %v2989_v49 = vpop.xlane.xlu1 %2988 }
 0xb6c   : > { %v3004_v52 = vmul.f32 0.0078125, %v2989_v49 }
 0xb6d   : > { %v2991_v41 = vpop.xlane.xlu0 %2990 }
 0xb6e   : > { %v3012_v9 = vsub.f32 %v2980_v24, %v3004_v52  ;;  %v3005_v43 = vmul.f32 0.0078125, %v2991_v41 }
 0xb70   : > { %v3013_v12 = vsub.f32 %v2981_v51, %v3005_v43  ;;  %v3020_v58 = vmul.f32 %v3012_v9, %v3012_v9 }
 0xb72   : > { %3028 = vadd.xlane.f32.xlu1 %v3020_v58  ;;  %v3021_v53 = vmul.f32 %v3013_v12, %v3013_v12 }
 0xb73   : > { %v2993_v21 = vpop.xlane.xlu1 %2992 }
 0xb74   : > { %v3006_v63 = vmul.f32 0.0078125, %v2993_v21  ;;  %3030 = vadd.xlane.f32.xlu0 %v3021_v53 }
 0xb75   : > { %v2995_v18 = vpop.xlane.xlu0 %2994 }
 0xb76   : > { %v5733_v11 = vsub.f32 %v2982_v2, %v3006_v63  ;;  %v3007_v19 = vmul.f32 0.0078125, %v2995_v18  ;;  %v3078_v2 = vsub.s32 6, %v5040_v13 }
 0xb78   : > { %v5735_v37 = vsub.f32 %v2983_v23, %v3007_v19  ;;  %v3022_v15 = vmul.f32 %v5733_v11, %v5733_v11  ;;  %v3079_v59 = vrot.slane %v5605_v47, %v3078_v2 }
 0xb7a   : > { %3032 = vadd.xlane.f32.xlu1 %v3022_v15  ;;  %v3023_v48 = vmul.f32 %v5735_v37, %v5735_v37 }
 0xb7b   : > { %v2997_v10 = vpop.xlane.xlu1 %2996 }
 0xb7c   : > { %v3008_v16 = vmul.f32 0.0078125, %v2997_v10  ;;  %3034 = vadd.xlane.f32.xlu0 %v3023_v48 }
 0xb7d   : > { %v2999_v20 = vpop.xlane.xlu0 %2998 }
 0xb7e   : > { %v5741_v40 = vsub.f32 %v2984_v27, %v3008_v16  ;;  %v3009_v30 = vmul.f32 0.0078125, %v2999_v20 }
 0xb80   : > { %v5743_v28 = vsub.f32 %v2985_v45, %v3009_v30  ;;  %v3024_v22 = vmul.f32 %v5741_v40, %v5741_v40 }
 0xb82   : > { %3036 = vadd.xlane.f32.xlu1 %v3024_v22  ;;  %v3025_v8 = vmul.f32 %v5743_v28, %v5743_v28 }
 0xb83   : > { %v3001_v3 = vpop.xlane.xlu1 %3000 }
 0xb84   : > { %v3010_v32 = vmul.f32 0.0078125, %v3001_v3  ;;  %3038 = vadd.xlane.f32.xlu0 %v3025_v8 }
 0xb85   : > { %v3003_v50 = vpop.xlane.xlu0 %3002 }
 0xb86   : > { %v5749_v61 = vsub.f32 %v2986_v38, %v3010_v32  ;;  %v3011_v31 = vmul.f32 0.0078125, %v3003_v50 }
 0xb88   : > { %v5751_v4 = vsub.f32 %v2987_v46, %v3011_v31  ;;  %v3026_v24 = vmul.f32 %v5749_v61, %v5749_v61 }
 0xb8a   : > { %3040 = vadd.xlane.f32.xlu1 %v3026_v24  ;;  %v3027_v42 = vmul.f32 %v5751_v4, %v5751_v4 }
 0xb8c   : > { %3042 = vadd.xlane.f32.xlu0 %v3027_v42 }
 0xbff   : > { %v3029_v51 = vpop.xlane.xlu1 %3028 }
 0xc00   : > { %v3044_v56 = vmul.f32 0.0078125, %v3029_v51 }
 0xc01   : > { %v3031_v55 = vpop.xlane.xlu0 %3030 }
 0xc02   : > { %v3052_v34 = vadd.f32 1e-05, %v3044_v56  ;;  %v3045_v26 = vmul.f32 0.0078125, %v3031_v55 }
 0xc04   : > { %4287 = vrsqrt.f32 %v3052_v34  ;;  %v3053_v60 = vadd.f32 1e-05, %v3045_v26 }
 0xc06   : > { %4289 = vrsqrt.f32 %v3053_v60 }
 0xc07   : > { %v3033_v54 = vpop.xlane.xlu1 %3032 }
 0xc08   : > { %v3046_v29 = vmul.f32 0.0078125, %v3033_v54 }
 0xc09   : > { %v3035_v6 = vpop.xlane.xlu0 %3034 }
 0xc0a   : > { %v3054_v23 = vadd.f32 1e-05, %v3046_v29  ;;  %v3047_v39 = vmul.f32 0.0078125, %v3035_v6 }
 0xc0c   : > { %4291 = vrsqrt.f32 %v3054_v23  ;;  %v3055_v35 = vadd.f32 1e-05, %v3047_v39 }
 0xc0e   : > { %v4288_v17 = vpop.eup %4287  ;;  %4293 = vrsqrt.f32 %v3055_v35 }
 0xc0f   : > { %v3068_v5 = vmul.f32 %v4288_v17, %v3012_v9  ;;  %v3037_v27 = vpop.xlane.xlu1 %3036 }
 0xc10   : > { %v4290_v7 = vpop.eup %4289  ;;  %v3048_v45 = vmul.f32 0.0078125, %v3037_v27 }
 0xc11   : > { %v3080_v25 = vmul.f32 %v3079_v59, %v3068_v5  ;;  %v3069_v0 = vmul.f32 %v4290_v7, %v3013_v12  ;;  %v3039_v57 = vpop.xlane.xlu0 %3038 }
 0xc12   : > { %v3056_v36 = vadd.f32 1e-05, %v3048_v45  ;;  %v3049_v62 = vmul.f32 0.0078125, %v3039_v57 }
 0xc13   : > { %v3092_v13 = vadd.f32 %v3091_v1, %v3080_v25  ;;  %v3081_v44 = vmul.f32 %v3079_v59, %v3069_v0 }
 0xc14   : > { %4295 = vrsqrt.f32 %v3056_v36  ;;  %v3057_v14 = vadd.f32 1e-05, %v3049_v62 }
 0xc15   : > { %3100 = vst [vmem:[%s4985_s16] sm:$0xff] %v3092_v13  ;;  %v3093_v38 = vadd.f32 %v3091_v1, %v3081_v44 }
 0xc16   : > { %v4292_v46 = vpop.eup %4291  ;;  %4297 = vrsqrt.f32 %v3057_v14 }
 0xc17   : > { %3101 = vst [vmem:[%s4985_s16 + $0x8] sm:$0xff] %v3093_v38  ;;  %v3070_v47 = vmul.f32 %v4292_v46, %v5733_v11  ;;  %v3041_v49 = vpop.xlane.xlu1 %3040 }
 0xc18   : > { %v4294_v52 = vpop.eup %4293  ;;  %v3050_v41 = vmul.f32 0.0078125, %v3041_v49 }
 0xc19   : > { %v3082_v9 = vmul.f32 %v3079_v59, %v3070_v47  ;;  %v3071_v43 = vmul.f32 %v4294_v52, %v5735_v37  ;;  %v3043_v12 = vpop.xlane.xlu0 %3042 }
 0xc1a   : > { %v3058_v58 = vadd.f32 1e-05, %v3050_v41  ;;  %v3051_v53 = vmul.f32 0.0078125, %v3043_v12 }
 0xc1b   : > { %v3094_v21 = vadd.f32 %v3091_v1, %v3082_v9  ;;  %v3083_v63 = vmul.f32 %v3079_v59, %v3071_v43 }
 0xc1c   : > { %4299 = vrsqrt.f32 %v3058_v58  ;;  %v3059_v18 = vadd.f32 1e-05, %v3051_v53 }
 0xc1d   : > { %3102 = vst [vmem:[%s4985_s16 + $0x10] sm:$0xff] %v3094_v21  ;;  %v3095_v19 = vadd.f32 %v3091_v1, %v3083_v63 }
 0xc1e   : > { %v4296_v15 = vpop.eup %4295  ;;  %4301 = vrsqrt.f32 %v3059_v18 }
 0xc1f   : > { %3103 = vst [vmem:[%s4985_s16 + $0x18] sm:$0xff] %v3095_v19  ;;  %v3072_v11 = vmul.f32 %v4296_v15, %v5741_v40 }
 0xc20   : > { %v4298_v48 = vpop.eup %4297 }
 0xc21   : > { %v3084_v37 = vmul.f32 %v3079_v59, %v3072_v11  ;;  %v3073_v10 = vmul.f32 %v4298_v48, %v5743_v28 }
 0xc23   : > { %v3096_v16 = vadd.f32 %v3091_v1, %v3084_v37  ;;  %v3085_v20 = vmul.f32 %v3079_v59, %v3073_v10 }
 0xc25   : > { %3104 = vst [vmem:[%s4985_s16 + $0x20] sm:$0xff] %v3096_v16  ;;  %v3097_v30 = vadd.f32 %v3091_v1, %v3085_v20 }
 0xc26   : > { %v4300_v22 = vpop.eup %4299 }
 0xc27   : > { %3105 = vst [vmem:[%s4985_s16 + $0x28] sm:$0xff] %v3097_v30  ;;  %v3074_v8 = vmul.f32 %v4300_v22, %v5749_v61 }
 0xc28   : > { %v4302_v3 = vpop.eup %4301 }
 0xc29   : > { %v3086_v32 = vmul.f32 %v3079_v59, %v3074_v8  ;;  %v3075_v40 = vmul.f32 %v4302_v3, %v5751_v4 }
 0xc2b   : > { %v3098_v50 = vadd.f32 %v3091_v1, %v3086_v32  ;;  %v3087_v28 = vmul.f32 %v3079_v59, %v3075_v40 }
 0xc2d   : > { %3106 = vst [vmem:[%s4985_s16 + $0x30] sm:$0xff] %v3098_v50  ;;  %v3099_v61 = vadd.f32 %v3091_v1, %v3087_v28 }
 0xc2f   : > { %3107 = vst [vmem:[%s4985_s16 + $0x38] sm:$0xff] %v3099_v61 }
 0xc30   : > { %4472 = shalt.err (!%p4469_p4)
}
 0xc31   : > { %s4473_s5 = scalar_lea.hbm %s5778_s21, 1024  ;;  %s4477_s27 = scalar_lea.hbm %s5930_s7, 2048 }
 0xc32   : > { %p4474_p6 = scmp.ne.s32.totalorder %s5778_s21, %s4473_s5  ;;  %p4478_p9 = scmp.lt.u32.totalorder %s5778_s21, %s5930_s7 }
 0xc33   : > { %p4479_p2 = scmp.lt.u32.totalorder %s4477_s27, %s4473_s5  ;;  %p4481_p10 = scmp.lt.u32.totalorder %s4473_s5, %s5778_s21 }
 0xc34   : > { %p4475_p1 = pnand %p4474_p6, %p5931_p7 }
 0xc35   : > { %p4480_p3 = por %p4479_p2, %p4478_p9 }
 0xc36   : > { %p4476_p5 = pneg %p4475_p1 }
 0xc37   : > { %p4482_p13 = por %p4481_p10, %p4480_p3 }
 0xc39   : > { %p4483_p0 = pnand %p4482_p13, %p4476_p5 }
 0xc3b   : > { %4486 = shalt.err (!%p4483_p0)
}
 0xc3c   : > { %s4607_s26 = smov 128   ;;  %s4608_s1 = smov 8  }
 0xc3d   : > { %3877 = dma.vmem_to_hbm [thread:$0]  (%p5931_p7), %s5780_s20, 1024, %s5778_s21, %s5786_s23, %s4607_s26, %s4607_s26, %s4608_s1  }
 0xc3e PF: > { %s5932_s24 = sld [smem:[#allocation18_spill]]  ;;  %s5933_s16 = sld [smem:[#allocation15_spill]] }
 0xc3f   : > { %s5934_s11 = sld [smem:[#allocation20_spill]] }
 0xc44   : > { %p3905_p12 = scmp.ge.s32.totalorder %s5932_s24, 2  ;;  %s3137_s3 = sand.u32 1, %s5933_s16  }
 0xc45   : > { %p5935_p8 = scmp.ne.s32.totalorder %s5934_s11, 0  ;;  %s3138_s0 = scalar_lea.sflag [#allocation4], %s3137_s3 }
 0xc47   : > { %p3897_p11 = pnand %p3905_p12, %p5935_p8 }
 0xc49   : > { %4544 = dma.done.wait (!%p3897_p11), %s3138_s0, 1024  }
 0xc4a   : > { %4546 = vsyncadd (!%p3897_p11), %s3138_s0, 4294966272  ;;  %s23_s15 = sadd.s32 1, %s5932_s24   ;;  %s5936_s19 = sld [smem:[#allocation24_spill]] }
 0xc4b   : > { %p20_p4 = scmp.ge.s32.totalorder %s23_s15, 6   ;;  %s5937_s10 = sld [smem:[#allocation16_spill]] }
 0xc4c   : > { %s5938_s20 = sld [smem:[#allocation23_spill]]  ;;  %s5939_s12 = sld [smem:[#allocation17_spill]] }
 0xc4d   : > { %s5940_s4 = sld [smem:[#allocation21_spill]]  ;;  %s5941_s14 = sld [smem:[#allocation22_spill]] }
 0xc4e   : > { %s5942_s27 = smov %s4553_s28  ;;  %s5943_s28 = smov %s4557_s29 }
 0xc4f   : > { %s5945_s30 = smov %s4565_s9  ;;  %s5948_s11 = smov %s4581_s13 }
 0xc50   : > { %s5944_s29 = smov %s5936_s19  ;;  %22 = sbr.rel (!%p20_p4) target bundleno = 17 (0x11), region = 139 }
 0xc51   : > { %s5946_s9 = smov %s5937_s10 }
 0xc52   : > { %s5947_s10 = smov %s5938_s20 }
 0xc53   : > { %s5949_s13 = smov %s5940_s4 }
 0xc57   :  { %3143 = vsyncpa [#allocation3], 1 }
 0xc58   :  { %3145 = vsyncpa [#allocation3 + $0x1], 1 }
 0xc59   :  { %3146 = vsyncpa [#allocation6], 1 }
 0xc5a   :  { %3147 = vsyncpa [#allocation4], 1 }
 0xc5b   :  { %3149 = vsyncpa [#allocation4 + $0x1], 1 }

</bundles_post_ra>
